<compile_context>
chip_gen: v6e
topology: v6e:2x2x1
jax: 0.10.0
libtpu: 0.0.40
codegen_flags: <defaults>
</compile_context>

<pallas_src>
import functools
import math

import jax
import jax.numpy as jnp
from jax.experimental import pallas as pl
from jax.experimental.pallas import tpu as pltpu


# ----------------------------------------------------------------------------
# Fused forward kernel: one batch element per grid step, all layers unrolled.
# ----------------------------------------------------------------------------
def _fused_forward_kernel(x_ref, inp_w_ref, inp_b_ref,
                          qkv_w_ref, qkv_b_ref,
                          attn_w_ref, attn_b_ref, ln1_g_ref, ln1_b_ref,
                          ff1_w_ref, ff1_b_ref, ff2_w_ref, ff2_b_ref,
                          ln2_g_ref, ln2_b_ref,
                          o_ref, *, num_layers, num_heads, eps):
    S = x_ref.shape[0]
    H = inp_w_ref.shape[1]
    hd = H // num_heads
    scale = 1.0 / math.sqrt(hd)

    # ---- input projection (fused; avoids an HBM round-trip of (B,S,H)) ----
    x = jnp.dot(x_ref[...], inp_w_ref[...], preferred_element_type=jnp.float32)
    x = x + inp_b_ref[...]

    for l in range(num_layers):
        # ------------------- self-attention block -------------------
        qkv = jnp.dot(x, qkv_w_ref[l], preferred_element_type=jnp.float32)
        qkv = qkv + qkv_b_ref[l]
        # Scale q once (S*H multiplies) rather than the (S,S) score matrices.
        q = qkv[:, 0 * H:1 * H] * scale
        k = qkv[:, 1 * H:2 * H]
        v = qkv[:, 2 * H:3 * H]

        head_outs = []
        for h in range(num_heads):
            sl = slice(h * hd, (h + 1) * hd)
            qh, kh, vh = q[:, sl], k[:, sl], v[:, sl]
            # q @ k^T without materializing the transpose (folded into the MXU feed).
            s = jax.lax.dot_general(qh, kh, (((1,), (1,)), ((), ())),
                                    preferred_element_type=jnp.float32)
            m = jnp.max(s, axis=-1, keepdims=True)
            p = jnp.exp(s - m)
            p = p / jnp.sum(p, axis=-1, keepdims=True)   # exact softmax
            head_outs.append(jnp.dot(p, vh, preferred_element_type=jnp.float32))
        # Lane-dense reassembly of all heads; single full-width value (no
        # per-head masked partial stores).
        attn = jnp.concatenate(head_outs, axis=-1)

        # out_proj + residual + LayerNorm1 (post-norm)
        y = jnp.dot(attn, attn_w_ref[l], preferred_element_type=jnp.float32)
        z = x + y + attn_b_ref[l]
        mean = jnp.mean(z, axis=-1, keepdims=True)
        c = z - mean
        var = jnp.mean(c * c, axis=-1, keepdims=True)
        x = c * jax.lax.rsqrt(var + eps) * ln1_g_ref[l] + ln1_b_ref[l]

        # ------------------- feed-forward block -------------------
        hid = jnp.dot(x, ff1_w_ref[l], preferred_element_type=jnp.float32)
        hid = jnp.maximum(hid + ff1_b_ref[l], 0.0)        # ReLU
        y = jnp.dot(hid, ff2_w_ref[l], preferred_element_type=jnp.float32)
        z = x + y + ff2_b_ref[l]
        mean = jnp.mean(z, axis=-1, keepdims=True)
        c = z - mean
        var = jnp.mean(c * c, axis=-1, keepdims=True)
        x = c * jax.lax.rsqrt(var + eps) * ln2_g_ref[l] + ln2_b_ref[l]

    # The reference module only consumes encoded[:, -1, :]; write that row only.
    o_ref[...] = x[S - 1:S, :]


# ----------------------------------------------------------------------------
# Wrapper
# ----------------------------------------------------------------------------
@functools.partial(jax.jit, static_argnames=("num_heads", "num_layers"))
def time_series_transformer_forward(x, params, *, num_heads, num_layers):
    """x: (batch, seq, input_size) -> (batch, 1, output_size)."""
    B, S, Fin = x.shape
    H = params["inp_w"].shape[1]
    F = params["ff1_w"].shape[-1]
    L = num_layers
    assert H % num_heads == 0, "hidden_dim must be divisible by num_heads"

    const3 = lambda b: (0, 0, 0)
    enc_last = pl.pallas_call(
        functools.partial(_fused_forward_kernel,
                          num_layers=L, num_heads=num_heads, eps=1e-5),
        out_shape=jax.ShapeDtypeStruct((B, 1, H), jnp.float32),
        grid=(B,),
        in_specs=[
            pl.BlockSpec((None, S, Fin), lambda b: (b, 0, 0)),   # x (per batch)
            pl.BlockSpec((Fin, H), lambda b: (0, 0)),            # inp_w (resident)
            pl.BlockSpec((1, H), lambda b: (0, 0)),              # inp_b
            pl.BlockSpec((L, H, 3 * H), const3),                 # qkv_w
            pl.BlockSpec((L, 1, 3 * H), const3),                 # qkv_b
            pl.BlockSpec((L, H, H), const3),                     # attn out_proj w
            pl.BlockSpec((L, 1, H), const3),                     # attn out_proj b
            pl.BlockSpec((L, 1, H), const3),                     # ln1 gamma
            pl.BlockSpec((L, 1, H), const3),                     # ln1 beta
            pl.BlockSpec((L, H, F), const3),                     # ff1 w
            pl.BlockSpec((L, 1, F), const3),                     # ff1 b
            pl.BlockSpec((L, F, H), const3),                     # ff2 w
            pl.BlockSpec((L, 1, H), const3),                     # ff2 b
            pl.BlockSpec((L, 1, H), const3),                     # ln2 gamma
            pl.BlockSpec((L, 1, H), const3),                     # ln2 beta
        ],
        out_specs=pl.BlockSpec((None, 1, H), lambda b: (b, 0, 0)),
        compiler_params=pltpu.CompilerParams(
            dimension_semantics=("parallel",)),
    )(x,
      params["inp_w"], params["inp_b"],
      params["qkv_w"], params["qkv_b"],
      params["attn_out_w"], params["attn_out_b"],
      params["ln1_g"], params["ln1_b"],
      params["ff1_w"], params["ff1_b"],
      params["ff2_w"], params["ff2_b"],
      params["ln2_g"], params["ln2_b"])

    # Final output projection: N=output_size (=1) -> 1-lane output, ~0% MXU
    # utilization and launch cost > compute in a Pallas kernel; plain XLA is
    # at least as fast here (per perf review).
    last = enc_last[:, 0, :]                         # == encoded[:, -1, :]
    out = last @ params["out_w"] + params["out_b"]   # output_projection
    return out[:, None, :]                           # unsqueeze(1)


# ----------------------------------------------------------------------------
# Parameter construction (weights pre-transposed to (in, out); layers stacked)
# ----------------------------------------------------------------------------
def init_params(key, input_size, hidden_dim, output_size, num_layers,
                dim_feedforward=2048):
    def dense(k, shape):
        return jax.random.normal(k, shape, dtype=jnp.float32) * 0.02

    L, H, F = num_layers, hidden_dim, dim_feedforward
    ks = jax.random.split(key, 6)
    params = {
        "inp_w": dense(ks[0], (input_size, H)),
        "inp_b": jnp.zeros((1, H), jnp.float32),
        "qkv_w": dense(ks[1], (L, H, 3 * H)),
        "qkv_b": jnp.zeros((L, 1, 3 * H), jnp.float32),
        "attn_out_w": dense(ks[2], (L, H, H)),
        "attn_out_b": jnp.zeros((L, 1, H), jnp.float32),
        "ln1_g": jnp.ones((L, 1, H), jnp.float32),
        "ln1_b": jnp.zeros((L, 1, H), jnp.float32),
        "ff1_w": dense(ks[3], (L, H, F)),
        "ff1_b": jnp.zeros((L, 1, F), jnp.float32),
        "ff2_w": dense(ks[4], (L, F, H)),
        "ff2_b": jnp.zeros((L, 1, H), jnp.float32),
        "ln2_g": jnp.ones((L, 1, H), jnp.float32),
        "ln2_b": jnp.zeros((L, 1, H), jnp.float32),
        "out_w": dense(ks[5], (H, output_size)),
        "out_b": jnp.zeros((output_size,), jnp.float32),
    }
    # Fused-kernel assumption: all encoder weights resident in VMEM.  Stay well
    # under the v5e 16 MiB default scoped VMEM even with double-buffering.
    wbytes = 4 * (input_size * H + L * (H * 3 * H + H * H + 2 * H * F))
    assert wbytes < 6 * 1024 * 1024, (
        "config too large for the fully-fused VMEM-resident kernel; "
        "use tiled per-op kernels instead")
    return params


if __name__ == "__main__":
    # Small config consistent with the module's forward.
    batch, seq = 2, 8
    input_size, hidden_dim = 16, 32
    num_heads, num_layers, output_size = 4, 2, 1

    key = jax.random.PRNGKey(0)
    kx, kp = jax.random.split(key)
    x = jax.random.normal(kx, (batch, seq, input_size), dtype=jnp.float32)
    params = init_params(kp, input_size, hidden_dim, output_size, num_layers)

    out = time_series_transformer_forward(
        x, params, num_heads=num_heads, num_layers=num_layers)
    out = jax.block_until_ready(out)

    assert out.shape == (batch, 1, output_size), out.shape
    assert bool(jnp.all(jnp.isfinite(out)))
    print("KERNEL_OK")
</pallas_src>

<mosaic_0001>
module attributes {stable_mosaic.version = 11 : i64} {
  func.func @_fused_forward_kernel(%arg0: i32, %arg1: memref<1x8x16xf32, #tpu.memory_space<vmem>>, %arg2: memref<16x32xf32, #tpu.memory_space<vmem>>, %arg3: memref<1x32xf32, #tpu.memory_space<vmem>>, %arg4: memref<2x32x96xf32, #tpu.memory_space<vmem>>, %arg5: memref<2x1x96xf32, #tpu.memory_space<vmem>>, %arg6: memref<2x32x32xf32, #tpu.memory_space<vmem>>, %arg7: memref<2x1x32xf32, #tpu.memory_space<vmem>>, %arg8: memref<2x1x32xf32, #tpu.memory_space<vmem>>, %arg9: memref<2x1x32xf32, #tpu.memory_space<vmem>>, %arg10: memref<2x32x2048xf32, #tpu.memory_space<vmem>>, %arg11: memref<2x1x2048xf32, #tpu.memory_space<vmem>>, %arg12: memref<2x2048x32xf32, #tpu.memory_space<vmem>>, %arg13: memref<2x1x32xf32, #tpu.memory_space<vmem>>, %arg14: memref<2x1x32xf32, #tpu.memory_space<vmem>>, %arg15: memref<2x1x32xf32, #tpu.memory_space<vmem>>, %arg16: memref<1x1x32xf32, #tpu.memory_space<vmem>>) attributes {dimension_semantics = [#tpu.dimension_semantics<parallel>], iteration_bounds = array<i64: 2>, scalar_prefetch = 0 : i64, scratch_operands = 0 : i64, tpu.core_type = #tpu.core_type<tc>, window_params = [{transform_indices = @transform_0, window_bounds = array<i64: 1, 8, 16>}, {pipeline_mode = #tpu.pipeline_mode<synchronous>, transform_indices = @transform_1, window_bounds = array<i64: 16, 32>}, {pipeline_mode = #tpu.pipeline_mode<synchronous>, transform_indices = @transform_2, window_bounds = array<i64: 1, 32>}, {pipeline_mode = #tpu.pipeline_mode<synchronous>, transform_indices = @transform_3, window_bounds = array<i64: 2, 32, 96>}, {pipeline_mode = #tpu.pipeline_mode<synchronous>, transform_indices = @transform_4, window_bounds = array<i64: 2, 1, 96>}, {pipeline_mode = #tpu.pipeline_mode<synchronous>, transform_indices = @transform_5, window_bounds = array<i64: 2, 32, 32>}, {pipeline_mode = #tpu.pipeline_mode<synchronous>, transform_indices = @transform_6, window_bounds = array<i64: 2, 1, 32>}, {pipeline_mode = #tpu.pipeline_mode<synchronous>, transform_indices = @transform_7, window_bounds = array<i64: 2, 1, 32>}, {pipeline_mode = #tpu.pipeline_mode<synchronous>, transform_indices = @transform_8, window_bounds = array<i64: 2, 1, 32>}, {pipeline_mode = #tpu.pipeline_mode<synchronous>, transform_indices = @transform_9, window_bounds = array<i64: 2, 32, 2048>}, {pipeline_mode = #tpu.pipeline_mode<synchronous>, transform_indices = @transform_10, window_bounds = array<i64: 2, 1, 2048>}, {pipeline_mode = #tpu.pipeline_mode<synchronous>, transform_indices = @transform_11, window_bounds = array<i64: 2, 2048, 32>}, {pipeline_mode = #tpu.pipeline_mode<synchronous>, transform_indices = @transform_12, window_bounds = array<i64: 2, 1, 32>}, {pipeline_mode = #tpu.pipeline_mode<synchronous>, transform_indices = @transform_13, window_bounds = array<i64: 2, 1, 32>}, {pipeline_mode = #tpu.pipeline_mode<synchronous>, transform_indices = @transform_14, window_bounds = array<i64: 2, 1, 32>}, {transform_indices = @transform_15, window_bounds = array<i64: 1, 1, 32>}]} {
    %c0 = arith.constant 0 : index
    %c0_0 = arith.constant 0 : index
    %c0_1 = arith.constant 0 : index
    %0 = vector.load %arg1[%c0, %c0_0, %c0_1] : memref<1x8x16xf32, #tpu.memory_space<vmem>>, vector<1x8x16xf32>
    %1 = vector.shape_cast %0 : vector<1x8x16xf32> to vector<8x16xf32>
    %c0_2 = arith.constant 0 : index
    %c0_3 = arith.constant 0 : index
    %2 = vector.load %arg2[%c0_2, %c0_3] : memref<16x32xf32, #tpu.memory_space<vmem>>, vector<16x32xf32>
    %cst = arith.constant dense<0.000000e+00> : vector<8x32xf32>
    %3 = tpu.matmul %1, %2, %cst {dimension_numbers = #tpu.dot_dimension_numbers<[1], [0], [0], [1], [0, 0, 1, 1], [], []>} : vector<8x16xf32>, vector<16x32xf32>, vector<8x32xf32> -> vector<8x32xf32>
    %c0_4 = arith.constant 0 : index
    %c0_5 = arith.constant 0 : index
    %4 = vector.load %arg3[%c0_4, %c0_5] : memref<1x32xf32, #tpu.memory_space<vmem>>, vector<1x32xf32>
    %5 = vector.broadcast %4 : vector<1x32xf32> to vector<8x32xf32>
    %6 = arith.addf %3, %5 : vector<8x32xf32>
    %c0_6 = arith.constant 0 : index
    %c0_7 = arith.constant 0 : index
    %c0_8 = arith.constant 0 : index
    %7 = vector.load %arg4[%c0_6, %c0_7, %c0_8] : memref<2x32x96xf32, #tpu.memory_space<vmem>>, vector<1x32x96xf32>
    %8 = vector.shape_cast %7 : vector<1x32x96xf32> to vector<32x96xf32>
    %cst_9 = arith.constant dense<0.000000e+00> : vector<8x96xf32>
    %9 = tpu.matmul %6, %8, %cst_9 {dimension_numbers = #tpu.dot_dimension_numbers<[1], [0], [0], [1], [0, 0, 1, 1], [], []>} : vector<8x32xf32>, vector<32x96xf32>, vector<8x96xf32> -> vector<8x96xf32>
    %c0_10 = arith.constant 0 : index
    %c0_11 = arith.constant 0 : index
    %c0_12 = arith.constant 0 : index
    %10 = vector.load %arg5[%c0_10, %c0_11, %c0_12] : memref<2x1x96xf32, #tpu.memory_space<vmem>>, vector<1x1x96xf32>
    %11 = vector.shape_cast %10 : vector<1x1x96xf32> to vector<1x96xf32>
    %12 = vector.broadcast %11 : vector<1x96xf32> to vector<8x96xf32>
    %13 = arith.addf %9, %12 : vector<8x96xf32>
    %14 = vector.extract_strided_slice %13 {offsets = [0, 0], sizes = [8, 32], strides = [1, 1]} : vector<8x96xf32> to vector<8x32xf32>
    %cst_13 = arith.constant 0.353553385 : f32
    %15 = vector.broadcast %cst_13 : f32 to vector<8x32xf32>
    %16 = arith.mulf %14, %15 : vector<8x32xf32>
    %17 = vector.extract_strided_slice %13 {offsets = [0, 32], sizes = [8, 32], strides = [1, 1]} : vector<8x96xf32> to vector<8x32xf32>
    %18 = vector.extract_strided_slice %13 {offsets = [0, 64], sizes = [8, 32], strides = [1, 1]} : vector<8x96xf32> to vector<8x32xf32>
    %19 = vector.extract_strided_slice %16 {offsets = [0, 0], sizes = [8, 8], strides = [1, 1]} : vector<8x32xf32> to vector<8x8xf32>
    %20 = vector.extract_strided_slice %17 {offsets = [0, 0], sizes = [8, 8], strides = [1, 1]} : vector<8x32xf32> to vector<8x8xf32>
    %21 = vector.extract_strided_slice %18 {offsets = [0, 0], sizes = [8, 8], strides = [1, 1]} : vector<8x32xf32> to vector<8x8xf32>
    %cst_14 = arith.constant dense<0.000000e+00> : vector<8x8xf32>
    %22 = tpu.matmul %19, %20, %cst_14 {dimension_numbers = #tpu.dot_dimension_numbers<[1], [1], [0], [0], [0, 0, 1, 0], [], []>} : vector<8x8xf32>, vector<8x8xf32>, vector<8x8xf32> -> vector<8x8xf32>
    %cst_15 = arith.constant dense<0xFF800000> : vector<8xf32>
    %23 = vector.multi_reduction <maximumf>, %22, %cst_15 [1] : vector<8x8xf32> to vector<8xf32>
    %24 = vector.shape_cast %23 : vector<8xf32> to vector<8x1xf32>
    %25 = vector.broadcast %24 : vector<8x1xf32> to vector<8x8xf32>
    %26 = arith.subf %22, %25 : vector<8x8xf32>
    %27 = math.exp %26 : vector<8x8xf32>
    %cst_16 = arith.constant dense<0.000000e+00> : vector<8xf32>
    %28 = vector.multi_reduction <add>, %27, %cst_16 [1] : vector<8x8xf32> to vector<8xf32>
    %29 = vector.shape_cast %28 : vector<8xf32> to vector<8x1xf32>
    %30 = vector.broadcast %29 : vector<8x1xf32> to vector<8x8xf32>
    %31 = arith.divf %27, %30 : vector<8x8xf32>
    %cst_17 = arith.constant dense<0.000000e+00> : vector<8x8xf32>
    %32 = tpu.matmul %31, %21, %cst_17 {dimension_numbers = #tpu.dot_dimension_numbers<[1], [0], [0], [1], [0, 0, 1, 1], [], []>} : vector<8x8xf32>, vector<8x8xf32>, vector<8x8xf32> -> vector<8x8xf32>
    %33 = vector.extract_strided_slice %16 {offsets = [0, 8], sizes = [8, 8], strides = [1, 1]} : vector<8x32xf32> to vector<8x8xf32>
    %34 = vector.extract_strided_slice %17 {offsets = [0, 8], sizes = [8, 8], strides = [1, 1]} : vector<8x32xf32> to vector<8x8xf32>
    %35 = vector.extract_strided_slice %18 {offsets = [0, 8], sizes = [8, 8], strides = [1, 1]} : vector<8x32xf32> to vector<8x8xf32>
    %cst_18 = arith.constant dense<0.000000e+00> : vector<8x8xf32>
    %36 = tpu.matmul %33, %34, %cst_18 {dimension_numbers = #tpu.dot_dimension_numbers<[1], [1], [0], [0], [0, 0, 1, 0], [], []>} : vector<8x8xf32>, vector<8x8xf32>, vector<8x8xf32> -> vector<8x8xf32>
    %cst_19 = arith.constant dense<0xFF800000> : vector<8xf32>
    %37 = vector.multi_reduction <maximumf>, %36, %cst_19 [1] : vector<8x8xf32> to vector<8xf32>
    %38 = vector.shape_cast %37 : vector<8xf32> to vector<8x1xf32>
    %39 = vector.broadcast %38 : vector<8x1xf32> to vector<8x8xf32>
    %40 = arith.subf %36, %39 : vector<8x8xf32>
    %41 = math.exp %40 : vector<8x8xf32>
    %cst_20 = arith.constant dense<0.000000e+00> : vector<8xf32>
    %42 = vector.multi_reduction <add>, %41, %cst_20 [1] : vector<8x8xf32> to vector<8xf32>
    %43 = vector.shape_cast %42 : vector<8xf32> to vector<8x1xf32>
    %44 = vector.broadcast %43 : vector<8x1xf32> to vector<8x8xf32>
    %45 = arith.divf %41, %44 : vector<8x8xf32>
    %cst_21 = arith.constant dense<0.000000e+00> : vector<8x8xf32>
    %46 = tpu.matmul %45, %35, %cst_21 {dimension_numbers = #tpu.dot_dimension_numbers<[1], [0], [0], [1], [0, 0, 1, 1], [], []>} : vector<8x8xf32>, vector<8x8xf32>, vector<8x8xf32> -> vector<8x8xf32>
    %47 = vector.extract_strided_slice %16 {offsets = [0, 16], sizes = [8, 8], strides = [1, 1]} : vector<8x32xf32> to vector<8x8xf32>
    %48 = vector.extract_strided_slice %17 {offsets = [0, 16], sizes = [8, 8], strides = [1, 1]} : vector<8x32xf32> to vector<8x8xf32>
    %49 = vector.extract_strided_slice %18 {offsets = [0, 16], sizes = [8, 8], strides = [1, 1]} : vector<8x32xf32> to vector<8x8xf32>
    %cst_22 = arith.constant dense<0.000000e+00> : vector<8x8xf32>
    %50 = tpu.matmul %47, %48, %cst_22 {dimension_numbers = #tpu.dot_dimension_numbers<[1], [1], [0], [0], [0, 0, 1, 0], [], []>} : vector<8x8xf32>, vector<8x8xf32>, vector<8x8xf32> -> vector<8x8xf32>
    %cst_23 = arith.constant dense<0xFF800000> : vector<8xf32>
    %51 = vector.multi_reduction <maximumf>, %50, %cst_23 [1] : vector<8x8xf32> to vector<8xf32>
    %52 = vector.shape_cast %51 : vector<8xf32> to vector<8x1xf32>
    %53 = vector.broadcast %52 : vector<8x1xf32> to vector<8x8xf32>
    %54 = arith.subf %50, %53 : vector<8x8xf32>
    %55 = math.exp %54 : vector<8x8xf32>
    %cst_24 = arith.constant dense<0.000000e+00> : vector<8xf32>
    %56 = vector.multi_reduction <add>, %55, %cst_24 [1] : vector<8x8xf32> to vector<8xf32>
    %57 = vector.shape_cast %56 : vector<8xf32> to vector<8x1xf32>
    %58 = vector.broadcast %57 : vector<8x1xf32> to vector<8x8xf32>
    %59 = arith.divf %55, %58 : vector<8x8xf32>
    %cst_25 = arith.constant dense<0.000000e+00> : vector<8x8xf32>
    %60 = tpu.matmul %59, %49, %cst_25 {dimension_numbers = #tpu.dot_dimension_numbers<[1], [0], [0], [1], [0, 0, 1, 1], [], []>} : vector<8x8xf32>, vector<8x8xf32>, vector<8x8xf32> -> vector<8x8xf32>
    %61 = vector.extract_strided_slice %16 {offsets = [0, 24], sizes = [8, 8], strides = [1, 1]} : vector<8x32xf32> to vector<8x8xf32>
    %62 = vector.extract_strided_slice %17 {offsets = [0, 24], sizes = [8, 8], strides = [1, 1]} : vector<8x32xf32> to vector<8x8xf32>
    %63 = vector.extract_strided_slice %18 {offsets = [0, 24], sizes = [8, 8], strides = [1, 1]} : vector<8x32xf32> to vector<8x8xf32>
    %cst_26 = arith.constant dense<0.000000e+00> : vector<8x8xf32>
    %64 = tpu.matmul %61, %62, %cst_26 {dimension_numbers = #tpu.dot_dimension_numbers<[1], [1], [0], [0], [0, 0, 1, 0], [], []>} : vector<8x8xf32>, vector<8x8xf32>, vector<8x8xf32> -> vector<8x8xf32>
    %cst_27 = arith.constant dense<0xFF800000> : vector<8xf32>
    %65 = vector.multi_reduction <maximumf>, %64, %cst_27 [1] : vector<8x8xf32> to vector<8xf32>
    %66 = vector.shape_cast %65 : vector<8xf32> to vector<8x1xf32>
    %67 = vector.broadcast %66 : vector<8x1xf32> to vector<8x8xf32>
    %68 = arith.subf %64, %67 : vector<8x8xf32>
    %69 = math.exp %68 : vector<8x8xf32>
    %cst_28 = arith.constant dense<0.000000e+00> : vector<8xf32>
    %70 = vector.multi_reduction <add>, %69, %cst_28 [1] : vector<8x8xf32> to vector<8xf32>
    %71 = vector.shape_cast %70 : vector<8xf32> to vector<8x1xf32>
    %72 = vector.broadcast %71 : vector<8x1xf32> to vector<8x8xf32>
    %73 = arith.divf %69, %72 : vector<8x8xf32>
    %cst_29 = arith.constant dense<0.000000e+00> : vector<8x8xf32>
    %74 = tpu.matmul %73, %63, %cst_29 {dimension_numbers = #tpu.dot_dimension_numbers<[1], [0], [0], [1], [0, 0, 1, 1], [], []>} : vector<8x8xf32>, vector<8x8xf32>, vector<8x8xf32> -> vector<8x8xf32>
    %75 = tpu.concatenate %32, %46, %60, %74 in 1 : vector<8x8xf32>, vector<8x8xf32>, vector<8x8xf32>, vector<8x8xf32> -> vector<8x32xf32>
    %c0_30 = arith.constant 0 : index
    %c0_31 = arith.constant 0 : index
    %c0_32 = arith.constant 0 : index
    %76 = vector.load %arg6[%c0_30, %c0_31, %c0_32] : memref<2x32x32xf32, #tpu.memory_space<vmem>>, vector<1x32x32xf32>
    %77 = vector.shape_cast %76 : vector<1x32x32xf32> to vector<32x32xf32>
    %cst_33 = arith.constant dense<0.000000e+00> : vector<8x32xf32>
    %78 = tpu.matmul %75, %77, %cst_33 {dimension_numbers = #tpu.dot_dimension_numbers<[1], [0], [0], [1], [0, 0, 1, 1], [], []>} : vector<8x32xf32>, vector<32x32xf32>, vector<8x32xf32> -> vector<8x32xf32>
    %79 = arith.addf %6, %78 : vector<8x32xf32>
    %c0_34 = arith.constant 0 : index
    %c0_35 = arith.constant 0 : index
    %c0_36 = arith.constant 0 : index
    %80 = vector.load %arg7[%c0_34, %c0_35, %c0_36] : memref<2x1x32xf32, #tpu.memory_space<vmem>>, vector<1x1x32xf32>
    %81 = vector.shape_cast %80 : vector<1x1x32xf32> to vector<1x32xf32>
    %82 = vector.broadcast %81 : vector<1x32xf32> to vector<8x32xf32>
    %83 = arith.addf %79, %82 : vector<8x32xf32>
    %cst_37 = arith.constant dense<0.000000e+00> : vector<8xf32>
    %84 = vector.multi_reduction <add>, %83, %cst_37 [1] : vector<8x32xf32> to vector<8xf32>
    %85 = vector.shape_cast %84 : vector<8xf32> to vector<8x1xf32>
    %cst_38 = arith.constant 3.200000e+01 : f32
    %86 = vector.broadcast %cst_38 : f32 to vector<8x1xf32>
    %87 = arith.divf %85, %86 : vector<8x1xf32>
    %88 = vector.broadcast %87 : vector<8x1xf32> to vector<8x32xf32>
    %89 = arith.subf %83, %88 : vector<8x32xf32>
    %90 = arith.mulf %89, %89 : vector<8x32xf32>
    %cst_39 = arith.constant dense<0.000000e+00> : vector<8xf32>
    %91 = vector.multi_reduction <add>, %90, %cst_39 [1] : vector<8x32xf32> to vector<8xf32>
    %92 = vector.shape_cast %91 : vector<8xf32> to vector<8x1xf32>
    %cst_40 = arith.constant 3.200000e+01 : f32
    %93 = vector.broadcast %cst_40 : f32 to vector<8x1xf32>
    %94 = arith.divf %92, %93 : vector<8x1xf32>
    %cst_41 = arith.constant 9.99999974E-6 : f32
    %95 = vector.broadcast %cst_41 : f32 to vector<8x1xf32>
    %96 = arith.addf %94, %95 : vector<8x1xf32>
    %97 = math.rsqrt %96 : vector<8x1xf32>
    %98 = vector.broadcast %97 : vector<8x1xf32> to vector<8x32xf32>
    %99 = arith.mulf %89, %98 : vector<8x32xf32>
    %c0_42 = arith.constant 0 : index
    %c0_43 = arith.constant 0 : index
    %c0_44 = arith.constant 0 : index
    %100 = vector.load %arg8[%c0_42, %c0_43, %c0_44] : memref<2x1x32xf32, #tpu.memory_space<vmem>>, vector<1x1x32xf32>
    %101 = vector.shape_cast %100 : vector<1x1x32xf32> to vector<1x32xf32>
    %102 = vector.broadcast %101 : vector<1x32xf32> to vector<8x32xf32>
    %103 = arith.mulf %99, %102 : vector<8x32xf32>
    %c0_45 = arith.constant 0 : index
    %c0_46 = arith.constant 0 : index
    %c0_47 = arith.constant 0 : index
    %104 = vector.load %arg9[%c0_45, %c0_46, %c0_47] : memref<2x1x32xf32, #tpu.memory_space<vmem>>, vector<1x1x32xf32>
    %105 = vector.shape_cast %104 : vector<1x1x32xf32> to vector<1x32xf32>
    %106 = vector.broadcast %105 : vector<1x32xf32> to vector<8x32xf32>
    %107 = arith.addf %103, %106 : vector<8x32xf32>
    %c0_48 = arith.constant 0 : index
    %c0_49 = arith.constant 0 : index
    %c0_50 = arith.constant 0 : index
    %108 = vector.load %arg10[%c0_48, %c0_49, %c0_50] : memref<2x32x2048xf32, #tpu.memory_space<vmem>>, vector<1x32x2048xf32>
    %109 = vector.shape_cast %108 : vector<1x32x2048xf32> to vector<32x2048xf32>
    %cst_51 = arith.constant dense<0.000000e+00> : vector<8x2048xf32>
    %110 = tpu.matmul %107, %109, %cst_51 {dimension_numbers = #tpu.dot_dimension_numbers<[1], [0], [0], [1], [0, 0, 1, 1], [], []>} : vector<8x32xf32>, vector<32x2048xf32>, vector<8x2048xf32> -> vector<8x2048xf32>
    %c0_52 = arith.constant 0 : index
    %c0_53 = arith.constant 0 : index
    %c0_54 = arith.constant 0 : index
    %111 = vector.load %arg11[%c0_52, %c0_53, %c0_54] : memref<2x1x2048xf32, #tpu.memory_space<vmem>>, vector<1x1x2048xf32>
    %112 = vector.shape_cast %111 : vector<1x1x2048xf32> to vector<1x2048xf32>
    %113 = vector.broadcast %112 : vector<1x2048xf32> to vector<8x2048xf32>
    %114 = arith.addf %110, %113 : vector<8x2048xf32>
    %cst_55 = arith.constant 0.000000e+00 : f32
    %115 = vector.broadcast %cst_55 : f32 to vector<8x2048xf32>
    %116 = arith.maximumf %114, %115 : vector<8x2048xf32>
    %c0_56 = arith.constant 0 : index
    %c0_57 = arith.constant 0 : index
    %c0_58 = arith.constant 0 : index
    %117 = vector.load %arg12[%c0_56, %c0_57, %c0_58] : memref<2x2048x32xf32, #tpu.memory_space<vmem>>, vector<1x2048x32xf32>
    %118 = vector.shape_cast %117 : vector<1x2048x32xf32> to vector<2048x32xf32>
    %cst_59 = arith.constant dense<0.000000e+00> : vector<8x32xf32>
    %119 = tpu.matmul %116, %118, %cst_59 {dimension_numbers = #tpu.dot_dimension_numbers<[1], [0], [0], [1], [0, 0, 1, 1], [], []>} : vector<8x2048xf32>, vector<2048x32xf32>, vector<8x32xf32> -> vector<8x32xf32>
    %120 = arith.addf %107, %119 : vector<8x32xf32>
    %c0_60 = arith.constant 0 : index
    %c0_61 = arith.constant 0 : index
    %c0_62 = arith.constant 0 : index
    %121 = vector.load %arg13[%c0_60, %c0_61, %c0_62] : memref<2x1x32xf32, #tpu.memory_space<vmem>>, vector<1x1x32xf32>
    %122 = vector.shape_cast %121 : vector<1x1x32xf32> to vector<1x32xf32>
    %123 = vector.broadcast %122 : vector<1x32xf32> to vector<8x32xf32>
    %124 = arith.addf %120, %123 : vector<8x32xf32>
    %cst_63 = arith.constant dense<0.000000e+00> : vector<8xf32>
    %125 = vector.multi_reduction <add>, %124, %cst_63 [1] : vector<8x32xf32> to vector<8xf32>
    %126 = vector.shape_cast %125 : vector<8xf32> to vector<8x1xf32>
    %cst_64 = arith.constant 3.200000e+01 : f32
    %127 = vector.broadcast %cst_64 : f32 to vector<8x1xf32>
    %128 = arith.divf %126, %127 : vector<8x1xf32>
    %129 = vector.broadcast %128 : vector<8x1xf32> to vector<8x32xf32>
    %130 = arith.subf %124, %129 : vector<8x32xf32>
    %131 = arith.mulf %130, %130 : vector<8x32xf32>
    %cst_65 = arith.constant dense<0.000000e+00> : vector<8xf32>
    %132 = vector.multi_reduction <add>, %131, %cst_65 [1] : vector<8x32xf32> to vector<8xf32>
    %133 = vector.shape_cast %132 : vector<8xf32> to vector<8x1xf32>
    %cst_66 = arith.constant 3.200000e+01 : f32
    %134 = vector.broadcast %cst_66 : f32 to vector<8x1xf32>
    %135 = arith.divf %133, %134 : vector<8x1xf32>
    %cst_67 = arith.constant 9.99999974E-6 : f32
    %136 = vector.broadcast %cst_67 : f32 to vector<8x1xf32>
    %137 = arith.addf %135, %136 : vector<8x1xf32>
    %138 = math.rsqrt %137 : vector<8x1xf32>
    %139 = vector.broadcast %138 : vector<8x1xf32> to vector<8x32xf32>
    %140 = arith.mulf %130, %139 : vector<8x32xf32>
    %c0_68 = arith.constant 0 : index
    %c0_69 = arith.constant 0 : index
    %c0_70 = arith.constant 0 : index
    %141 = vector.load %arg14[%c0_68, %c0_69, %c0_70] : memref<2x1x32xf32, #tpu.memory_space<vmem>>, vector<1x1x32xf32>
    %142 = vector.shape_cast %141 : vector<1x1x32xf32> to vector<1x32xf32>
    %143 = vector.broadcast %142 : vector<1x32xf32> to vector<8x32xf32>
    %144 = arith.mulf %140, %143 : vector<8x32xf32>
    %c0_71 = arith.constant 0 : index
    %c0_72 = arith.constant 0 : index
    %c0_73 = arith.constant 0 : index
    %145 = vector.load %arg15[%c0_71, %c0_72, %c0_73] : memref<2x1x32xf32, #tpu.memory_space<vmem>>, vector<1x1x32xf32>
    %146 = vector.shape_cast %145 : vector<1x1x32xf32> to vector<1x32xf32>
    %147 = vector.broadcast %146 : vector<1x32xf32> to vector<8x32xf32>
    %148 = arith.addf %144, %147 : vector<8x32xf32>
    %c1 = arith.constant 1 : index
    %c0_74 = arith.constant 0 : index
    %c0_75 = arith.constant 0 : index
    %149 = vector.load %arg4[%c1, %c0_74, %c0_75] : memref<2x32x96xf32, #tpu.memory_space<vmem>>, vector<1x32x96xf32>
    %150 = vector.shape_cast %149 : vector<1x32x96xf32> to vector<32x96xf32>
    %cst_76 = arith.constant dense<0.000000e+00> : vector<8x96xf32>
    %151 = tpu.matmul %148, %150, %cst_76 {dimension_numbers = #tpu.dot_dimension_numbers<[1], [0], [0], [1], [0, 0, 1, 1], [], []>} : vector<8x32xf32>, vector<32x96xf32>, vector<8x96xf32> -> vector<8x96xf32>
    %c1_77 = arith.constant 1 : index
    %c0_78 = arith.constant 0 : index
    %c0_79 = arith.constant 0 : index
    %152 = vector.load %arg5[%c1_77, %c0_78, %c0_79] : memref<2x1x96xf32, #tpu.memory_space<vmem>>, vector<1x1x96xf32>
    %153 = vector.shape_cast %152 : vector<1x1x96xf32> to vector<1x96xf32>
    %154 = vector.broadcast %153 : vector<1x96xf32> to vector<8x96xf32>
    %155 = arith.addf %151, %154 : vector<8x96xf32>
    %156 = vector.extract_strided_slice %155 {offsets = [0, 0], sizes = [8, 32], strides = [1, 1]} : vector<8x96xf32> to vector<8x32xf32>
    %cst_80 = arith.constant 0.353553385 : f32
    %157 = vector.broadcast %cst_80 : f32 to vector<8x32xf32>
    %158 = arith.mulf %156, %157 : vector<8x32xf32>
    %159 = vector.extract_strided_slice %155 {offsets = [0, 32], sizes = [8, 32], strides = [1, 1]} : vector<8x96xf32> to vector<8x32xf32>
    %160 = vector.extract_strided_slice %155 {offsets = [0, 64], sizes = [8, 32], strides = [1, 1]} : vector<8x96xf32> to vector<8x32xf32>
    %161 = vector.extract_strided_slice %158 {offsets = [0, 0], sizes = [8, 8], strides = [1, 1]} : vector<8x32xf32> to vector<8x8xf32>
    %162 = vector.extract_strided_slice %159 {offsets = [0, 0], sizes = [8, 8], strides = [1, 1]} : vector<8x32xf32> to vector<8x8xf32>
    %163 = vector.extract_strided_slice %160 {offsets = [0, 0], sizes = [8, 8], strides = [1, 1]} : vector<8x32xf32> to vector<8x8xf32>
    %cst_81 = arith.constant dense<0.000000e+00> : vector<8x8xf32>
    %164 = tpu.matmul %161, %162, %cst_81 {dimension_numbers = #tpu.dot_dimension_numbers<[1], [1], [0], [0], [0, 0, 1, 0], [], []>} : vector<8x8xf32>, vector<8x8xf32>, vector<8x8xf32> -> vector<8x8xf32>
    %cst_82 = arith.constant dense<0xFF800000> : vector<8xf32>
    %165 = vector.multi_reduction <maximumf>, %164, %cst_82 [1] : vector<8x8xf32> to vector<8xf32>
    %166 = vector.shape_cast %165 : vector<8xf32> to vector<8x1xf32>
    %167 = vector.broadcast %166 : vector<8x1xf32> to vector<8x8xf32>
    %168 = arith.subf %164, %167 : vector<8x8xf32>
    %169 = math.exp %168 : vector<8x8xf32>
    %cst_83 = arith.constant dense<0.000000e+00> : vector<8xf32>
    %170 = vector.multi_reduction <add>, %169, %cst_83 [1] : vector<8x8xf32> to vector<8xf32>
    %171 = vector.shape_cast %170 : vector<8xf32> to vector<8x1xf32>
    %172 = vector.broadcast %171 : vector<8x1xf32> to vector<8x8xf32>
    %173 = arith.divf %169, %172 : vector<8x8xf32>
    %cst_84 = arith.constant dense<0.000000e+00> : vector<8x8xf32>
    %174 = tpu.matmul %173, %163, %cst_84 {dimension_numbers = #tpu.dot_dimension_numbers<[1], [0], [0], [1], [0, 0, 1, 1], [], []>} : vector<8x8xf32>, vector<8x8xf32>, vector<8x8xf32> -> vector<8x8xf32>
    %175 = vector.extract_strided_slice %158 {offsets = [0, 8], sizes = [8, 8], strides = [1, 1]} : vector<8x32xf32> to vector<8x8xf32>
    %176 = vector.extract_strided_slice %159 {offsets = [0, 8], sizes = [8, 8], strides = [1, 1]} : vector<8x32xf32> to vector<8x8xf32>
    %177 = vector.extract_strided_slice %160 {offsets = [0, 8], sizes = [8, 8], strides = [1, 1]} : vector<8x32xf32> to vector<8x8xf32>
    %cst_85 = arith.constant dense<0.000000e+00> : vector<8x8xf32>
    %178 = tpu.matmul %175, %176, %cst_85 {dimension_numbers = #tpu.dot_dimension_numbers<[1], [1], [0], [0], [0, 0, 1, 0], [], []>} : vector<8x8xf32>, vector<8x8xf32>, vector<8x8xf32> -> vector<8x8xf32>
    %cst_86 = arith.constant dense<0xFF800000> : vector<8xf32>
    %179 = vector.multi_reduction <maximumf>, %178, %cst_86 [1] : vector<8x8xf32> to vector<8xf32>
    %180 = vector.shape_cast %179 : vector<8xf32> to vector<8x1xf32>
    %181 = vector.broadcast %180 : vector<8x1xf32> to vector<8x8xf32>
    %182 = arith.subf %178, %181 : vector<8x8xf32>
    %183 = math.exp %182 : vector<8x8xf32>
    %cst_87 = arith.constant dense<0.000000e+00> : vector<8xf32>
    %184 = vector.multi_reduction <add>, %183, %cst_87 [1] : vector<8x8xf32> to vector<8xf32>
    %185 = vector.shape_cast %184 : vector<8xf32> to vector<8x1xf32>
    %186 = vector.broadcast %185 : vector<8x1xf32> to vector<8x8xf32>
    %187 = arith.divf %183, %186 : vector<8x8xf32>
    %cst_88 = arith.constant dense<0.000000e+00> : vector<8x8xf32>
    %188 = tpu.matmul %187, %177, %cst_88 {dimension_numbers = #tpu.dot_dimension_numbers<[1], [0], [0], [1], [0, 0, 1, 1], [], []>} : vector<8x8xf32>, vector<8x8xf32>, vector<8x8xf32> -> vector<8x8xf32>
    %189 = vector.extract_strided_slice %158 {offsets = [0, 16], sizes = [8, 8], strides = [1, 1]} : vector<8x32xf32> to vector<8x8xf32>
    %190 = vector.extract_strided_slice %159 {offsets = [0, 16], sizes = [8, 8], strides = [1, 1]} : vector<8x32xf32> to vector<8x8xf32>
    %191 = vector.extract_strided_slice %160 {offsets = [0, 16], sizes = [8, 8], strides = [1, 1]} : vector<8x32xf32> to vector<8x8xf32>
    %cst_89 = arith.constant dense<0.000000e+00> : vector<8x8xf32>
    %192 = tpu.matmul %189, %190, %cst_89 {dimension_numbers = #tpu.dot_dimension_numbers<[1], [1], [0], [0], [0, 0, 1, 0], [], []>} : vector<8x8xf32>, vector<8x8xf32>, vector<8x8xf32> -> vector<8x8xf32>
    %cst_90 = arith.constant dense<0xFF800000> : vector<8xf32>
    %193 = vector.multi_reduction <maximumf>, %192, %cst_90 [1] : vector<8x8xf32> to vector<8xf32>
    %194 = vector.shape_cast %193 : vector<8xf32> to vector<8x1xf32>
    %195 = vector.broadcast %194 : vector<8x1xf32> to vector<8x8xf32>
    %196 = arith.subf %192, %195 : vector<8x8xf32>
    %197 = math.exp %196 : vector<8x8xf32>
    %cst_91 = arith.constant dense<0.000000e+00> : vector<8xf32>
    %198 = vector.multi_reduction <add>, %197, %cst_91 [1] : vector<8x8xf32> to vector<8xf32>
    %199 = vector.shape_cast %198 : vector<8xf32> to vector<8x1xf32>
    %200 = vector.broadcast %199 : vector<8x1xf32> to vector<8x8xf32>
    %201 = arith.divf %197, %200 : vector<8x8xf32>
    %cst_92 = arith.constant dense<0.000000e+00> : vector<8x8xf32>
    %202 = tpu.matmul %201, %191, %cst_92 {dimension_numbers = #tpu.dot_dimension_numbers<[1], [0], [0], [1], [0, 0, 1, 1], [], []>} : vector<8x8xf32>, vector<8x8xf32>, vector<8x8xf32> -> vector<8x8xf32>
    %203 = vector.extract_strided_slice %158 {offsets = [0, 24], sizes = [8, 8], strides = [1, 1]} : vector<8x32xf32> to vector<8x8xf32>
    %204 = vector.extract_strided_slice %159 {offsets = [0, 24], sizes = [8, 8], strides = [1, 1]} : vector<8x32xf32> to vector<8x8xf32>
    %205 = vector.extract_strided_slice %160 {offsets = [0, 24], sizes = [8, 8], strides = [1, 1]} : vector<8x32xf32> to vector<8x8xf32>
    %cst_93 = arith.constant dense<0.000000e+00> : vector<8x8xf32>
    %206 = tpu.matmul %203, %204, %cst_93 {dimension_numbers = #tpu.dot_dimension_numbers<[1], [1], [0], [0], [0, 0, 1, 0], [], []>} : vector<8x8xf32>, vector<8x8xf32>, vector<8x8xf32> -> vector<8x8xf32>
    %cst_94 = arith.constant dense<0xFF800000> : vector<8xf32>
    %207 = vector.multi_reduction <maximumf>, %206, %cst_94 [1] : vector<8x8xf32> to vector<8xf32>
    %208 = vector.shape_cast %207 : vector<8xf32> to vector<8x1xf32>
    %209 = vector.broadcast %208 : vector<8x1xf32> to vector<8x8xf32>
    %210 = arith.subf %206, %209 : vector<8x8xf32>
    %211 = math.exp %210 : vector<8x8xf32>
    %cst_95 = arith.constant dense<0.000000e+00> : vector<8xf32>
    %212 = vector.multi_reduction <add>, %211, %cst_95 [1] : vector<8x8xf32> to vector<8xf32>
    %213 = vector.shape_cast %212 : vector<8xf32> to vector<8x1xf32>
    %214 = vector.broadcast %213 : vector<8x1xf32> to vector<8x8xf32>
    %215 = arith.divf %211, %214 : vector<8x8xf32>
    %cst_96 = arith.constant dense<0.000000e+00> : vector<8x8xf32>
    %216 = tpu.matmul %215, %205, %cst_96 {dimension_numbers = #tpu.dot_dimension_numbers<[1], [0], [0], [1], [0, 0, 1, 1], [], []>} : vector<8x8xf32>, vector<8x8xf32>, vector<8x8xf32> -> vector<8x8xf32>
    %217 = tpu.concatenate %174, %188, %202, %216 in 1 : vector<8x8xf32>, vector<8x8xf32>, vector<8x8xf32>, vector<8x8xf32> -> vector<8x32xf32>
    %c1_97 = arith.constant 1 : index
    %c0_98 = arith.constant 0 : index
    %c0_99 = arith.constant 0 : index
    %218 = vector.load %arg6[%c1_97, %c0_98, %c0_99] : memref<2x32x32xf32, #tpu.memory_space<vmem>>, vector<1x32x32xf32>
    %219 = vector.shape_cast %218 : vector<1x32x32xf32> to vector<32x32xf32>
    %cst_100 = arith.constant dense<0.000000e+00> : vector<8x32xf32>
    %220 = tpu.matmul %217, %219, %cst_100 {dimension_numbers = #tpu.dot_dimension_numbers<[1], [0], [0], [1], [0, 0, 1, 1], [], []>} : vector<8x32xf32>, vector<32x32xf32>, vector<8x32xf32> -> vector<8x32xf32>
    %221 = arith.addf %148, %220 : vector<8x32xf32>
    %c1_101 = arith.constant 1 : index
    %c0_102 = arith.constant 0 : index
    %c0_103 = arith.constant 0 : index
    %222 = vector.load %arg7[%c1_101, %c0_102, %c0_103] : memref<2x1x32xf32, #tpu.memory_space<vmem>>, vector<1x1x32xf32>
    %223 = vector.shape_cast %222 : vector<1x1x32xf32> to vector<1x32xf32>
    %224 = vector.broadcast %223 : vector<1x32xf32> to vector<8x32xf32>
    %225 = arith.addf %221, %224 : vector<8x32xf32>
    %cst_104 = arith.constant dense<0.000000e+00> : vector<8xf32>
    %226 = vector.multi_reduction <add>, %225, %cst_104 [1] : vector<8x32xf32> to vector<8xf32>
    %227 = vector.shape_cast %226 : vector<8xf32> to vector<8x1xf32>
    %cst_105 = arith.constant 3.200000e+01 : f32
    %228 = vector.broadcast %cst_105 : f32 to vector<8x1xf32>
    %229 = arith.divf %227, %228 : vector<8x1xf32>
    %230 = vector.broadcast %229 : vector<8x1xf32> to vector<8x32xf32>
    %231 = arith.subf %225, %230 : vector<8x32xf32>
    %232 = arith.mulf %231, %231 : vector<8x32xf32>
    %cst_106 = arith.constant dense<0.000000e+00> : vector<8xf32>
    %233 = vector.multi_reduction <add>, %232, %cst_106 [1] : vector<8x32xf32> to vector<8xf32>
    %234 = vector.shape_cast %233 : vector<8xf32> to vector<8x1xf32>
    %cst_107 = arith.constant 3.200000e+01 : f32
    %235 = vector.broadcast %cst_107 : f32 to vector<8x1xf32>
    %236 = arith.divf %234, %235 : vector<8x1xf32>
    %cst_108 = arith.constant 9.99999974E-6 : f32
    %237 = vector.broadcast %cst_108 : f32 to vector<8x1xf32>
    %238 = arith.addf %236, %237 : vector<8x1xf32>
    %239 = math.rsqrt %238 : vector<8x1xf32>
    %240 = vector.broadcast %239 : vector<8x1xf32> to vector<8x32xf32>
    %241 = arith.mulf %231, %240 : vector<8x32xf32>
    %c1_109 = arith.constant 1 : index
    %c0_110 = arith.constant 0 : index
    %c0_111 = arith.constant 0 : index
    %242 = vector.load %arg8[%c1_109, %c0_110, %c0_111] : memref<2x1x32xf32, #tpu.memory_space<vmem>>, vector<1x1x32xf32>
    %243 = vector.shape_cast %242 : vector<1x1x32xf32> to vector<1x32xf32>
    %244 = vector.broadcast %243 : vector<1x32xf32> to vector<8x32xf32>
    %245 = arith.mulf %241, %244 : vector<8x32xf32>
    %c1_112 = arith.constant 1 : index
    %c0_113 = arith.constant 0 : index
    %c0_114 = arith.constant 0 : index
    %246 = vector.load %arg9[%c1_112, %c0_113, %c0_114] : memref<2x1x32xf32, #tpu.memory_space<vmem>>, vector<1x1x32xf32>
    %247 = vector.shape_cast %246 : vector<1x1x32xf32> to vector<1x32xf32>
    %248 = vector.broadcast %247 : vector<1x32xf32> to vector<8x32xf32>
    %249 = arith.addf %245, %248 : vector<8x32xf32>
    %c1_115 = arith.constant 1 : index
    %c0_116 = arith.constant 0 : index
    %c0_117 = arith.constant 0 : index
    %250 = vector.load %arg10[%c1_115, %c0_116, %c0_117] : memref<2x32x2048xf32, #tpu.memory_space<vmem>>, vector<1x32x2048xf32>
    %251 = vector.shape_cast %250 : vector<1x32x2048xf32> to vector<32x2048xf32>
    %cst_118 = arith.constant dense<0.000000e+00> : vector<8x2048xf32>
    %252 = tpu.matmul %249, %251, %cst_118 {dimension_numbers = #tpu.dot_dimension_numbers<[1], [0], [0], [1], [0, 0, 1, 1], [], []>} : vector<8x32xf32>, vector<32x2048xf32>, vector<8x2048xf32> -> vector<8x2048xf32>
    %c1_119 = arith.constant 1 : index
    %c0_120 = arith.constant 0 : index
    %c0_121 = arith.constant 0 : index
    %253 = vector.load %arg11[%c1_119, %c0_120, %c0_121] : memref<2x1x2048xf32, #tpu.memory_space<vmem>>, vector<1x1x2048xf32>
    %254 = vector.shape_cast %253 : vector<1x1x2048xf32> to vector<1x2048xf32>
    %255 = vector.broadcast %254 : vector<1x2048xf32> to vector<8x2048xf32>
    %256 = arith.addf %252, %255 : vector<8x2048xf32>
    %cst_122 = arith.constant 0.000000e+00 : f32
    %257 = vector.broadcast %cst_122 : f32 to vector<8x2048xf32>
    %258 = arith.maximumf %256, %257 : vector<8x2048xf32>
    %c1_123 = arith.constant 1 : index
    %c0_124 = arith.constant 0 : index
    %c0_125 = arith.constant 0 : index
    %259 = vector.load %arg12[%c1_123, %c0_124, %c0_125] : memref<2x2048x32xf32, #tpu.memory_space<vmem>>, vector<1x2048x32xf32>
    %260 = vector.shape_cast %259 : vector<1x2048x32xf32> to vector<2048x32xf32>
    %cst_126 = arith.constant dense<0.000000e+00> : vector<8x32xf32>
    %261 = tpu.matmul %258, %260, %cst_126 {dimension_numbers = #tpu.dot_dimension_numbers<[1], [0], [0], [1], [0, 0, 1, 1], [], []>} : vector<8x2048xf32>, vector<2048x32xf32>, vector<8x32xf32> -> vector<8x32xf32>
    %262 = arith.addf %249, %261 : vector<8x32xf32>
    %c1_127 = arith.constant 1 : index
    %c0_128 = arith.constant 0 : index
    %c0_129 = arith.constant 0 : index
    %263 = vector.load %arg13[%c1_127, %c0_128, %c0_129] : memref<2x1x32xf32, #tpu.memory_space<vmem>>, vector<1x1x32xf32>
    %264 = vector.shape_cast %263 : vector<1x1x32xf32> to vector<1x32xf32>
    %265 = vector.broadcast %264 : vector<1x32xf32> to vector<8x32xf32>
    %266 = arith.addf %262, %265 : vector<8x32xf32>
    %cst_130 = arith.constant dense<0.000000e+00> : vector<8xf32>
    %267 = vector.multi_reduction <add>, %266, %cst_130 [1] : vector<8x32xf32> to vector<8xf32>
    %268 = vector.shape_cast %267 : vector<8xf32> to vector<8x1xf32>
    %cst_131 = arith.constant 3.200000e+01 : f32
    %269 = vector.broadcast %cst_131 : f32 to vector<8x1xf32>
    %270 = arith.divf %268, %269 : vector<8x1xf32>
    %271 = vector.broadcast %270 : vector<8x1xf32> to vector<8x32xf32>
    %272 = arith.subf %266, %271 : vector<8x32xf32>
    %273 = arith.mulf %272, %272 : vector<8x32xf32>
    %cst_132 = arith.constant dense<0.000000e+00> : vector<8xf32>
    %274 = vector.multi_reduction <add>, %273, %cst_132 [1] : vector<8x32xf32> to vector<8xf32>
    %275 = vector.shape_cast %274 : vector<8xf32> to vector<8x1xf32>
    %cst_133 = arith.constant 3.200000e+01 : f32
    %276 = vector.broadcast %cst_133 : f32 to vector<8x1xf32>
    %277 = arith.divf %275, %276 : vector<8x1xf32>
    %cst_134 = arith.constant 9.99999974E-6 : f32
    %278 = vector.broadcast %cst_134 : f32 to vector<8x1xf32>
    %279 = arith.addf %277, %278 : vector<8x1xf32>
    %280 = math.rsqrt %279 : vector<8x1xf32>
    %281 = vector.broadcast %280 : vector<8x1xf32> to vector<8x32xf32>
    %282 = arith.mulf %272, %281 : vector<8x32xf32>
    %c1_135 = arith.constant 1 : index
    %c0_136 = arith.constant 0 : index
    %c0_137 = arith.constant 0 : index
    %283 = vector.load %arg14[%c1_135, %c0_136, %c0_137] : memref<2x1x32xf32, #tpu.memory_space<vmem>>, vector<1x1x32xf32>
    %284 = vector.shape_cast %283 : vector<1x1x32xf32> to vector<1x32xf32>
    %285 = vector.broadcast %284 : vector<1x32xf32> to vector<8x32xf32>
    %286 = arith.mulf %282, %285 : vector<8x32xf32>
    %c1_138 = arith.constant 1 : index
    %c0_139 = arith.constant 0 : index
    %c0_140 = arith.constant 0 : index
    %287 = vector.load %arg15[%c1_138, %c0_139, %c0_140] : memref<2x1x32xf32, #tpu.memory_space<vmem>>, vector<1x1x32xf32>
    %288 = vector.shape_cast %287 : vector<1x1x32xf32> to vector<1x32xf32>
    %289 = vector.broadcast %288 : vector<1x32xf32> to vector<8x32xf32>
    %290 = arith.addf %286, %289 : vector<8x32xf32>
    %291 = vector.extract_strided_slice %290 {offsets = [7, 0], sizes = [1, 32], strides = [1, 1]} : vector<8x32xf32> to vector<1x32xf32>
    %c0_141 = arith.constant 0 : index
    %c0_142 = arith.constant 0 : index
    %c0_143 = arith.constant 0 : index
    %292 = vector.load %arg16[%c0_141, %c0_142, %c0_143] : memref<1x1x32xf32, #tpu.memory_space<vmem>>, vector<1x1x32xf32>
    %293 = vector.shape_cast %292 : vector<1x1x32xf32> to vector<1x32xf32>
    %294 = vector.shape_cast %291 : vector<1x32xf32> to vector<1x1x32xf32>
    tpu.vector_store %arg16[%c0_141, %c0_142, %c0_143], %294 {strides = array<i32>} : memref<1x1x32xf32, #tpu.memory_space<vmem>>, vector<1x1x32xf32>,
    return
  }
  func.func @transform_0(%arg0: i32) -> (i32, i32, i32) {
    %c0_i32 = arith.constant 0 : i32
    %c0_i32_0 = arith.constant 0 : i32
    %c0_i32_1 = arith.constant 0 : i32
    return %arg0, %c0_i32, %c0_i32_0 : i32, i32, i32
  }
  func.func @transform_1(%arg0: i32) -> (i32, i32) {
    %c0_i32 = arith.constant 0 : i32
    %c0_i32_0 = arith.constant 0 : i32
    %c0_i32_1 = arith.constant 0 : i32
    return %c0_i32, %c0_i32_0 : i32, i32
  }
  func.func @transform_2(%arg0: i32) -> (i32, i32) {
    %c0_i32 = arith.constant 0 : i32
    %c0_i32_0 = arith.constant 0 : i32
    %c0_i32_1 = arith.constant 0 : i32
    return %c0_i32, %c0_i32_0 : i32, i32
  }
  func.func @transform_3(%arg0: i32) -> (i32, i32, i32) {
    %c0_i32 = arith.constant 0 : i32
    %c0_i32_0 = arith.constant 0 : i32
    %c0_i32_1 = arith.constant 0 : i32
    %c0_i32_2 = arith.constant 0 : i32
    return %c0_i32, %c0_i32_0, %c0_i32_1 : i32, i32, i32
  }
  func.func @transform_4(%arg0: i32) -> (i32, i32, i32) {
    %c0_i32 = arith.constant 0 : i32
    %c0_i32_0 = arith.constant 0 : i32
    %c0_i32_1 = arith.constant 0 : i32
    %c0_i32_2 = arith.constant 0 : i32
    return %c0_i32, %c0_i32_0, %c0_i32_1 : i32, i32, i32
  }
  func.func @transform_5(%arg0: i32) -> (i32, i32, i32) {
    %c0_i32 = arith.constant 0 : i32
    %c0_i32_0 = arith.constant 0 : i32
    %c0_i32_1 = arith.constant 0 : i32
    %c0_i32_2 = arith.constant 0 : i32
    return %c0_i32, %c0_i32_0, %c0_i32_1 : i32, i32, i32
  }
  func.func @transform_6(%arg0: i32) -> (i32, i32, i32) {
    %c0_i32 = arith.constant 0 : i32
    %c0_i32_0 = arith.constant 0 : i32
    %c0_i32_1 = arith.constant 0 : i32
    %c0_i32_2 = arith.constant 0 : i32
    return %c0_i32, %c0_i32_0, %c0_i32_1 : i32, i32, i32
  }
  func.func @transform_7(%arg0: i32) -> (i32, i32, i32) {
    %c0_i32 = arith.constant 0 : i32
    %c0_i32_0 = arith.constant 0 : i32
    %c0_i32_1 = arith.constant 0 : i32
    %c0_i32_2 = arith.constant 0 : i32
    return %c0_i32, %c0_i32_0, %c0_i32_1 : i32, i32, i32
  }
  func.func @transform_8(%arg0: i32) -> (i32, i32, i32) {
    %c0_i32 = arith.constant 0 : i32
    %c0_i32_0 = arith.constant 0 : i32
    %c0_i32_1 = arith.constant 0 : i32
    %c0_i32_2 = arith.constant 0 : i32
    return %c0_i32, %c0_i32_0, %c0_i32_1 : i32, i32, i32
  }
  func.func @transform_9(%arg0: i32) -> (i32, i32, i32) {
    %c0_i32 = arith.constant 0 : i32
    %c0_i32_0 = arith.constant 0 : i32
    %c0_i32_1 = arith.constant 0 : i32
    %c0_i32_2 = arith.constant 0 : i32
    return %c0_i32, %c0_i32_0, %c0_i32_1 : i32, i32, i32
  }
  func.func @transform_10(%arg0: i32) -> (i32, i32, i32) {
    %c0_i32 = arith.constant 0 : i32
    %c0_i32_0 = arith.constant 0 : i32
    %c0_i32_1 = arith.constant 0 : i32
    %c0_i32_2 = arith.constant 0 : i32
    return %c0_i32, %c0_i32_0, %c0_i32_1 : i32, i32, i32
  }
  func.func @transform_11(%arg0: i32) -> (i32, i32, i32) {
    %c0_i32 = arith.constant 0 : i32
    %c0_i32_0 = arith.constant 0 : i32
    %c0_i32_1 = arith.constant 0 : i32
    %c0_i32_2 = arith.constant 0 : i32
    return %c0_i32, %c0_i32_0, %c0_i32_1 : i32, i32, i32
  }
  func.func @transform_12(%arg0: i32) -> (i32, i32, i32) {
    %c0_i32 = arith.constant 0 : i32
    %c0_i32_0 = arith.constant 0 : i32
    %c0_i32_1 = arith.constant 0 : i32
    %c0_i32_2 = arith.constant 0 : i32
    return %c0_i32, %c0_i32_0, %c0_i32_1 : i32, i32, i32
  }
  func.func @transform_13(%arg0: i32) -> (i32, i32, i32) {
    %c0_i32 = arith.constant 0 : i32
    %c0_i32_0 = arith.constant 0 : i32
    %c0_i32_1 = arith.constant 0 : i32
    %c0_i32_2 = arith.constant 0 : i32
    return %c0_i32, %c0_i32_0, %c0_i32_1 : i32, i32, i32
  }
  func.func @transform_14(%arg0: i32) -> (i32, i32, i32) {
    %c0_i32 = arith.constant 0 : i32
    %c0_i32_0 = arith.constant 0 : i32
    %c0_i32_1 = arith.constant 0 : i32
    %c0_i32_2 = arith.constant 0 : i32
    return %c0_i32, %c0_i32_0, %c0_i32_1 : i32, i32, i32
  }
  func.func @transform_15(%arg0: i32) -> (i32, i32, i32) {
    %c0_i32 = arith.constant 0 : i32
    %c0_i32_0 = arith.constant 0 : i32
    %c0_i32_1 = arith.constant 0 : i32
    return %arg0, %c0_i32, %c0_i32_0 : i32, i32, i32
  }
}

</mosaic_0001>

<bundles_post_ra>
// kernel: time_series_transformer_forward.1
= control target key start
LH: loop header
LB: loop body
LE: loop exit
PB: predicated region body
PF: predicated region fallthrough
CT: control target
= control target key end

     0   :  { %s6884_s18 = smov 0   ;;  %s9317_s0 = inlined_call_operand.vmem [shape: f32[2,8,16], index: 0, kind: input, shape index: {}]   ;;  %s9318_s1 = inlined_call_operand.vmem [shape: f32[16,32], index: 1, kind: input, shape index: {}]   ;;  %s9319_s2 = inlined_call_operand.vmem [shape: f32[1,32], index: 2, kind: input, shape index: {}]   ;;  %s9320_s3 = inlined_call_operand.vmem [shape: f32[2,32,96], index: 3, kind: input, shape index: {}]   ;;  %s9321_s4 = inlined_call_operand.vmem [shape: f32[2,1,96], index: 4, kind: input, shape index: {}]   ;;  %s9322_s5 = inlined_call_operand.vmem [shape: f32[2,32,32], index: 5, kind: input, shape index: {}]   ;;  %s9323_s6 = inlined_call_operand.vmem [shape: f32[2,1,32], index: 6, kind: input, shape index: {}]   ;;  %s9324_s7 = inlined_call_operand.vmem [shape: f32[2,1,32], index: 7, kind: input, shape index: {}]   ;;  %s9325_s8 = inlined_call_operand.vmem [shape: f32[2,1,32], index: 8, kind: input, shape index: {}]   ;;  %s9326_s9 = inlined_call_operand.vmem [shape: f32[2,32,2048], index: 9, kind: input, shape index: {}]   ;;  %s9327_s10 = inlined_call_operand.vmem [shape: f32[2,1,2048], index: 10, kind: input, shape index: {}]   ;;  %s9328_s11 = inlined_call_operand.vmem [shape: f32[2,2048,32], index: 11, kind: input, shape index: {}]   ;;  %s9329_s12 = inlined_call_operand.vmem [shape: f32[2,1,32], index: 12, kind: input, shape index: {}]   ;;  %s9330_s13 = inlined_call_operand.vmem [shape: f32[2,1,32], index: 13, kind: input, shape index: {}]   ;;  %s9331_s14 = inlined_call_operand.vmem [shape: f32[2,1,32], index: 14, kind: input, shape index: {}]   ;;  %s9332_s15 = inlined_call_operand.vmem [shape: f32[2,1,32], index: 15, kind: output, shape index: {}]  }
   0x1 LB: > { %s5565_s19 = sadd.s32 4294967295, %s6786_s18   ;;  %p5569_p0 = scmp.ge.s32.totalorder %s6786_s18, 1  ;;  %s6786_s18 = sphi %s6884_s18, %s25_s18  }
   0x2   : > { %p436_p1 = scmp.lt.s32.totalorder %s6786_s18, 3 }
   0x4   : > { %p437_p2 = pnand %p5569_p0, %p436_p1 }
   0x5   : > { %p481_p3 = scmp.lt.s32.totalorder (!%p437_p2), %s5565_s19, 1  ;;  %s6790_s27 = smov (!%p437_p2), 96  }
   0x6   : > { %440 = sbr.rel (%p437_p2) target bundleno = 5220 (0x1464), region = 80  ;;  %s6792_s29 = smov (!%p437_p2), 88  }
   0x7   : > { %s9341_s30 = smov (!%p437_p2), 80   ;;  %s9337_s17 = smov (!%p437_p2), 72  }
   0x8   : > { %s9342_s20 = smov (!%p437_p2), 104   ;;  %s9336_s21 = smov (!%p437_p2), 56  }
   0x9   : > { %s9335_s22 = smov (!%p437_p2), 64   ;;  %s9334_s23 = smov (!%p437_p2), 48  }
   0xa   : > { %s9333_s24 = smov (!%p437_p2), 40   ;;  %s9352_s25 = smov (!%p437_p2), 8  }
   0xb   : > { %v490_v0 = vld [vmem:[%s9318_s1 + $0x8] sm:$0xff]  ;;  %v6788_v1 = vmov 0.0   ;;  %v489_v2 = vld [vmem:[%s9318_s1] sm:$0xff]  ;;  %vm6789_vm0 = vmmov 0   ;;  %v575_v3 = vld [vmem:[%s9320_s3 + $0x18] sm:$0xff]  ;;  %s9356_s19 = smov (!%p481_p3, %s5565_s19), 1 }
   0xc   : > { %6585 = vmatprep.subr.mxu0 %v6788_v1  ;;  %6589 = vmatprep.mubr.msk.f32.mxu0 %vm6789_vm0, %v6788_v1  ;;  %v574_v4 = vld [vmem:[%s9320_s3 + $0x10] sm:$0xff]  ;;  %s5570_s28 = sshll.u32 %s9356_s19, 3  ;;  %vm498_vm1 = vcmask 130048   ;;  %v573_v6 = vld [vmem:[%s9320_s3 + $0x8] sm:$0xff]  ;;  %v572_v7 = vld [vmem:[%s9320_s3] sm:$0xff]  ;;  %vm583_vm2 = vcmask 261120  }
   0xd   : > { %6586 = vmatpush3.msra.mxu0 %v490_v0  ;;  %6592 = vmatprep.subr.mxu1 %v6788_v1  ;;  %s484_s16 = scalar_lea.vmem %s9317_s0, %s5570_s28  ;;  %v5571_v8 = vld [vmem:[%s9319_s2] ss:$0 sm:$0xff]  ;;  %s9343_s28 = smov 120   ;;  %vm661_vm3 = vcmask 64512   ;;  %vm1333_vm4 = vcmask 195584   ;;  %vm5516_vm5 = vcmask 261127  }
   0xe   : > { %6587 = vmatprep.subr.mxu0 %v6788_v1  ;;  %6593 = vmatpush3.msra.mxu1 %v575_v3  ;;  %v488_v5 = vld [vmem:[%s484_s16] sm:$0xff]  ;;  %s6794_s16 = smov 112  }
   0xf   : > { %6588 = vmatpush3.msra.mxu0 %v489_v2  ;;  %6594 = vmatprep.subr.mxu1 %v6788_v1  ;;  %v5573_v12 = vld [vmem:[%s9321_s4] ss:$0 sm:$0xff] }
  0x10   : > { %6595 = vmatpush3.msra.mxu1 %v574_v4  ;;  %6600 = vmatprep.mubr.msk.f32.mxu1 %vm6789_vm0, %v6788_v1 }
  0x11   : > { %6596 = vmatprep.subr.mxu1 %v6788_v1  ;;  %6603 = vmatprep.subr.mxu0 %v6788_v1 }
  0x12   : > { %6590 = vmatmul.mubr.msk.f32.vlgmr.msra.gmra.mxu0 %vm498_vm1, %v488_v5  ;;  %6597 = vmatpush3.msra.mxu1 %v573_v6 }
  0x13   : > { %6605 = vmatprep.mubr.msk.f32.mxu0 %vm6789_vm0, %v6788_v1  ;;  %6598 = vmatprep.subr.mxu1 %v6788_v1 }
  0x14   : > { %6599 = vmatpush3.msra.mxu1 %v572_v7 }
  0x15   : > { %6613 = vmatprep.subr.mxu1 %v6788_v1 }
  0xd2   : > { %v568_v9 = vpop.f32.mrf.mxu0 }
  0xd3   : > { %v6934_v10 = vadd.f32 %v5571_v8, %v568_v9  ;;  %v1338_v9 = vld [vmem:[%s9322_s5 + $0x18] sm:$0xff] }
  0xd4   : > { %v6591_v11 = vpop.f32.mrf.mxu0 }
  0xd5   : > { %6601 = vmatmul.mubr.msk.f32.vlgmr.msra.gmra.mxu1 %vm583_vm2, %v6934_v10 }
  0xd6   : > { %6615 = vmatprep.mubr.msk.f32.mxu1 %vm6789_vm0, %v6788_v1 }
 0x195   : > { %v653_v13 = vpop.f32.mrf.mxu1 }
 0x196   : > { %v6943_v14 = vadd.f32 %v5573_v12, %v653_v13 }
 0x197   : > { %v6602_v15 = vpop.f32.mrf.mxu1 }
 0x198   : > { %659 = vrot.lane.b32.xlu0 %v6943_v14, %s6790_s27  ;;  %v657_v16 = vmul.f32 0.35355338, %v6943_v14  ;;  %v1337_v15 = vld [vmem:[%s9322_s5 + $0x10] sm:$0xff] }
 0x19a   : > { %824 = vrot.lane.b32.xlu1 %v657_v16, %s9343_s28  ;;  %s9351_s28 = smov 40  }
 0x19c   : > { %826 = vrot.lane.b32.xlu0 %v6943_v14, %s6792_s29 }
 0x19e   : > { %991 = vrot.lane.b32.xlu1 %v6943_v14, %s9341_s30  ;;  %s9346_s30 = smov 80  }
 0x1a0   : > { %989 = vrot.lane.b32.xlu0 %v657_v16, %s6794_s16 }
 0x1a2   : > { %1156 = vrot.lane.b32.xlu1 %v6943_v14, %s9337_s17 }
 0x1a4   : > { %1154 = vrot.lane.b32.xlu0 %v657_v16, %s9342_s20 }
 0x20a   : > { %v660_v17 = vpop.permute.xlu0 %659 }
 0x20b   : > { %6604 = vmatpush3.xpose.msk.msra.mxu0 %vm661_vm3, %v660_v17  ;;  %v1335_v17 = vld [vmem:[%s9322_s5] sm:$0xff] }
 0x20c   : > { %v825_v18 = vpop.permute.xlu1 %824  ;;  %6608 = vmatprep.subr.mxu0 %v6788_v1 }
 0x20e   : > { %v827_v19 = vpop.permute.xlu0 %826  ;;  %6606 = vmatmul.mubr.msk.f32.vlgmr.msra.gmra.mxu0 %vm661_vm3, %v657_v16  ;;  %v1336_v16 = vld [vmem:[%s9322_s5 + $0x8] sm:$0xff] }
 0x20f   : > { %6614 = vmatpush3.xpose.msk.msra.mxu1 %vm661_vm3, %v827_v19  ;;  %6610 = vmatprep.mubr.msk.f32.mxu0 %vm6789_vm0, %v6788_v1 }
 0x210   : > { %v992_v20 = vpop.permute.xlu1 %991  ;;  %6623 = vmatprep.subr.mxu1 %v6788_v1 }
 0x212   : > { %6616 = vmatmul.mubr.msk.f32.vlgmr.msra.gmra.mxu1 %vm661_vm3, %v825_v18  ;;  %v990_v21 = vpop.permute.xlu0 %989 }
 0x213   : > { %6624 = vmatpush3.xpose.msk.msra.mxu1 %vm661_vm3, %v992_v20  ;;  %6625 = vmatprep.mubr.msk.f32.mxu1 %vm6789_vm0, %v6788_v1 }
 0x214   : > { %6633 = vmatprep.subr.mxu1 %v6788_v1  ;;  %v1157_v22 = vpop.permute.xlu1 %1156 }
 0x216   : > { %6626 = vmatmul.mubr.msk.f32.vlgmr.msra.gmra.mxu1 %vm661_vm3, %v990_v21  ;;  %v1155_v23 = vpop.permute.xlu0 %1154 }
 0x217   : > { %6634 = vmatpush3.xpose.msk.msra.mxu1 %vm661_vm3, %v1157_v22  ;;  %6635 = vmatprep.mubr.msk.f32.mxu1 %vm6789_vm0, %v6788_v1 }
 0x218   : > { %6643 = vmatprep.subr.mxu1 %v6788_v1 }
 0x21a   : > { %6636 = vmatmul.mubr.msk.f32.vlgmr.msra.gmra.mxu1 %vm661_vm3, %v1155_v23 }
 0x21b   : > { %6651 = vmatprep.mubr.msk.f32.mxu1 %vm6789_vm0, %v6788_v1  ;;  %6644 = vmatpush3.msra.mxu1 %v1338_v9  ;;  %v1474_v9 = vld [vmem:[%s9326_s9 + $0xb8] sm:$0xff] }
 0x21c   : > { %6645 = vmatprep.subr.mxu1 %v6788_v1 }
 0x21d   : > { %6646 = vmatpush3.msra.mxu1 %v1337_v15  ;;  %v1455_v15 = vld [vmem:[%s9326_s9 + $0x20] sm:$0xff] }
 0x21e   : > { %6647 = vmatprep.subr.mxu1 %v6788_v1 }
 0x21f   : > { %6648 = vmatpush3.msra.mxu1 %v1336_v16  ;;  %v1457_v16 = vld [vmem:[%s9326_s9 + $0x30] sm:$0xff] }
 0x220   : > { %6649 = vmatprep.subr.mxu1 %v6788_v1 }
 0x221   : > { %6650 = vmatpush3.msra.mxu1 %v1335_v17  ;;  %v1508_v17 = vld [vmem:[%s9326_s9 + $0x1c8] sm:$0xff] }
 0x2ce   : > { %v733_v24 = vpop.f32.mrf.mxu0 }
 0x2cf   : > { %v737_v25 = vsel %vm661_vm3, %v733_v24, -inf }
 0x2d0   : > { %738 = vmax.xlane.f32.xlu1 %v737_v25  ;;  %v6607_v26 = vpop.f32.mrf.mxu0 }
 0x2d2   : > { %v898_v27 = vpop.f32.mrf.mxu1 }
 0x2d3   : > { %v902_v28 = vsel %vm661_vm3, %v898_v27, -inf }
 0x2d4   : > { %903 = vmax.xlane.f32.xlu0 %v902_v28  ;;  %v6617_v29 = vpop.f32.mrf.mxu1 }
 0x2d5   : > { %v5588_v29 = vld [vmem:[%s9323_s6] ss:$0 sm:$0xff] }
 0x2d6   : > { %v1063_v30 = vpop.f32.mrf.mxu1 }
 0x2d7   : > { %v1067_v31 = vsel %vm661_vm3, %v1063_v30, -inf }
 0x2d8   : > { %1068 = vmax.xlane.f32.xlu0 %v1067_v31  ;;  %v6627_v32 = vpop.f32.mrf.mxu1 }
 0x2da   : > { %v1228_v33 = vpop.f32.mrf.mxu1 }
 0x2db   : > { %v1232_v34 = vsel %vm661_vm3, %v1228_v33, -inf }
 0x2dc   : > { %v6637_v35 = vpop.f32.mrf.mxu1  ;;  %1233 = vmax.xlane.f32.xlu1 %v1232_v34 }
 0x2ed   : > { %913 = vrot.lane.b32.xlu1 %v6943_v14, %s9336_s21  ;;  %s9345_s21 = smov 104  }
 0x359   : > { %v739_v36 = vpop.xlane.xlu1 %738 }
 0x35a   : > { %v740_v37 = vsub.f32 %v733_v24, %v739_v36 }
 0x35c   : > { %v741_v38 = vmul.f32 1.442695, %v740_v37 }
 0x35d   : > { %v904_v39 = vpop.xlane.xlu0 %903 }
 0x35e   : > { %6740 = vpow2.f32 %v741_v38  ;;  %v905_v40 = vsub.f32 %v898_v27, %v904_v39  ;;  %v1500_v39 = vld [vmem:[%s9326_s9 + $0x188] sm:$0xff] }
 0x360   : > { %v906_v41 = vmul.f32 1.442695, %v905_v40  ;;  %v1499_v40 = vld [vmem:[%s9326_s9 + $0x180] sm:$0xff] }
 0x361   : > { %v1069_v51 = vpop.xlane.xlu0 %1068 }
 0x362   : > { %6742 = vpow2.f32 %v906_v41  ;;  %v1070_v52 = vsub.f32 %v1063_v30, %v1069_v51  ;;  %v1501_v41 = vld [vmem:[%s9326_s9 + $0x190] sm:$0xff]  ;;  %v1454_v51 = vld [vmem:[%s9326_s9 + $0x18] sm:$0xff] }
 0x364   : > { %v1071_v53 = vmul.f32 1.442695, %v1070_v52  ;;  %v1451_v52 = vld [vmem:[%s9326_s9] sm:$0xff] }
 0x365   : > { %v1234_v42 = vpop.xlane.xlu1 %1233 }
 0x366   : > { %v1235_v43 = vsub.f32 %v1228_v33, %v1234_v42  ;;  %v1484_v42 = vld [vmem:[%s9326_s9 + $0x108] sm:$0xff] }
 0x368   : > { %v1236_v44 = vmul.f32 1.442695, %v1235_v43  ;;  %v1486_v43 = vld [vmem:[%s9326_s9 + $0x118] sm:$0xff] }
 0x369   : > { %v914_v56 = vpop.permute.xlu1 %913 }
 0x36a   : > { %6744 = vpow2.f32 %v1236_v44  ;;  %v1483_v44 = vld [vmem:[%s9326_s9 + $0x100] sm:$0xff] }
 0x36b   : > { %v6741_v45 = vpop.eup %6740  ;;  %6746 = vpow2.f32 %v1071_v53  ;;  %v1453_v53 = vld [vmem:[%s9326_s9 + $0x10] sm:$0xff] }
 0x36c   : > { %v743_v46 = vsel %vm661_vm3, %v6741_v45, 0.0 }
 0x36d   : > { %744 = vadd.xlane.f32.xlu0 %v743_v46  ;;  %v1468_v46 = vld [vmem:[%s9326_s9 + $0x88] sm:$0xff] }
 0x36f   : > { %v6743_v47 = vpop.eup %6742 }
 0x370   : > { %v908_v48 = vsel %vm661_vm3, %v6743_v47, 0.0 }
 0x371   : > { %909 = vadd.xlane.f32.xlu1 %v908_v48  ;;  %v1467_v48 = vld [vmem:[%s9326_s9 + $0x80] sm:$0xff] }
 0x377   : > { %v6745_v49 = vpop.eup %6744 }
 0x378   : > { %v1238_v50 = vsel %vm661_vm3, %v6745_v49, 0.0  ;;  %v6747_v54 = vpop.eup %6746 }
 0x379   : > { %1239 = vadd.xlane.f32.xlu1 %v1238_v50  ;;  %v1073_v55 = vsel %vm661_vm3, %v6747_v54, 0.0  ;;  %v1452_v50 = vld [vmem:[%s9326_s9 + $0x8] sm:$0xff] }
 0x383   : > { %748 = vrot.lane.b32.xlu0 %v6943_v14, %s9335_s22  ;;  %s9339_s22 = smov 24  }
 0x38a   : > { %1078 = vrot.lane.b32.xlu1 %v6943_v14, %s9334_s23 }
 0x3a2   : > { %1074 = vadd.xlane.f32.xlu0 %v1073_v55  ;;  %v1506_v55 = vld [vmem:[%s9326_s9 + $0x1b8] sm:$0xff] }
 0x3b8   : > { %1243 = vrot.lane.b32.xlu0 %v6943_v14, %s9333_s24  ;;  %s9338_s24 = smov 8  }
 0x3f6   : > { %v745_v57 = vpop.xlane.xlu0 %744 }
 0x3f7   : > { %6748 = vrcp.f32 %v745_v57 }
 0x3fa   : > { %v749_v58 = vpop.permute.xlu0 %748  ;;  %v910_v59 = vpop.xlane.xlu1 %909 }
 0x3fb   : > { %6750 = vrcp.f32 %v910_v59  ;;  %6609 = vmatpush3.msra.mxu0 %v749_v58 }
 0x3fc   : > { %6618 = vmatprep.subr.mxu0 %v6788_v1 }
 0x402   : > { %v1240_v61 = vpop.xlane.xlu1 %1239 }
 0x404   : > { %v6749_v60 = vpop.eup %6748 }
 0x405   : > { %v747_v62 = vmul.f32 %v6749_v60, %v6741_v45  ;;  %v1485_v45 = vld [vmem:[%s9326_s9 + $0x110] sm:$0xff]  ;;  %v5589_v60 = vld [vmem:[%s9324_s7] ss:$0 sm:$0xff] }
 0x406   : > { %v1079_v2 = vpop.permute.xlu1 %1078 }
 0x407   : > { %6611 = vmatmul.mubr.msk.f32.vlgmr.msra.gmra.mxu0 %vm661_vm3, %v747_v62  ;;  %v5590_v62 = vld [vmem:[%s9325_s8] ss:$0 sm:$0xff] }
 0x408   : > { %v6751_v63 = vpop.eup %6750  ;;  %6619 = vmatpush3.msra.mxu0 %v914_v56  ;;  %6620 = vmatprep.mubr.msk.f32.mxu0 %vm6789_vm0, %v6788_v1 }
 0x409   : > { %6628 = vmatprep.subr.mxu0 %v6788_v1  ;;  %v912_v0 = vmul.f32 %v6751_v63, %v6743_v47  ;;  %v1470_v47 = vld [vmem:[%s9326_s9 + $0x98] sm:$0xff] }
 0x40b   : > { %6621 = vmatmul.mubr.msk.f32.vlgmr.msra.gmra.mxu0 %vm661_vm3, %v912_v0 }
 0x40c   : > { %6629 = vmatpush3.msra.mxu0 %v1079_v2  ;;  %6630 = vmatprep.mubr.msk.f32.mxu0 %vm6789_vm0, %v6788_v1  ;;  %v1503_v2 = vld [vmem:[%s9326_s9 + $0x1a0] sm:$0xff] }
 0x40d   : > { %6638 = vmatprep.subr.mxu0 %v6788_v1 }
 0x42b   : > { %v1075_v3 = vpop.xlane.xlu0 %1074 }
 0x42c   : > { %6752 = vrcp.f32 %v1075_v3  ;;  %v1505_v3 = vld [vmem:[%s9326_s9 + $0x1b0] sm:$0xff] }
 0x42d   : > { %6754 = vrcp.f32 %v1240_v61 }
 0x42f   : > { %v1244_v7 = vpop.permute.xlu0 %1243 }
 0x439   : > { %v6753_v4 = vpop.eup %6752 }
 0x43a   : > { %v1077_v5 = vmul.f32 %v6753_v4, %v6747_v54  ;;  %v6755_v6 = vpop.eup %6754  ;;  %v1504_v54 = vld [vmem:[%s9326_s9 + $0x1a8] sm:$0xff] }
 0x43b   : > { %v1242_v8 = vmul.f32 %v6755_v6, %v6745_v49  ;;  %v1469_v49 = vld [vmem:[%s9326_s9 + $0x90] sm:$0xff]  ;;  %v1488_v4 = vld [vmem:[%s9326_s9 + $0x128] sm:$0xff]  ;;  %v1487_v6 = vld [vmem:[%s9326_s9 + $0x120] sm:$0xff] }
 0x43c   : > { %6631 = vmatmul.mubr.msk.f32.vlgmr.msra.gmra.mxu0 %vm661_vm3, %v1077_v5  ;;  %v1490_v5 = vld [vmem:[%s9326_s9 + $0x138] sm:$0xff] }
 0x43d   : > { %6639 = vmatpush3.msra.mxu0 %v1244_v7  ;;  %6640 = vmatprep.mubr.msk.f32.mxu0 %vm6789_vm0, %v6788_v1  ;;  %v1489_v7 = vld [vmem:[%s9326_s9 + $0x130] sm:$0xff] }
 0x43e   : > { %1626 = vmatprep.subr.mxu0 %v1500_v39  ;;  %v1495_v39 = vld [vmem:[%s9326_s9 + $0x160] sm:$0xff] }
 0x440   : > { %6641 = vmatmul.mubr.msk.f32.vlgmr.msra.gmra.mxu0 %vm661_vm3, %v1242_v8  ;;  %v1472_v8 = vld [vmem:[%s9326_s9 + $0xa8] sm:$0xff] }
 0x441   : > { %1666 = vmatprep.mubr.f32.mxu0 %v6788_v1  ;;  %1627 = vmatpush1.msra.mxu0 %v1499_v40  ;;  %v1480_v40 = vld [vmem:[%s9326_s9 + $0xe8] sm:$0xff] }
 0x442   : > { %1628 = vmatprep.subr.mxu0 %v1484_v42  ;;  %v1479_v42 = vld [vmem:[%s9326_s9 + $0xe0] sm:$0xff] }
 0x443   : > { %1629 = vmatpush1.msra.mxu0 %v1483_v44  ;;  %v1464_v44 = vld [vmem:[%s9326_s9 + $0x68] sm:$0xff] }
 0x444   : > { %1630 = vmatprep.subr.mxu0 %v1468_v46  ;;  %v1463_v46 = vld [vmem:[%s9326_s9 + $0x60] sm:$0xff] }
 0x445   : > { %1631 = vmatpush1.msra.mxu0 %v1467_v48  ;;  %v2217_v48 = vld [vmem:[%s9328_s11 + $0xf8] sm:$0xff] }
 0x446   : > { %1632 = vmatprep.subr.mxu0 %v1452_v50  ;;  %v2201_v50 = vld [vmem:[%s9328_s11 + $0x78] sm:$0xff] }
 0x447   : > { %1633 = vmatpush1.msra.mxu0 %v1451_v52  ;;  %v2216_v52 = vld [vmem:[%s9328_s11 + $0xf0] sm:$0xff] }
 0x448   : > { %1768 = vmatprep.subr.mxu0 %v1504_v54  ;;  %v2200_v54 = vld [vmem:[%s9328_s11 + $0x70] sm:$0xff] }
 0x4c7   : > { %v820_v11 = vpop.f32.mrf.mxu0 }
 0x4c9   : > { %v6612_v12 = vpop.f32.mrf.mxu0 }
 0x4ca   : > { %v1473_v12 = vld [vmem:[%s9326_s9 + $0xb0] sm:$0xff] }
 0x4cb   : > { %v985_v13 = vpop.f32.mrf.mxu0 }
 0x4cc   : > { %1320 = vrot.lane.b32.xlu1 %v985_v13, %s9338_s24  ;;  %s9340_s24 = smov 16   ;;  %v1456_v13 = vld [vmem:[%s9326_s9 + $0x28] sm:$0xff] }
 0x4cd   : > { %v6622_v14 = vpop.f32.mrf.mxu0 }
 0x4ce   : > { %v1458_v14 = vld [vmem:[%s9326_s9 + $0x38] sm:$0xff] }
 0x4fc   : > { %v1150_v18 = vpop.f32.mrf.mxu0 }
 0x4fd   : > { %1324 = vrot.lane.b32.xlu0 %v1150_v18, %s9340_s24  ;;  %v1510_v18 = vld [vmem:[%s9326_s9 + $0x1d8] sm:$0xff]  ;;  %s9347_s24 = smov 72  }
 0x4fe   : > { %v6632_v19 = vpop.f32.mrf.mxu0 }
 0x4ff   : > { %v1507_v19 = vld [vmem:[%s9326_s9 + $0x1c0] sm:$0xff] }
 0x500   : > { %v1315_v20 = vpop.f32.mrf.mxu0 }
 0x501   : > { %1328 = vrot.lane.b32.xlu1 %v1315_v20, %s9339_s22  ;;  %v1509_v20 = vld [vmem:[%s9326_s9 + $0x1d0] sm:$0xff]  ;;  %s9344_s22 = smov 120  }
 0x502   : > { %v6642_v21 = vpop.f32.mrf.mxu0 }
 0x503   : > { %v1492_v21 = vld [vmem:[%s9326_s9 + $0x148] sm:$0xff] }
 0x53e   : > { %v1321_v22 = vpop.permute.xlu1 %1320 }
 0x53f   : > { %v1331_v24 = vsel %vm661_vm3, %v820_v11, %v1321_v22  ;;  %v1471_v11 = vld [vmem:[%s9326_s9 + $0xa0] sm:$0xff]  ;;  %v1494_v22 = vld [vmem:[%s9326_s9 + $0x158] sm:$0xff] }
 0x56f   : > { %v1325_v23 = vpop.permute.xlu0 %1324 }
 0x570   : > { %v1332_v25 = vsel %vm498_vm1, %v1331_v24, %v1325_v23  ;;  %v1491_v23 = vld [vmem:[%s9326_s9 + $0x140] sm:$0xff]  ;;  %v1493_v24 = vld [vmem:[%s9326_s9 + $0x150] sm:$0xff] }
 0x573   : > { %v1329_v26 = vpop.permute.xlu1 %1328 }
 0x574   : > { %v1334_v27 = vsel %vm1333_vm4, %v1332_v25, %v1329_v26  ;;  %v1476_v25 = vld [vmem:[%s9326_s9 + $0xc8] sm:$0xff]  ;;  %v1478_v26 = vld [vmem:[%s9326_s9 + $0xd8] sm:$0xff] }
 0x575   : > { %6652 = vmatmul.mubr.msk.f32.vlgmr.msra.gmra.mxu1 %vm583_vm2, %v1334_v27  ;;  %v1475_v27 = vld [vmem:[%s9326_s9 + $0xc0] sm:$0xff] }
 0x576   : > { %1737 = vmatprep.mubr.f32.mxu1 %v6788_v1 }
 0x635   : > { %v1408_v28 = vpop.f32.mrf.mxu1 }
 0x636   : > { %v1412_v30 = vadd.f32 %v1408_v28, %v6934_v10  ;;  %v1502_v10 = vld [vmem:[%s9326_s9 + $0x198] sm:$0xff]  ;;  %v1477_v28 = vld [vmem:[%s9326_s9 + $0xd0] sm:$0xff] }
 0x637   : > { %v6653_v31 = vpop.f32.mrf.mxu1  ;;  %1697 = vmatprep.subr.mxu1 %v1502_v10  ;;  %v1497_v10 = vld [vmem:[%s9326_s9 + $0x170] sm:$0xff] }
 0x638   : > { %v1420_v32 = vadd.f32 %v5588_v29, %v1412_v30  ;;  %1698 = vmatpush1.msra.mxu1 %v1501_v41  ;;  %v1460_v29 = vld [vmem:[%s9326_s9 + $0x48] sm:$0xff]  ;;  %v1462_v30 = vld [vmem:[%s9326_s9 + $0x58] sm:$0xff]  ;;  %v1459_v31 = vld [vmem:[%s9326_s9 + $0x40] sm:$0xff] }
 0x639   : > { %1699 = vmatprep.subr.mxu1 %v1486_v43  ;;  %v1482_v41 = vld [vmem:[%s9326_s9 + $0xf8] sm:$0xff]  ;;  %v1481_v43 = vld [vmem:[%s9326_s9 + $0xf0] sm:$0xff] }
 0x63a   : > { %v1421_v33 = vsel %vm583_vm2, %v1420_v32, 0.0  ;;  %1700 = vmatpush1.msra.mxu1 %v1485_v45  ;;  %v1466_v45 = vld [vmem:[%s9326_s9 + $0x78] sm:$0xff] }
 0x63b   : > { %1422 = vadd.xlane.f32.xlu0 %v1421_v33  ;;  %1701 = vmatprep.subr.mxu1 %v1470_v47  ;;  %v1512_v33 = vld [vmem:[%s9326_s9 + $0x1e8] sm:$0xff]  ;;  %v1465_v47 = vld [vmem:[%s9326_s9 + $0x70] sm:$0xff] }
 0x63c   : > { %1702 = vmatpush1.msra.mxu1 %v1469_v49  ;;  %v2249_v49 = vld [vmem:[%s9328_s11 + $0x1f8] sm:$0xff] }
 0x63d   : > { %1703 = vmatprep.subr.mxu1 %v1454_v51  ;;  %v2233_v51 = vld [vmem:[%s9328_s11 + $0x178] sm:$0xff] }
 0x63e   : > { %1704 = vmatpush1.msra.mxu1 %v1453_v53  ;;  %v2248_v53 = vld [vmem:[%s9328_s11 + $0x1f0] sm:$0xff] }
 0x63f   : > { %1839 = vmatprep.subr.mxu1 %v1506_v55  ;;  %v2232_v55 = vld [vmem:[%s9328_s11 + $0x170] sm:$0xff] }
 0x6c4   : > { %v1423_v34 = vpop.xlane.xlu0 %1422 }
 0x6c5   : > { %v1425_v35 = vmul.f32 0.03125, %v1423_v34  ;;  %v1514_v34 = vld [vmem:[%s9326_s9 + $0x1f8] sm:$0xff] }
 0x6c7   : > { %v1426_v36 = vsub.f32 %v1420_v32, %v1425_v35  ;;  %v1461_v32 = vld [vmem:[%s9326_s9 + $0x50] sm:$0xff]  ;;  %v1511_v35 = vld [vmem:[%s9326_s9 + $0x1e0] sm:$0xff] }
 0x6c9   : > { %v1427_v37 = vmul.f32 %v1426_v36, %v1426_v36 }
 0x6cb   : > { %v1428_v38 = vsel %vm583_vm2, %v1427_v37, 0.0  ;;  %v1496_v37 = vld [vmem:[%s9326_s9 + $0x168] sm:$0xff] }
 0x6cc   : > { %1429 = vadd.xlane.f32.xlu1 %v1428_v38  ;;  %v1498_v38 = vld [vmem:[%s9326_s9 + $0x178] sm:$0xff] }
 0x755   : > { %v1430_v56 = vpop.xlane.xlu1 %1429 }
 0x756   : > { %v1431_v57 = vmul.f32 0.03125, %v1430_v56  ;;  %v2215_v56 = vld [vmem:[%s9328_s11 + $0xe8] sm:$0xff] }
 0x758   : > { %v1432_v58 = vadd.f32 1e-05, %v1431_v57  ;;  %v2247_v57 = vld [vmem:[%s9328_s11 + $0x1e8] sm:$0xff] }
 0x75a   : > { %6756 = vrsqrt.f32 %v1432_v58  ;;  %v2199_v58 = vld [vmem:[%s9328_s11 + $0x68] sm:$0xff] }
 0x767   : > { %v6757_v59 = vpop.eup %6756 }
 0x768   : > { %v1434_v61 = vmul.f32 %v6757_v59, %v1426_v36  ;;  %v1513_v36 = vld [vmem:[%s9326_s9 + $0x1f0] sm:$0xff]  ;;  %v2231_v59 = vld [vmem:[%s9328_s11 + $0x168] sm:$0xff] }
 0x76a   : > { %v1442_v63 = vmul.f32 %v5589_v60, %v1434_v61  ;;  %v2214_v60 = vld [vmem:[%s9328_s11 + $0xe0] sm:$0xff] }
 0x76b   : > { %v2246_v61 = vld [vmem:[%s9328_s11 + $0x1e0] sm:$0xff] }
 0x76c   : > { %v7096_v0 = vadd.f32 %v5590_v62, %v1442_v63  ;;  %v2198_v62 = vld [vmem:[%s9328_s11 + $0x60] sm:$0xff] }
 0x76d   : > { %v2230_v63 = vld [vmem:[%s9328_s11 + $0x160] sm:$0xff] }
 0x76e   : > { %5591 = vmatmul.mubr.msk.f32.vlgmr.msra.gmra.mxu0 %vm583_vm2, %v7096_v0  ;;  %5592 = vmatmul.mubr.msk.f32.vlgmr.msra.gmra.mxu1 %vm583_vm2, %v7096_v0 }
 0x76f   : > { %1769 = vmatpush1.msra.mxu0 %v1503_v2  ;;  %1840 = vmatpush1.msra.mxu1 %v1505_v3  ;;  %v2213_v2 = vld [vmem:[%s9328_s11 + $0xd8] sm:$0xff] }
 0x770   : > { %1770 = vmatprep.subr.mxu0 %v1488_v4  ;;  %1841 = vmatprep.subr.mxu1 %v1490_v5  ;;  %v2245_v3 = vld [vmem:[%s9328_s11 + $0x1d8] sm:$0xff] }
 0x771   : > { %1771 = vmatpush1.msra.mxu0 %v1487_v6  ;;  %1842 = vmatpush1.msra.mxu1 %v1489_v7  ;;  %v2197_v4 = vld [vmem:[%s9328_s11 + $0x58] sm:$0xff]  ;;  %v2212_v6 = vld [vmem:[%s9328_s11 + $0xd0] sm:$0xff] }
 0x772   : > { %1772 = vmatprep.subr.mxu0 %v1472_v8  ;;  %1843 = vmatprep.subr.mxu1 %v1474_v9  ;;  %v2229_v5 = vld [vmem:[%s9328_s11 + $0x158] sm:$0xff]  ;;  %v2244_v7 = vld [vmem:[%s9328_s11 + $0x1d0] sm:$0xff] }
 0x773   : > { %1773 = vmatpush1.msra.mxu0 %v1471_v11  ;;  %1844 = vmatpush1.msra.mxu1 %v1473_v12  ;;  %v2196_v8 = vld [vmem:[%s9328_s11 + $0x50] sm:$0xff]  ;;  %v2211_v11 = vld [vmem:[%s9328_s11 + $0xc8] sm:$0xff] }
 0x774   : > { %1774 = vmatprep.subr.mxu0 %v1456_v13  ;;  %1845 = vmatprep.subr.mxu1 %v1458_v14  ;;  %v2228_v9 = vld [vmem:[%s9328_s11 + $0x150] sm:$0xff]  ;;  %v2243_v12 = vld [vmem:[%s9328_s11 + $0x1c8] sm:$0xff] }
 0x775   : > { %1775 = vmatpush1.msra.mxu0 %v1455_v15  ;;  %1808 = vmatprep.mubr.f32.mxu0 %v6788_v1  ;;  %v2195_v13 = vld [vmem:[%s9328_s11 + $0x48] sm:$0xff]  ;;  %v2210_v15 = vld [vmem:[%s9328_s11 + $0xc0] sm:$0xff] }
 0x776   : > { %1846 = vmatpush1.msra.mxu1 %v1457_v16  ;;  %1879 = vmatprep.mubr.f32.mxu1 %v6788_v1  ;;  %v2227_v14 = vld [vmem:[%s9328_s11 + $0x148] sm:$0xff]  ;;  %v2242_v16 = vld [vmem:[%s9328_s11 + $0x1c0] sm:$0xff] }
 0x777   : > { %5593 = vmatmul.mubr.msk.f32.vlgmr.msra.gmra.mxu0 %vm583_vm2, %v7096_v0  ;;  %5594 = vmatmul.mubr.msk.f32.vlgmr.msra.gmra.mxu1 %vm583_vm2, %v7096_v0 }
 0x778   : > { %1910 = vmatprep.subr.mxu0 %v1508_v17  ;;  %1981 = vmatprep.subr.mxu1 %v1510_v18  ;;  %v2194_v17 = vld [vmem:[%s9328_s11 + $0x40] sm:$0xff] }
 0x779   : > { %1911 = vmatpush1.msra.mxu0 %v1507_v19  ;;  %1982 = vmatpush1.msra.mxu1 %v1509_v20  ;;  %v2226_v18 = vld [vmem:[%s9328_s11 + $0x140] sm:$0xff]  ;;  %v2209_v19 = vld [vmem:[%s9328_s11 + $0xb8] sm:$0xff] }
 0x77a   : > { %1912 = vmatprep.subr.mxu0 %v1492_v21  ;;  %1983 = vmatprep.subr.mxu1 %v1494_v22  ;;  %v2241_v20 = vld [vmem:[%s9328_s11 + $0x1b8] sm:$0xff] }
 0x77b   : > { %1913 = vmatpush1.msra.mxu0 %v1491_v23  ;;  %1984 = vmatpush1.msra.mxu1 %v1493_v24  ;;  %v2193_v21 = vld [vmem:[%s9328_s11 + $0x38] sm:$0xff]  ;;  %v2208_v23 = vld [vmem:[%s9328_s11 + $0xb0] sm:$0xff] }
 0x77c   : > { %1914 = vmatprep.subr.mxu0 %v1476_v25  ;;  %1985 = vmatprep.subr.mxu1 %v1478_v26  ;;  %v2225_v22 = vld [vmem:[%s9328_s11 + $0x138] sm:$0xff]  ;;  %v2240_v24 = vld [vmem:[%s9328_s11 + $0x1b0] sm:$0xff] }
 0x77d   : > { %1915 = vmatpush1.msra.mxu0 %v1475_v27  ;;  %1986 = vmatpush1.msra.mxu1 %v1477_v28  ;;  %v2192_v25 = vld [vmem:[%s9328_s11 + $0x30] sm:$0xff]  ;;  %v2207_v27 = vld [vmem:[%s9328_s11 + $0xa8] sm:$0xff] }
 0x77e   : > { %1916 = vmatprep.subr.mxu0 %v1460_v29  ;;  %1987 = vmatprep.subr.mxu1 %v1462_v30  ;;  %v2224_v26 = vld [vmem:[%s9328_s11 + $0x130] sm:$0xff]  ;;  %v2239_v28 = vld [vmem:[%s9328_s11 + $0x1a8] sm:$0xff] }
 0x77f   : > { %1917 = vmatpush1.msra.mxu0 %v1459_v31  ;;  %1950 = vmatprep.mubr.f32.mxu0 %v6788_v1  ;;  %v2191_v29 = vld [vmem:[%s9328_s11 + $0x28] sm:$0xff]  ;;  %v2206_v31 = vld [vmem:[%s9328_s11 + $0xa0] sm:$0xff] }
 0x780   : > { %1988 = vmatpush1.msra.mxu1 %v1461_v32  ;;  %2021 = vmatprep.mubr.f32.mxu1 %v6788_v1  ;;  %v2223_v30 = vld [vmem:[%s9328_s11 + $0x128] sm:$0xff]  ;;  %v2238_v32 = vld [vmem:[%s9328_s11 + $0x1a0] sm:$0xff] }
 0x781   : > { %5595 = vmatmul.mubr.msk.f32.vlgmr.msra.gmra.mxu0 %vm583_vm2, %v7096_v0  ;;  %5596 = vmatmul.mubr.msk.f32.vlgmr.msra.gmra.mxu1 %vm583_vm2, %v7096_v0 }
 0x782   : > { %2052 = vmatprep.subr.mxu0 %v1512_v33  ;;  %2123 = vmatprep.subr.mxu1 %v1514_v34  ;;  %v2190_v33 = vld [vmem:[%s9328_s11 + $0x20] sm:$0xff] }
 0x783   : > { %2053 = vmatpush1.msra.mxu0 %v1511_v35  ;;  %2124 = vmatpush1.msra.mxu1 %v1513_v36  ;;  %v2222_v34 = vld [vmem:[%s9328_s11 + $0x120] sm:$0xff]  ;;  %v2205_v35 = vld [vmem:[%s9328_s11 + $0x98] sm:$0xff] }
 0x784   : > { %2054 = vmatprep.subr.mxu0 %v1496_v37  ;;  %2125 = vmatprep.subr.mxu1 %v1498_v38  ;;  %v2237_v36 = vld [vmem:[%s9328_s11 + $0x198] sm:$0xff] }
 0x785   : > { %2055 = vmatpush1.msra.mxu0 %v1495_v39  ;;  %2126 = vmatpush1.msra.mxu1 %v1497_v10  ;;  %v2189_v37 = vld [vmem:[%s9328_s11 + $0x18] sm:$0xff]  ;;  %v2204_v39 = vld [vmem:[%s9328_s11 + $0x90] sm:$0xff] }
 0x786   : > { %2056 = vmatprep.subr.mxu0 %v1480_v40  ;;  %2127 = vmatprep.subr.mxu1 %v1482_v41  ;;  %v2221_v38 = vld [vmem:[%s9328_s11 + $0x118] sm:$0xff]  ;;  %v2236_v10 = vld [vmem:[%s9328_s11 + $0x190] sm:$0xff] }
 0x787   : > { %2057 = vmatpush1.msra.mxu0 %v1479_v42  ;;  %2128 = vmatpush1.msra.mxu1 %v1481_v43  ;;  %v2188_v40 = vld [vmem:[%s9328_s11 + $0x10] sm:$0xff]  ;;  %v2203_v42 = vld [vmem:[%s9328_s11 + $0x88] sm:$0xff] }
 0x788   : > { %2058 = vmatprep.subr.mxu0 %v1464_v44  ;;  %2129 = vmatprep.subr.mxu1 %v1466_v45  ;;  %v2220_v41 = vld [vmem:[%s9328_s11 + $0x110] sm:$0xff]  ;;  %v2235_v43 = vld [vmem:[%s9328_s11 + $0x188] sm:$0xff] }
 0x789   : > { %2059 = vmatpush1.msra.mxu0 %v1463_v46  ;;  %2092 = vmatprep.mubr.f32.mxu0 %v6788_v1  ;;  %v2187_v44 = vld [vmem:[%s9328_s11 + $0x8] sm:$0xff]  ;;  %v2202_v46 = vld [vmem:[%s9328_s11 + $0x80] sm:$0xff] }
 0x78a   : > { %2130 = vmatpush1.msra.mxu1 %v1465_v47  ;;  %2163 = vmatprep.mubr.f32.mxu1 %v6788_v1  ;;  %v2219_v45 = vld [vmem:[%s9328_s11 + $0x108] sm:$0xff]  ;;  %v2234_v47 = vld [vmem:[%s9328_s11 + $0x180] sm:$0xff] }
 0x78b   : > { %5597 = vmatmul.mubr.msk.f32.vlgmr.msra.gmra.mxu0 %vm583_vm2, %v7096_v0  ;;  %5598 = vmatmul.mubr.msk.f32.vlgmr.msra.gmra.mxu1 %vm583_vm2, %v7096_v0 }
 0x78c   : > { %5999 = vmatprep.subr.mxu0 %v2217_v48  ;;  %6034 = vmatprep.subr.mxu1 %v2249_v49  ;;  %v2186_v48 = vld [vmem:[%s9328_s11] sm:$0xff] }
 0x78d   : > { %6000 = vmatpush3.msra.mxu0 %v2201_v50  ;;  %6035 = vmatpush3.msra.mxu1 %v2233_v51  ;;  %v2218_v49 = vld [vmem:[%s9328_s11 + $0x100] sm:$0xff]  ;;  %v2281_v50 = vld [vmem:[%s9328_s11 + $0x2f8] sm:$0xff] }
 0x78e   : > { %6001 = vmatprep.subr.mxu0 %v2216_v52  ;;  %6036 = vmatprep.subr.mxu1 %v2248_v53  ;;  %v2313_v51 = vld [vmem:[%s9328_s11 + $0x3f8] sm:$0xff]  ;;  %v1519_v52 = vlaneseq }
 0x78f   : > { %6002 = vmatpush3.msra.mxu0 %v2200_v54  ;;  %6037 = vmatpush3.msra.mxu1 %v2232_v55 }
 0x790   : > { %6003 = vmatprep.subr.mxu0 %v2215_v56  ;;  %6038 = vmatprep.subr.mxu1 %v2247_v57  ;;  %v7456_v53 = vshrl.u32 %v1519_v52, 7  ;;  %v7467_v56 = vld [vmem:[%s9327_s10] sm:$0xff] }
 0x791   : > { %6004 = vmatpush3.msra.mxu0 %v2199_v58  ;;  %6039 = vmatpush3.msra.mxu1 %v2231_v59  ;;  %v2306_v52 = vld [vmem:[%s9328_s11 + $0x3c0] sm:$0xff] }
 0x792   : > { %6005 = vmatprep.subr.mxu0 %v2214_v60  ;;  %6040 = vmatprep.subr.mxu1 %v2246_v61  ;;  %v7459_v54 = vsub.s32 0, %v7456_v53  ;;  %v7462_v55 = vsub.s32 2, %v7456_v53  ;;  %v7470_v57 = vsub.s32 1, %v7456_v53  ;;  %v7473_v58 = vsub.s32 3, %v7456_v53 }
 0x793   : > { %6006 = vmatpush3.msra.mxu0 %v2198_v62  ;;  %6041 = vmatpush3.msra.mxu1 %v2230_v63 }
 0x794   : > { %6007 = vmatprep.subr.mxu0 %v2213_v2  ;;  %6042 = vmatprep.subr.mxu1 %v2245_v3  ;;  %v1522_v59 = vrot.slane %v7467_v56, %v7459_v54  ;;  %v1530_v60 = vrot.slane %v7467_v56, %v7462_v55  ;;  %v1526_v61 = vrot.slane %v7467_v56, %v7470_v57 }
 0x795   : > { %6008 = vmatpush3.msra.mxu0 %v2197_v4  ;;  %6043 = vmatpush3.msra.mxu1 %v2229_v5  ;;  %v1534_v62 = vrot.slane %v7467_v56, %v7473_v58 }
 0x796   : > { %6009 = vmatprep.subr.mxu0 %v2212_v6  ;;  %6044 = vmatprep.subr.mxu1 %v2244_v7 }
 0x797   : > { %6010 = vmatpush3.msra.mxu0 %v2196_v8  ;;  %6045 = vmatpush3.msra.mxu1 %v2228_v9  ;;  %v7484_v9 = vsub.s32 5, %v7456_v53 }
 0x798   : > { %6011 = vmatprep.subr.mxu0 %v2211_v11  ;;  %6046 = vmatprep.subr.mxu1 %v2243_v12  ;;  %v7487_v11 = vsub.s32 7, %v7456_v53 }
 0x799   : > { %6012 = vmatpush3.msra.mxu0 %v2195_v13  ;;  %6047 = vmatpush3.msra.mxu1 %v2227_v14 }
 0x79a   : > { %6013 = vmatprep.subr.mxu0 %v2210_v15  ;;  %6048 = vmatprep.subr.mxu1 %v2242_v16  ;;  %v2265_v16 = vld [vmem:[%s9328_s11 + $0x278] sm:$0xff] }
 0x79b   : > { %6014 = vmatpush3.msra.mxu0 %v2194_v17  ;;  %6049 = vmatpush3.msra.mxu1 %v2226_v18  ;;  %v2297_v17 = vld [vmem:[%s9328_s11 + $0x378] sm:$0xff]  ;;  %v2280_v18 = vld [vmem:[%s9328_s11 + $0x2f0] sm:$0xff] }
 0x79c   : > { %6015 = vmatprep.subr.mxu0 %v2209_v19  ;;  %6050 = vmatprep.subr.mxu1 %v2241_v20  ;;  %v2312_v19 = vld [vmem:[%s9328_s11 + $0x3f0] sm:$0xff]  ;;  %v1542_v20 = vrot.slane %v7467_v56, %v7484_v9 }
 0x79d   : > { %6016 = vmatpush3.msra.mxu0 %v2193_v21  ;;  %6051 = vmatpush3.msra.mxu1 %v2225_v22  ;;  %v1550_v21 = vrot.slane %v7467_v56, %v7487_v11  ;;  %v2264_v22 = vld [vmem:[%s9328_s11 + $0x270] sm:$0xff] }
 0x79e   : > { %6017 = vmatprep.subr.mxu0 %v2208_v23  ;;  %6052 = vmatprep.subr.mxu1 %v2240_v24  ;;  %v2296_v23 = vld [vmem:[%s9328_s11 + $0x370] sm:$0xff] }
 0x79f   : > { %6018 = vmatpush3.msra.mxu0 %v2192_v25  ;;  %6053 = vmatpush3.msra.mxu1 %v2224_v26  ;;  %v2279_v26 = vld [vmem:[%s9328_s11 + $0x2e8] sm:$0xff] }
 0x7a0   : > { %6019 = vmatprep.subr.mxu0 %v2207_v27  ;;  %6054 = vmatprep.subr.mxu1 %v2239_v28  ;;  %v2311_v27 = vld [vmem:[%s9328_s11 + $0x3e8] sm:$0xff] }
 0x7a1   : > { %6020 = vmatpush3.msra.mxu0 %v2191_v29  ;;  %6055 = vmatpush3.msra.mxu1 %v2223_v30  ;;  %v2263_v28 = vld [vmem:[%s9328_s11 + $0x268] sm:$0xff] }
 0x7a2   : > { %6021 = vmatprep.subr.mxu0 %v2206_v31  ;;  %6056 = vmatprep.subr.mxu1 %v2238_v32  ;;  %v2295_v29 = vld [vmem:[%s9328_s11 + $0x368] sm:$0xff]  ;;  %v2278_v32 = vld [vmem:[%s9328_s11 + $0x2e0] sm:$0xff] }
 0x7a3   : > { %6022 = vmatpush3.msra.mxu0 %v2190_v33  ;;  %6057 = vmatpush3.msra.mxu1 %v2222_v34  ;;  %v2310_v33 = vld [vmem:[%s9328_s11 + $0x3e0] sm:$0xff] }
 0x7a4   : > { %6023 = vmatprep.subr.mxu0 %v2205_v35  ;;  %6058 = vmatprep.subr.mxu1 %v2237_v36  ;;  %v2262_v36 = vld [vmem:[%s9328_s11 + $0x260] sm:$0xff] }
 0x7a5   : > { %6024 = vmatpush3.msra.mxu0 %v2189_v37  ;;  %6059 = vmatpush3.msra.mxu1 %v2221_v38  ;;  %v2294_v37 = vld [vmem:[%s9328_s11 + $0x360] sm:$0xff] }
 0x7a6   : > { %6025 = vmatprep.subr.mxu0 %v2204_v39  ;;  %6060 = vmatprep.subr.mxu1 %v2236_v10  ;;  %v2277_v10 = vld [vmem:[%s9328_s11 + $0x2d8] sm:$0xff] }
 0x7a7   : > { %6026 = vmatpush3.msra.mxu0 %v2188_v40  ;;  %6061 = vmatpush3.msra.mxu1 %v2220_v41  ;;  %v2309_v40 = vld [vmem:[%s9328_s11 + $0x3d8] sm:$0xff] }
 0x7a8   : > { %6027 = vmatprep.subr.mxu0 %v2203_v42  ;;  %6062 = vmatprep.subr.mxu1 %v2235_v43  ;;  %v2261_v41 = vld [vmem:[%s9328_s11 + $0x258] sm:$0xff]  ;;  %v2276_v43 = vld [vmem:[%s9328_s11 + $0x2d0] sm:$0xff] }
 0x7a9   : > { %6028 = vmatpush3.msra.mxu0 %v2187_v44  ;;  %6063 = vmatpush3.msra.mxu1 %v2219_v45  ;;  %v2293_v42 = vld [vmem:[%s9328_s11 + $0x358] sm:$0xff]  ;;  %v2308_v44 = vld [vmem:[%s9328_s11 + $0x3d0] sm:$0xff] }
 0x7aa   : > { %6029 = vmatprep.subr.mxu0 %v2202_v46  ;;  %6064 = vmatprep.subr.mxu1 %v2234_v47  ;;  %v2260_v45 = vld [vmem:[%s9328_s11 + $0x250] sm:$0xff]  ;;  %v2275_v47 = vld [vmem:[%s9328_s11 + $0x2c8] sm:$0xff] }
 0x7ab   : > { %6030 = vmatpush3.msra.mxu0 %v2186_v48  ;;  %6065 = vmatpush3.msra.mxu1 %v2218_v49  ;;  %v2292_v46 = vld [vmem:[%s9328_s11 + $0x350] sm:$0xff]  ;;  %v2307_v48 = vld [vmem:[%s9328_s11 + $0x3c8] sm:$0xff] }
 0x7ac   : > { %6069 = vmatprep.subr.mxu0 %v2281_v50  ;;  %6104 = vmatprep.subr.mxu1 %v2313_v51  ;;  %v2259_v49 = vld [vmem:[%s9328_s11 + $0x248] sm:$0xff]  ;;  %v2274_v51 = vld [vmem:[%s9328_s11 + $0x2c0] sm:$0xff] }
 0x7ad   : > { %v2291_v50 = vld [vmem:[%s9328_s11 + $0x348] sm:$0xff] }
 0x82e   : > { %v1668_v63 = vpop.f32.mrf.mxu0  ;;  %v1739_v2 = vpop.f32.mrf.mxu1 }
 0x82f   : > { %v1669_v3 = vadd.f32 %v1668_v63, %v1522_v59  ;;  %v1740_v4 = vadd.f32 %v1739_v2, %v1530_v60  ;;  %v2258_v59 = vld [vmem:[%s9328_s11 + $0x240] sm:$0xff]  ;;  %v2257_v63 = vld [vmem:[%s9328_s11 + $0x238] sm:$0xff] }
 0x830   : > { %v1670_v5 = vpop.f32.mrf.mxu0  ;;  %v1741_v6 = vpop.f32.mrf.mxu1  ;;  %v2290_v60 = vld [vmem:[%s9328_s11 + $0x340] sm:$0xff]  ;;  %v2289_v2 = vld [vmem:[%s9328_s11 + $0x338] sm:$0xff] }
 0x831   : > { %v1671_v7 = vadd.f32 %v1670_v5, %v1526_v61  ;;  %v1742_v8 = vadd.f32 %v1741_v6, %v1534_v62  ;;  %v2170_v14 = vmax.f32 %v1669_v3, 0.0  ;;  %v2172_v15 = vmax.f32 %v1740_v4, 0.0  ;;  %v2273_v61 = vld [vmem:[%s9328_s11 + $0x2b8] sm:$0xff]  ;;  %v2272_v3 = vld [vmem:[%s9328_s11 + $0x2b0] sm:$0xff] }
 0x832   : > { %v2305_v62 = vld [vmem:[%s9328_s11 + $0x3b8] sm:$0xff]  ;;  %v2304_v4 = vld [vmem:[%s9328_s11 + $0x3b0] sm:$0xff] }
 0x833   : > { %v2171_v12 = vmax.f32 %v1671_v7, 0.0  ;;  %v2173_v13 = vmax.f32 %v1742_v8, 0.0  ;;  %v2256_v5 = vld [vmem:[%s9328_s11 + $0x230] sm:$0xff]  ;;  %v2271_v7 = vld [vmem:[%s9328_s11 + $0x2a8] sm:$0xff] }
 0x834   : > { %v2288_v6 = vld [vmem:[%s9328_s11 + $0x330] sm:$0xff]  ;;  %v2303_v8 = vld [vmem:[%s9328_s11 + $0x3a8] sm:$0xff] }
 0x835   : > { %2506 = vmatprep.mubr.f32.mxu0 %v2171_v12  ;;  %2576 = vmatprep.mubr.f32.mxu1 %v2173_v13  ;;  %v7618_v12 = vsub.s32 4, %v7456_v53  ;;  %v7621_v13 = vsub.s32 6, %v7456_v53  ;;  %v2302_v53 = vld [vmem:[%s9328_s11 + $0x3a0] sm:$0xff] }
 0x836   : > { %2507 = vmatmul.mubr.f32.vlgmr.msra.gmra.mxu0 %v2170_v14  ;;  %2577 = vmatmul.mubr.f32.vlgmr.msra.gmra.mxu1 %v2172_v15  ;;  %v2255_v14 = vld [vmem:[%s9328_s11 + $0x228] sm:$0xff] }
 0x837   : > { %v7511_v24 = vpop.f32.mrf.mxu0  ;;  %v7513_v25 = vpop.f32.mrf.mxu1  ;;  %6070 = vmatpush3.msra.mxu0 %v2265_v16  ;;  %6105 = vmatpush3.msra.mxu1 %v2297_v17  ;;  %v2287_v15 = vld [vmem:[%s9328_s11 + $0x328] sm:$0xff]  ;;  %v2270_v16 = vld [vmem:[%s9328_s11 + $0x2a0] sm:$0xff] }
 0x838   : > { %6071 = vmatprep.subr.mxu0 %v2280_v18  ;;  %6106 = vmatprep.subr.mxu1 %v2312_v19  ;;  %v2254_v17 = vld [vmem:[%s9328_s11 + $0x220] sm:$0xff] }
 0x839   : > { %v1812_v30 = vpop.f32.mrf.mxu0  ;;  %v1883_v31 = vpop.f32.mrf.mxu1  ;;  %6072 = vmatpush3.msra.mxu0 %v2264_v22  ;;  %6107 = vmatpush3.msra.mxu1 %v2296_v23  ;;  %v2286_v18 = vld [vmem:[%s9328_s11 + $0x320] sm:$0xff]  ;;  %v1538_v22 = vrot.slane %v7467_v56, %v7618_v12  ;;  %v1546_v23 = vrot.slane %v7467_v56, %v7621_v13  ;;  %v2268_v56 = vld [vmem:[%s9328_s11 + $0x290] sm:$0xff] }
 0x83a   : > { %v1813_v34 = vadd.f32 %v1812_v30, %v1542_v20  ;;  %v1884_v35 = vadd.f32 %v1883_v31, %v1550_v21  ;;  %6073 = vmatprep.subr.mxu0 %v2279_v26  ;;  %6108 = vmatprep.subr.mxu1 %v2311_v27  ;;  %v2269_v20 = vld [vmem:[%s9328_s11 + $0x298] sm:$0xff]  ;;  %v2300_v30 = vld [vmem:[%s9328_s11 + $0x390] sm:$0xff] }
 0x83b   : > { %6074 = vmatpush3.msra.mxu0 %v2263_v28  ;;  %6109 = vmatpush3.msra.mxu1 %v2295_v29  ;;  %v2301_v21 = vld [vmem:[%s9328_s11 + $0x398] sm:$0xff]  ;;  %v7664_v29 = vld [vmem:[%s9327_s10 + $0x8] sm:$0xff] }
 0x83c   : > { %v2175_v38 = vmax.f32 %v1813_v34, 0.0  ;;  %v2177_v39 = vmax.f32 %v1884_v35, 0.0  ;;  %6075 = vmatprep.subr.mxu0 %v2278_v32  ;;  %6110 = vmatprep.subr.mxu1 %v2310_v33  ;;  %v2253_v27 = vld [vmem:[%s9328_s11 + $0x218] sm:$0xff]  ;;  %v1558_v31 = vrot.slane %v7664_v29, %v7470_v57  ;;  %v2252_v32 = vld [vmem:[%s9328_s11 + $0x210] sm:$0xff]  ;;  %v1566_v35 = vrot.slane %v7664_v29, %v7473_v58 }
 0x83d   : > { %6076 = vmatpush3.msra.mxu0 %v2262_v36  ;;  %6111 = vmatpush3.msra.mxu1 %v2294_v37  ;;  %v2285_v28 = vld [vmem:[%s9328_s11 + $0x318] sm:$0xff]  ;;  %v2284_v33 = vld [vmem:[%s9328_s11 + $0x310] sm:$0xff]  ;;  %v2267_v36 = vld [vmem:[%s9328_s11 + $0x288] sm:$0xff] }
 0x83e   : > { %2646 = vmatprep.mubr.f32.mxu0 %v2175_v38  ;;  %2716 = vmatprep.mubr.f32.mxu1 %v2177_v39  ;;  %v2299_v37 = vld [vmem:[%s9328_s11 + $0x388] sm:$0xff]  ;;  %v1811_v38 = vadd.f32 %v7511_v24, %v1538_v22  ;;  %v1882_v39 = vadd.f32 %v7513_v25, %v1546_v23  ;;  %v2298_v24 = vld [vmem:[%s9328_s11 + $0x380] sm:$0xff]  ;;  %v2356_v22 = vld [vmem:[%s9328_s11 + $0x550] sm:$0xff] }
 0x83f   : > { %6077 = vmatprep.subr.mxu0 %v2277_v10  ;;  %6112 = vmatprep.subr.mxu1 %v2309_v40  ;;  %v2251_v40 = vld [vmem:[%s9328_s11 + $0x208] sm:$0xff] }
 0x840   : > { %6078 = vmatpush3.msra.mxu0 %v2261_v41  ;;  %6113 = vmatpush3.msra.mxu1 %v2293_v42  ;;  %v2283_v41 = vld [vmem:[%s9328_s11 + $0x308] sm:$0xff]  ;;  %v2266_v42 = vld [vmem:[%s9328_s11 + $0x280] sm:$0xff] }
 0x841   : > { %6079 = vmatprep.subr.mxu0 %v2276_v43  ;;  %6114 = vmatprep.subr.mxu1 %v2308_v44  ;;  %v7641_v19 = vpop.f32.mrf.mxu0  ;;  %v7653_v26 = vpop.f32.mrf.mxu1  ;;  %v2250_v43 = vld [vmem:[%s9328_s11 + $0x200] sm:$0xff]  ;;  %v2339_v23 = vld [vmem:[%s9328_s11 + $0x4c8] sm:$0xff] }
 0x842   : > { %6080 = vmatpush3.msra.mxu0 %v2260_v45  ;;  %6115 = vmatpush3.msra.mxu1 %v2292_v46  ;;  %v2282_v44 = vld [vmem:[%s9328_s11 + $0x300] sm:$0xff]  ;;  %v2174_v46 = vmax.f32 %v1811_v38, 0.0  ;;  %v2336_v38 = vld [vmem:[%s9328_s11 + $0x4b0] sm:$0xff] }
 0x843   : > { %6081 = vmatprep.subr.mxu0 %v2275_v47  ;;  %6116 = vmatprep.subr.mxu1 %v2307_v48  ;;  %v1954_v34 = vpop.f32.mrf.mxu0  ;;  %v2025_v10 = vpop.f32.mrf.mxu1  ;;  %v2176_v47 = vmax.f32 %v1882_v39, 0.0  ;;  %v2345_v48 = vld [vmem:[%s9328_s11 + $0x4f8] sm:$0xff]  ;;  %v2368_v39 = vld [vmem:[%s9328_s11 + $0x5b0] sm:$0xff] }
 0x844   : > { %6082 = vmatpush3.msra.mxu0 %v2259_v49  ;;  %6117 = vmatpush3.msra.mxu1 %v2291_v50  ;;  %v1955_v25 = vadd.f32 %v1954_v34, %v1558_v31  ;;  %v2026_v45 = vadd.f32 %v2025_v10, %v1566_v35  ;;  %v2377_v49 = vld [vmem:[%s9328_s11 + $0x5f8] sm:$0xff]  ;;  %v2370_v31 = vld [vmem:[%s9328_s11 + $0x5c0] sm:$0xff]  ;;  %v2320_v10 = vld [vmem:[%s9328_s11 + $0x430] sm:$0xff] }
 0x845   : > { %6083 = vmatprep.subr.mxu0 %v2274_v51  ;;  %6118 = vmatprep.subr.mxu1 %v2306_v52  ;;  %v2329_v50 = vld [vmem:[%s9328_s11 + $0x478] sm:$0xff] }
 0x846   : > { %6084 = vmatpush3.msra.mxu0 %v2258_v59  ;;  %6119 = vmatpush3.msra.mxu1 %v2290_v60  ;;  %v2179_v51 = vmax.f32 %v1955_v25, 0.0  ;;  %v2361_v52 = vld [vmem:[%s9328_s11 + $0x578] sm:$0xff]  ;;  %v2181_v59 = vmax.f32 %v2026_v45, 0.0  ;;  %v2344_v60 = vld [vmem:[%s9328_s11 + $0x4f0] sm:$0xff]  ;;  %v2351_v25 = vld [vmem:[%s9328_s11 + $0x528] sm:$0xff] }
 0x847   : > { %6085 = vmatprep.subr.mxu0 %v2273_v61  ;;  %6120 = vmatprep.subr.mxu1 %v2305_v62  ;;  %v2376_v61 = vld [vmem:[%s9328_s11 + $0x5f0] sm:$0xff]  ;;  %v2337_v34 = vld [vmem:[%s9328_s11 + $0x4b8] sm:$0xff]  ;;  %v2318_v45 = vld [vmem:[%s9328_s11 + $0x420] sm:$0xff] }
 0x848   : > { %6086 = vmatpush3.msra.mxu0 %v2257_v63  ;;  %6121 = vmatpush3.msra.mxu1 %v2289_v2  ;;  %v2328_v62 = vld [vmem:[%s9328_s11 + $0x470] sm:$0xff]  ;;  %v2343_v2 = vld [vmem:[%s9328_s11 + $0x4e8] sm:$0xff]  ;;  %v2369_v35 = vld [vmem:[%s9328_s11 + $0x5b8] sm:$0xff] }
 0x849   : > { %6087 = vmatprep.subr.mxu0 %v2272_v3  ;;  %6122 = vmatprep.subr.mxu1 %v2304_v4  ;;  %v2360_v63 = vld [vmem:[%s9328_s11 + $0x570] sm:$0xff]  ;;  %v2375_v3 = vld [vmem:[%s9328_s11 + $0x5e8] sm:$0xff] }
 0x84a   : > { %6088 = vmatpush3.msra.mxu0 %v2256_v5  ;;  %6123 = vmatpush3.msra.mxu1 %v2288_v6  ;;  %v2327_v4 = vld [vmem:[%s9328_s11 + $0x468] sm:$0xff]  ;;  %v2342_v6 = vld [vmem:[%s9328_s11 + $0x4e0] sm:$0xff] }
 0x84b   : > { %6089 = vmatprep.subr.mxu0 %v2271_v7  ;;  %6124 = vmatprep.subr.mxu1 %v2303_v8  ;;  %v2359_v5 = vld [vmem:[%s9328_s11 + $0x568] sm:$0xff]  ;;  %v2374_v7 = vld [vmem:[%s9328_s11 + $0x5e0] sm:$0xff] }
 0x84c   : > { %6090 = vmatpush3.msra.mxu0 %v2255_v14  ;;  %6125 = vmatpush3.msra.mxu1 %v2287_v15  ;;  %v2326_v8 = vld [vmem:[%s9328_s11 + $0x460] sm:$0xff]  ;;  %v2341_v15 = vld [vmem:[%s9328_s11 + $0x4d8] sm:$0xff] }
 0x84d   : > { %6091 = vmatprep.subr.mxu0 %v2270_v16  ;;  %6126 = vmatprep.subr.mxu1 %v2302_v53  ;;  %v2358_v14 = vld [vmem:[%s9328_s11 + $0x560] sm:$0xff]  ;;  %v2373_v16 = vld [vmem:[%s9328_s11 + $0x5d8] sm:$0xff] }
 0x84e   : > { %6092 = vmatpush3.msra.mxu0 %v2254_v17  ;;  %6127 = vmatpush3.msra.mxu1 %v2286_v18  ;;  %v2325_v53 = vld [vmem:[%s9328_s11 + $0x458] sm:$0xff]  ;;  %v2340_v18 = vld [vmem:[%s9328_s11 + $0x4d0] sm:$0xff] }
 0x84f   : > { %6093 = vmatprep.subr.mxu0 %v2269_v20  ;;  %6128 = vmatprep.subr.mxu1 %v2301_v21  ;;  %v2357_v17 = vld [vmem:[%s9328_s11 + $0x558] sm:$0xff]  ;;  %v2372_v20 = vld [vmem:[%s9328_s11 + $0x5d0] sm:$0xff] }
 0x850   : > { %6094 = vmatpush3.msra.mxu0 %v2253_v27  ;;  %6129 = vmatpush3.msra.mxu1 %v2285_v28  ;;  %v2324_v21 = vld [vmem:[%s9328_s11 + $0x450] sm:$0xff]  ;;  %v2371_v27 = vld [vmem:[%s9328_s11 + $0x5c8] sm:$0xff] }
 0x851   : > { %6095 = vmatprep.subr.mxu0 %v2268_v56  ;;  %6130 = vmatprep.subr.mxu1 %v2300_v30  ;;  %v2323_v28 = vld [vmem:[%s9328_s11 + $0x448] sm:$0xff]  ;;  %v2338_v30 = vld [vmem:[%s9328_s11 + $0x4c0] sm:$0xff] }
 0x852   : > { %6096 = vmatpush3.msra.mxu0 %v2252_v32  ;;  %6131 = vmatpush3.msra.mxu1 %v2284_v33  ;;  %v2355_v56 = vld [vmem:[%s9328_s11 + $0x548] sm:$0xff]  ;;  %v2322_v32 = vld [vmem:[%s9328_s11 + $0x440] sm:$0xff] }
 0x853   : > { %6097 = vmatprep.subr.mxu0 %v2267_v36  ;;  %6132 = vmatprep.subr.mxu1 %v2299_v37  ;;  %v2354_v33 = vld [vmem:[%s9328_s11 + $0x540] sm:$0xff]  ;;  %v2321_v36 = vld [vmem:[%s9328_s11 + $0x438] sm:$0xff] }
 0x854   : > { %6098 = vmatpush3.msra.mxu0 %v2251_v40  ;;  %6133 = vmatpush3.msra.mxu1 %v2283_v41  ;;  %v2353_v37 = vld [vmem:[%s9328_s11 + $0x538] sm:$0xff]  ;;  %v2352_v40 = vld [vmem:[%s9328_s11 + $0x530] sm:$0xff]  ;;  %v2335_v41 = vld [vmem:[%s9328_s11 + $0x4a8] sm:$0xff] }
 0x855   : > { %6099 = vmatprep.subr.mxu0 %v2266_v42  ;;  %6134 = vmatprep.subr.mxu1 %v2298_v24  ;;  %v2367_v42 = vld [vmem:[%s9328_s11 + $0x5a8] sm:$0xff] }
 0x856   : > { %6100 = vmatpush3.msra.mxu0 %v2250_v43  ;;  %6135 = vmatpush3.msra.mxu1 %v2282_v44  ;;  %v2319_v24 = vld [vmem:[%s9328_s11 + $0x428] sm:$0xff]  ;;  %v2334_v43 = vld [vmem:[%s9328_s11 + $0x4a0] sm:$0xff] }
 0x857   : > { %2647 = vmatmul.mubr.f32.vlgmr.msra.gmra.mxu0 %v2174_v46  ;;  %2717 = vmatmul.mubr.f32.vlgmr.msra.gmra.mxu1 %v2176_v47  ;;  %v2366_v44 = vld [vmem:[%s9328_s11 + $0x5a0] sm:$0xff]  ;;  %v7852_v47 = vpop.f32.mrf.mxu0 }
 0x858   : > { %6139 = vmatprep.subr.mxu0 %v2345_v48  ;;  %6174 = vmatprep.subr.mxu1 %v2377_v49  ;;  %v2350_v46 = vld [vmem:[%s9328_s11 + $0x520] sm:$0xff]  ;;  %v2333_v48 = vld [vmem:[%s9328_s11 + $0x498] sm:$0xff] }
 0x859   : > { %6140 = vmatpush3.msra.mxu0 %v2329_v50  ;;  %2786 = vmatprep.mubr.f32.mxu0 %v2179_v51  ;;  %v2365_v49 = vld [vmem:[%s9328_s11 + $0x598] sm:$0xff]  ;;  %v1554_v50 = vrot.slane %v7664_v29, %v7459_v54  ;;  %v1562_v51 = vrot.slane %v7664_v29, %v7462_v55 }
 0x85a   : > { %6175 = vmatpush3.msra.mxu1 %v2361_v52  ;;  %2856 = vmatprep.mubr.f32.mxu1 %v2181_v59  ;;  %v7864_v52 = vpop.f32.mrf.mxu1  ;;  %v2317_v59 = vld [vmem:[%s9328_s11 + $0x418] sm:$0xff] }
 0x85b   : > { %6141 = vmatprep.subr.mxu0 %v2344_v60  ;;  %6176 = vmatprep.subr.mxu1 %v2376_v61  ;;  %v2349_v60 = vld [vmem:[%s9328_s11 + $0x518] sm:$0xff]  ;;  %v2332_v61 = vld [vmem:[%s9328_s11 + $0x490] sm:$0xff] }
 0x85c   : > { %6142 = vmatpush3.msra.mxu0 %v2328_v62  ;;  %6177 = vmatpush3.msra.mxu1 %v2360_v63  ;;  %v2364_v62 = vld [vmem:[%s9328_s11 + $0x590] sm:$0xff]  ;;  %v1574_v63 = vrot.slane %v7664_v29, %v7484_v9 }
 0x85d   : > { %6143 = vmatprep.subr.mxu0 %v2343_v2  ;;  %6178 = vmatprep.subr.mxu1 %v2375_v3  ;;  %v2316_v2 = vld [vmem:[%s9328_s11 + $0x410] sm:$0xff] }
 0x85e   : > { %6144 = vmatpush3.msra.mxu0 %v2327_v4  ;;  %6179 = vmatpush3.msra.mxu1 %v2359_v5  ;;  %v2348_v3 = vld [vmem:[%s9328_s11 + $0x510] sm:$0xff]  ;;  %v2096_v4 = vpop.f32.mrf.mxu0  ;;  %v1582_v5 = vrot.slane %v7664_v29, %v7487_v11 }
 0x85f   : > { %6145 = vmatprep.subr.mxu0 %v2342_v6  ;;  %6180 = vmatprep.subr.mxu1 %v2374_v7  ;;  %v2331_v6 = vld [vmem:[%s9328_s11 + $0x488] sm:$0xff] }
 0x860   : > { %6146 = vmatpush3.msra.mxu0 %v2326_v8  ;;  %6181 = vmatpush3.msra.mxu1 %v2358_v14  ;;  %v2363_v7 = vld [vmem:[%s9328_s11 + $0x588] sm:$0xff]  ;;  %v1953_v8 = vadd.f32 %v7641_v19, %v1554_v50  ;;  %v2024_v14 = vadd.f32 %v7653_v26, %v1562_v51  ;;  %v2362_v19 = vld [vmem:[%s9328_s11 + $0x580] sm:$0xff]  ;;  %v2097_v26 = vadd.f32 %v2096_v4, %v1574_v63  ;;  %v2420_v50 = vld [vmem:[%s9328_s11 + $0x750] sm:$0xff] }
 0x861   : > { %6147 = vmatprep.subr.mxu0 %v2341_v15  ;;  %6182 = vmatprep.subr.mxu1 %v2373_v16  ;;  %v2167_v15 = vpop.f32.mrf.mxu1  ;;  %v2315_v16 = vld [vmem:[%s9328_s11 + $0x408] sm:$0xff]  ;;  %v2434_v63 = vld [vmem:[%s9328_s11 + $0x7c0] sm:$0xff]  ;;  %v2401_v4 = vld [vmem:[%s9328_s11 + $0x6b8] sm:$0xff] }
 0x862   : > { %6148 = vmatpush3.msra.mxu0 %v2325_v53  ;;  %6183 = vmatpush3.msra.mxu1 %v2357_v17  ;;  %v2347_v53 = vld [vmem:[%s9328_s11 + $0x508] sm:$0xff]  ;;  %v2330_v17 = vld [vmem:[%s9328_s11 + $0x480] sm:$0xff] }
 0x863   : > { %6149 = vmatprep.subr.mxu0 %v2340_v18  ;;  %6184 = vmatprep.subr.mxu1 %v2372_v20  ;;  %v2314_v18 = vld [vmem:[%s9328_s11 + $0x400] sm:$0xff]  ;;  %v2403_v51 = vld [vmem:[%s9328_s11 + $0x6c8] sm:$0xff] }
 0x864   : > { %6150 = vmatpush3.msra.mxu0 %v2324_v21  ;;  %6185 = vmatpush3.msra.mxu1 %v2356_v22  ;;  %v2346_v20 = vld [vmem:[%s9328_s11 + $0x500] sm:$0xff]  ;;  %v2168_v21 = vadd.f32 %v2167_v15, %v1582_v5  ;;  %v2178_v22 = vmax.f32 %v1953_v8, 0.0  ;;  %v2433_v5 = vld [vmem:[%s9328_s11 + $0x7b8] sm:$0xff]  ;;  %v2400_v8 = vld [vmem:[%s9328_s11 + $0x6b0] sm:$0xff] }
 0x865   : > { %6151 = vmatprep.subr.mxu0 %v2339_v23  ;;  %6186 = vmatprep.subr.mxu1 %v2371_v27  ;;  %v2180_v23 = vmax.f32 %v2024_v14, 0.0  ;;  %v2409_v27 = vld [vmem:[%s9328_s11 + $0x6f8] sm:$0xff]  ;;  %v2432_v14 = vld [vmem:[%s9328_s11 + $0x7b0] sm:$0xff] }
 0x866   : > { %6152 = vmatpush3.msra.mxu0 %v2323_v28  ;;  %6187 = vmatpush3.msra.mxu1 %v2355_v56  ;;  %v2441_v28 = vld [vmem:[%s9328_s11 + $0x7f8] sm:$0xff]  ;;  %v2384_v15 = vld [vmem:[%s9328_s11 + $0x630] sm:$0xff] }
 0x867   : > { %6153 = vmatprep.subr.mxu0 %v2338_v30  ;;  %6188 = vmatprep.subr.mxu1 %v2370_v31  ;;  %v2393_v56 = vld [vmem:[%s9328_s11 + $0x678] sm:$0xff]  ;;  %v2183_v30 = vmax.f32 %v2097_v26, 0.0  ;;  %v2415_v26 = vld [vmem:[%s9328_s11 + $0x728] sm:$0xff] }
 0x868   : > { %6154 = vmatpush3.msra.mxu0 %v2322_v32  ;;  %6189 = vmatpush3.msra.mxu1 %v2354_v33  ;;  %v2425_v31 = vld [vmem:[%s9328_s11 + $0x778] sm:$0xff]  ;;  %v2185_v32 = vmax.f32 %v2168_v21, 0.0  ;;  %v2408_v33 = vld [vmem:[%s9328_s11 + $0x6f0] sm:$0xff]  ;;  %v2382_v21 = vld [vmem:[%s9328_s11 + $0x620] sm:$0xff] }
 0x869   : > { %6155 = vmatprep.subr.mxu0 %v2337_v34  ;;  %6190 = vmatprep.subr.mxu1 %v2369_v35  ;;  %v2440_v34 = vld [vmem:[%s9328_s11 + $0x7f0] sm:$0xff] }
 0x86a   : > { %6156 = vmatpush3.msra.mxu0 %v2321_v36  ;;  %6191 = vmatpush3.msra.mxu1 %v2353_v37  ;;  %v2392_v35 = vld [vmem:[%s9328_s11 + $0x670] sm:$0xff]  ;;  %v2407_v37 = vld [vmem:[%s9328_s11 + $0x6e8] sm:$0xff] }
 0x86b   : > { %6157 = vmatprep.subr.mxu0 %v2336_v38  ;;  %6192 = vmatprep.subr.mxu1 %v2368_v39  ;;  %v2424_v36 = vld [vmem:[%s9328_s11 + $0x770] sm:$0xff]  ;;  %v2439_v38 = vld [vmem:[%s9328_s11 + $0x7e8] sm:$0xff] }
 0x86c   : > { %6158 = vmatpush3.msra.mxu0 %v2320_v10  ;;  %6193 = vmatpush3.msra.mxu1 %v2352_v40  ;;  %v2391_v39 = vld [vmem:[%s9328_s11 + $0x668] sm:$0xff]  ;;  %v2406_v40 = vld [vmem:[%s9328_s11 + $0x6e0] sm:$0xff] }
 0x86d   : > { %6159 = vmatprep.subr.mxu0 %v2335_v41  ;;  %6194 = vmatprep.subr.mxu1 %v2367_v42  ;;  %v2423_v10 = vld [vmem:[%s9328_s11 + $0x768] sm:$0xff]  ;;  %v2438_v41 = vld [vmem:[%s9328_s11 + $0x7e0] sm:$0xff] }
 0x86e   : > { %6160 = vmatpush3.msra.mxu0 %v2319_v24  ;;  %6195 = vmatpush3.msra.mxu1 %v2351_v25  ;;  %v2390_v42 = vld [vmem:[%s9328_s11 + $0x660] sm:$0xff]  ;;  %v2405_v25 = vld [vmem:[%s9328_s11 + $0x6d8] sm:$0xff] }
 0x86f   : > { %6161 = vmatprep.subr.mxu0 %v2334_v43  ;;  %6196 = vmatprep.subr.mxu1 %v2366_v44  ;;  %v2422_v24 = vld [vmem:[%s9328_s11 + $0x760] sm:$0xff]  ;;  %v2437_v43 = vld [vmem:[%s9328_s11 + $0x7d8] sm:$0xff] }
 0x870   : > { %6162 = vmatpush3.msra.mxu0 %v2318_v45  ;;  %6197 = vmatpush3.msra.mxu1 %v2350_v46  ;;  %v2389_v44 = vld [vmem:[%s9328_s11 + $0x658] sm:$0xff]  ;;  %v2404_v46 = vld [vmem:[%s9328_s11 + $0x6d0] sm:$0xff] }
 0x871   : > { %6163 = vmatprep.subr.mxu0 %v2333_v48  ;;  %6198 = vmatprep.subr.mxu1 %v2365_v49  ;;  %v2421_v45 = vld [vmem:[%s9328_s11 + $0x758] sm:$0xff]  ;;  %v2436_v48 = vld [vmem:[%s9328_s11 + $0x7d0] sm:$0xff] }
 0x872   : > { %6164 = vmatpush3.msra.mxu0 %v2317_v59  ;;  %6199 = vmatpush3.msra.mxu1 %v2349_v60  ;;  %v2388_v49 = vld [vmem:[%s9328_s11 + $0x650] sm:$0xff]  ;;  %v2435_v59 = vld [vmem:[%s9328_s11 + $0x7c8] sm:$0xff] }
 0x873   : > { %6165 = vmatprep.subr.mxu0 %v2332_v61  ;;  %6200 = vmatprep.subr.mxu1 %v2364_v62  ;;  %v2387_v60 = vld [vmem:[%s9328_s11 + $0x648] sm:$0xff]  ;;  %v2402_v62 = vld [vmem:[%s9328_s11 + $0x6c0] sm:$0xff] }
 0x874   : > { %6166 = vmatpush3.msra.mxu0 %v2316_v2  ;;  %6201 = vmatpush3.msra.mxu1 %v2348_v3  ;;  %v2419_v61 = vld [vmem:[%s9328_s11 + $0x748] sm:$0xff]  ;;  %v2386_v2 = vld [vmem:[%s9328_s11 + $0x640] sm:$0xff] }
 0x875   : > { %6167 = vmatprep.subr.mxu0 %v2331_v6  ;;  %6202 = vmatprep.subr.mxu1 %v2363_v7  ;;  %v2418_v3 = vld [vmem:[%s9328_s11 + $0x740] sm:$0xff]  ;;  %v2385_v6 = vld [vmem:[%s9328_s11 + $0x638] sm:$0xff] }
 0x876   : > { %6168 = vmatpush3.msra.mxu0 %v2315_v16  ;;  %6203 = vmatpush3.msra.mxu1 %v2347_v53  ;;  %v2417_v7 = vld [vmem:[%s9328_s11 + $0x738] sm:$0xff]  ;;  %v2416_v16 = vld [vmem:[%s9328_s11 + $0x730] sm:$0xff]  ;;  %v2399_v53 = vld [vmem:[%s9328_s11 + $0x6a8] sm:$0xff] }
 0x877   : > { %6169 = vmatprep.subr.mxu0 %v2330_v17  ;;  %6204 = vmatprep.subr.mxu1 %v2362_v19  ;;  %v2431_v17 = vld [vmem:[%s9328_s11 + $0x7a8] sm:$0xff] }
 0x878   : > { %6170 = vmatpush3.msra.mxu0 %v2314_v18  ;;  %6205 = vmatpush3.msra.mxu1 %v2346_v20  ;;  %v2383_v19 = vld [vmem:[%s9328_s11 + $0x628] sm:$0xff]  ;;  %v2398_v18 = vld [vmem:[%s9328_s11 + $0x6a0] sm:$0xff] }
 0x879   : > { %2787 = vmatmul.mubr.f32.vlgmr.msra.gmra.mxu0 %v2178_v22  ;;  %2857 = vmatmul.mubr.f32.vlgmr.msra.gmra.mxu1 %v2180_v23  ;;  %v2430_v20 = vld [vmem:[%s9328_s11 + $0x7a0] sm:$0xff]  ;;  %v2397_v23 = vld [vmem:[%s9328_s11 + $0x698] sm:$0xff] }
 0x87a   : > { %6209 = vmatprep.subr.mxu0 %v2409_v27  ;;  %6244 = vmatprep.subr.mxu1 %v2441_v28  ;;  %v2414_v22 = vld [vmem:[%s9328_s11 + $0x720] sm:$0xff]  ;;  %v2429_v27 = vld [vmem:[%s9328_s11 + $0x798] sm:$0xff]  ;;  %v1570_v28 = vrot.slane %v7664_v29, %v7618_v12 }
 0x87b   : > { %6210 = vmatpush3.msra.mxu0 %v2393_v56  ;;  %2926 = vmatprep.mubr.f32.mxu0 %v2183_v30  ;;  %v1578_v56 = vrot.slane %v7664_v29, %v7621_v13  ;;  %v2381_v30 = vld [vmem:[%s9328_s11 + $0x618] sm:$0xff]  ;;  %v2428_v29 = vld [vmem:[%s9328_s11 + $0x790] sm:$0xff] }
 0x87c   : > { %6245 = vmatpush3.msra.mxu1 %v2425_v31  ;;  %2996 = vmatprep.mubr.f32.mxu1 %v2185_v32  ;;  %v2413_v31 = vld [vmem:[%s9328_s11 + $0x718] sm:$0xff]  ;;  %v2396_v32 = vld [vmem:[%s9328_s11 + $0x690] sm:$0xff] }
 0x87d   : > { %6211 = vmatprep.subr.mxu0 %v2408_v33  ;;  %6246 = vmatprep.subr.mxu1 %v2440_v34  ;;  %v2380_v33 = vld [vmem:[%s9328_s11 + $0x610] sm:$0xff] }
 0x87e   : > { %6212 = vmatpush3.msra.mxu0 %v2392_v35  ;;  %6247 = vmatpush3.msra.mxu1 %v2424_v36  ;;  %v2412_v34 = vld [vmem:[%s9328_s11 + $0x710] sm:$0xff]  ;;  %v2395_v35 = vld [vmem:[%s9328_s11 + $0x688] sm:$0xff] }
 0x87f   : > { %6213 = vmatprep.subr.mxu0 %v2407_v37  ;;  %6248 = vmatprep.subr.mxu1 %v2439_v38  ;;  %v2427_v36 = vld [vmem:[%s9328_s11 + $0x788] sm:$0xff]  ;;  %v2095_v37 = vadd.f32 %v7852_v47, %v1570_v28  ;;  %v2166_v38 = vadd.f32 %v7864_v52, %v1578_v56  ;;  %v2426_v47 = vld [vmem:[%s9328_s11 + $0x780] sm:$0xff] }
 0x880   : > { %6214 = vmatpush3.msra.mxu0 %v2391_v39  ;;  %6249 = vmatpush3.msra.mxu1 %v2423_v10  ;;  %v2379_v39 = vld [vmem:[%s9328_s11 + $0x608] sm:$0xff]  ;;  %v2378_v52 = vld [vmem:[%s9328_s11 + $0x600] sm:$0xff] }
 0x881   : > { %6215 = vmatprep.subr.mxu0 %v2406_v40  ;;  %6250 = vmatprep.subr.mxu1 %v2438_v41  ;;  %v2411_v10 = vld [vmem:[%s9328_s11 + $0x708] sm:$0xff]  ;;  %v2394_v40 = vld [vmem:[%s9328_s11 + $0x680] sm:$0xff] }
 0x882   : > { %6216 = vmatpush3.msra.mxu0 %v2390_v42  ;;  %6251 = vmatpush3.msra.mxu1 %v2422_v24  ;;  %v2410_v41 = vld [vmem:[%s9328_s11 + $0x700] sm:$0xff]  ;;  %v2182_v42 = vmax.f32 %v2095_v37, 0.0  ;;  %v2184_v24 = vmax.f32 %v2166_v38, 0.0 }
 0x883   : > { %6217 = vmatprep.subr.mxu0 %v2405_v25  ;;  %6252 = vmatprep.subr.mxu1 %v2437_v43 }
 0x884   : > { %6218 = vmatpush3.msra.mxu0 %v2389_v44  ;;  %6253 = vmatpush3.msra.mxu1 %v2421_v45 }
 0x885   : > { %6219 = vmatprep.subr.mxu0 %v2404_v46  ;;  %6254 = vmatprep.subr.mxu1 %v2436_v48 }
 0x886   : > { %6220 = vmatpush3.msra.mxu0 %v2388_v49  ;;  %6255 = vmatpush3.msra.mxu1 %v2420_v50 }
 0x887   : > { %6221 = vmatprep.subr.mxu0 %v2403_v51  ;;  %6256 = vmatprep.subr.mxu1 %v2435_v59 }
 0x888   : > { %6222 = vmatpush3.msra.mxu0 %v2387_v60  ;;  %6257 = vmatpush3.msra.mxu1 %v2419_v61 }
 0x889   : > { %6223 = vmatprep.subr.mxu0 %v2402_v62  ;;  %6258 = vmatprep.subr.mxu1 %v2434_v63 }
 0x88a   : > { %6224 = vmatpush3.msra.mxu0 %v2386_v2  ;;  %6259 = vmatpush3.msra.mxu1 %v2418_v3 }
 0x88b   : > { %6225 = vmatprep.subr.mxu0 %v2401_v4  ;;  %6260 = vmatprep.subr.mxu1 %v2433_v5 }
 0x88c   : > { %6226 = vmatpush3.msra.mxu0 %v2385_v6  ;;  %6261 = vmatpush3.msra.mxu1 %v2417_v7 }
 0x88d   : > { %6227 = vmatprep.subr.mxu0 %v2400_v8  ;;  %6262 = vmatprep.subr.mxu1 %v2432_v14 }
 0x88e   : > { %6228 = vmatpush3.msra.mxu0 %v2384_v15  ;;  %6263 = vmatpush3.msra.mxu1 %v2416_v16 }
 0x88f   : > { %6229 = vmatprep.subr.mxu0 %v2399_v53  ;;  %6264 = vmatprep.subr.mxu1 %v2431_v17 }
 0x890   : > { %6230 = vmatpush3.msra.mxu0 %v2383_v19  ;;  %6265 = vmatpush3.msra.mxu1 %v2415_v26 }
 0x891   : > { %6231 = vmatprep.subr.mxu0 %v2398_v18  ;;  %6266 = vmatprep.subr.mxu1 %v2430_v20 }
 0x892   : > { %6232 = vmatpush3.msra.mxu0 %v2382_v21  ;;  %6267 = vmatpush3.msra.mxu1 %v2414_v22  ;;  %v5599_v22 = vld [vmem:[%s9329_s12] ss:$0 sm:$0xff] }
 0x893   : > { %6233 = vmatprep.subr.mxu0 %v2397_v23  ;;  %6268 = vmatprep.subr.mxu1 %v2429_v27 }
 0x894   : > { %6234 = vmatpush3.msra.mxu0 %v2381_v30  ;;  %6269 = vmatpush3.msra.mxu1 %v2413_v31 }
 0x895   : > { %6235 = vmatprep.subr.mxu0 %v2396_v32  ;;  %6270 = vmatprep.subr.mxu1 %v2428_v29 }
 0x896   : > { %6236 = vmatpush3.msra.mxu0 %v2380_v33  ;;  %6271 = vmatpush3.msra.mxu1 %v2412_v34  ;;  %v5605_v33 = vld [vmem:[%s9320_s3 + $0x38] sm:$0xff]  ;;  %v5603_v34 = vld [vmem:[%s9320_s3 + $0x28] sm:$0xff] }
 0x897   : > { %6237 = vmatprep.subr.mxu0 %v2395_v35  ;;  %6272 = vmatprep.subr.mxu1 %v2427_v36  ;;  %v5602_v35 = vld [vmem:[%s9320_s3 + $0x20] sm:$0xff] }
 0x898   : > { %6238 = vmatpush3.msra.mxu0 %v2379_v39  ;;  %6273 = vmatpush3.msra.mxu1 %v2411_v10  ;;  %v5600_v10 = vld [vmem:[%s9330_s13] ss:$0 sm:$0xff] }
 0x899   : > { %6239 = vmatprep.subr.mxu0 %v2394_v40  ;;  %6274 = vmatprep.subr.mxu1 %v2426_v47  ;;  %v5601_v47 = vld [vmem:[%s9331_s14] ss:$0 sm:$0xff] }
 0x89a   : > { %6240 = vmatpush3.msra.mxu0 %v2378_v52  ;;  %6275 = vmatpush3.msra.mxu1 %v2410_v41 }
 0x89b   : > { %2927 = vmatmul.mubr.f32.vlgmr.msra.gmra.mxu0 %v2182_v42  ;;  %2997 = vmatmul.mubr.f32.vlgmr.msra.gmra.mxu1 %v2184_v24  ;;  %v5607_v42 = vld [vmem:[%s9321_s4 + $0x1] ss:$0 sm:$0xff] }
 0x89c   : > { %6654 = vmatprep.subr.mxu0 %v6788_v1  ;;  %6662 = vmatprep.mubr.msk.f32.mxu0 %vm6789_vm0, %v6788_v1 }
 0x89d   : > { %6665 = vmatprep.subr.mxu1 %v6788_v1  ;;  %6667 = vmatprep.mubr.msk.f32.mxu1 %vm6789_vm0, %v6788_v1 }
 0x89e   : > { %6655 = vmatpush3.msra.mxu0 %v5605_v33 }
 0x89f   : > { %6656 = vmatprep.subr.mxu0 %v6788_v1 }
 0x8f6   : > { %v6031_v25 = vpop.f32.mrf.mxu0  ;;  %v6066_v43 = vpop.f32.mrf.mxu1 }
 0x8f8   : > { %v6032_v44 = vpop.f32.mrf.mxu0  ;;  %v6067_v46 = vpop.f32.mrf.mxu1 }
 0x8f9   : > { %v6033_v49 = vadd.f32 %v6032_v44, %v6031_v25  ;;  %v6068_v50 = vadd.f32 %v6067_v46, %v6066_v43 }
 0x8fb   : > { %v2579_v61 = vadd.f32 %v6068_v50, %v6033_v49 }
 0x917   : > { %v6101_v45 = vpop.f32.mrf.mxu0  ;;  %v6136_v51 = vpop.f32.mrf.mxu1 }
 0x919   : > { %v6102_v48 = vpop.f32.mrf.mxu0  ;;  %v6137_v62 = vpop.f32.mrf.mxu1 }
 0x91a   : > { %v6103_v60 = vadd.f32 %v6102_v48, %v6101_v45  ;;  %v6138_v4 = vadd.f32 %v6137_v62, %v6136_v51 }
 0x91c   : > { %v2649_v2 = vadd.f32 %v6103_v60, %v2579_v61 }
 0x91e   : > { %v2719_v6 = vadd.f32 %v6138_v4, %v2649_v2 }
 0x939   : > { %v6171_v59 = vpop.f32.mrf.mxu0  ;;  %v6206_v3 = vpop.f32.mrf.mxu1 }
 0x93b   : > { %v6172_v63 = vpop.f32.mrf.mxu0  ;;  %v6207_v7 = vpop.f32.mrf.mxu1 }
 0x93c   : > { %v6173_v5 = vadd.f32 %v6172_v63, %v6171_v59  ;;  %v6208_v16 = vadd.f32 %v6207_v7, %v6206_v3 }
 0x93e   : > { %v2789_v8 = vadd.f32 %v6173_v5, %v2719_v6 }
 0x940   : > { %v2859_v19 = vadd.f32 %v6208_v16, %v2789_v8 }
 0x95b   : > { %v6241_v14 = vpop.f32.mrf.mxu0  ;;  %v6276_v15 = vpop.f32.mrf.mxu1 }
 0x95d   : > { %v6242_v53 = vpop.f32.mrf.mxu0  ;;  %v6277_v17 = vpop.f32.mrf.mxu1 }
 0x95e   : > { %v6243_v26 = vadd.f32 %v6242_v53, %v6241_v14  ;;  %v6278_v20 = vadd.f32 %v6277_v17, %v6276_v15 }
 0x960   : > { %v2929_v18 = vadd.f32 %v6243_v26, %v2859_v19 }
 0x962   : > { %v2999_v21 = vadd.f32 %v6278_v20, %v2929_v18 }
 0x964   : > { %v3002_v23 = vadd.f32 %v2999_v21, %v7096_v0  ;;  %v5604_v0 = vld [vmem:[%s9320_s3 + $0x30] sm:$0xff] }
 0x965   : > { %6657 = vmatpush3.msra.mxu0 %v5604_v0 }
 0x966   : > { %v3010_v27 = vadd.f32 %v5599_v22, %v3002_v23  ;;  %6658 = vmatprep.subr.mxu0 %v6788_v1 }
 0x967   : > { %6659 = vmatpush3.msra.mxu0 %v5603_v34 }
 0x968   : > { %v3011_v28 = vsel %vm583_vm2, %v3010_v27, 0.0  ;;  %6660 = vmatprep.subr.mxu0 %v6788_v1 }
 0x969   : > { %3012 = vadd.xlane.f32.xlu0 %v3011_v28  ;;  %6661 = vmatpush3.msra.mxu0 %v5602_v35 }
 0x96a   : > { %6670 = vmatprep.subr.mxu0 %v6788_v1 }
 0x9f2   : > { %v3013_v56 = vpop.xlane.xlu0 %3012 }
 0x9f3   : > { %v3014_v30 = vmul.f32 0.03125, %v3013_v56 }
 0x9f5   : > { %v3015_v31 = vsub.f32 %v3010_v27, %v3014_v30 }
 0x9f7   : > { %v3016_v32 = vmul.f32 %v3015_v31, %v3015_v31 }
 0x9f9   : > { %v3017_v29 = vsel %vm583_vm2, %v3016_v32, 0.0 }
 0x9fa   : > { %3018 = vadd.xlane.f32.xlu0 %v3017_v29 }
 0xa83   : > { %v3019_v36 = vpop.xlane.xlu0 %3018 }
 0xa84   : > { %v3020_v37 = vmul.f32 0.03125, %v3019_v36 }
 0xa86   : > { %v3021_v38 = vadd.f32 1e-05, %v3020_v37 }
 0xa88   : > { %6758 = vrsqrt.f32 %v3021_v38 }
 0xa95   : > { %v6759_v39 = vpop.eup %6758 }
 0xa96   : > { %v3023_v40 = vmul.f32 %v6759_v39, %v3015_v31 }
 0xa98   : > { %v3031_v52 = vmul.f32 %v5600_v10, %v3023_v40 }
 0xa9a   : > { %v8146_v41 = vadd.f32 %v5601_v47, %v3031_v52 }
 0xa9c   : > { %6663 = vmatmul.mubr.msk.f32.vlgmr.msra.gmra.mxu0 %vm583_vm2, %v8146_v41 }
 0xa9d   : > { %6672 = vmatprep.mubr.msk.f32.mxu0 %vm6789_vm0, %v6788_v1 }
 0xb5c   : > { %v3122_v24 = vpop.f32.mrf.mxu0 }
 0xb5d   : > { %v8155_v25 = vadd.f32 %v5607_v42, %v3122_v24 }
 0xb5e   : > { %v6664_v43 = vpop.f32.mrf.mxu0 }
 0xb5f   : > { %3294 = vrot.lane.b32.xlu0 %v8155_v25, %s6792_s29  ;;  %3128 = vrot.lane.b32.xlu1 %v8155_v25, %s6790_s27  ;;  %v3126_v44 = vmul.f32 0.35355338, %v8155_v25  ;;  %s9348_s27 = smov 56   ;;  %s9349_s29 = smov 64  }
 0xb63   : > { %3457 = vrot.lane.b32.xlu0 %v3126_v44, %s6794_s16  ;;  %3292 = vrot.lane.b32.xlu1 %v3126_v44, %s9344_s22  ;;  %s9350_s16 = smov 48  }
 0xb67   : > { %3622 = vrot.lane.b32.xlu0 %v3126_v44, %s9345_s21  ;;  %3459 = vrot.lane.b32.xlu1 %v8155_v25, %s9346_s30  ;;  %s487_s21 = scalar_lea.vmem %s9332_s15, %s9356_s19 }
 0xb6b   : > { %3624 = vrot.lane.b32.xlu1 %v8155_v25, %s9347_s24 }
 0xbd1   : > { %v3129_v45 = vpop.permute.xlu1 %3128  ;;  %v3295_v46 = vpop.permute.xlu0 %3294 }
 0xbd2   : > { %6666 = vmatpush3.xpose.msk.msra.mxu1 %vm661_vm3, %v3129_v45 }
 0xbd3   : > { %6675 = vmatprep.subr.mxu1 %v6788_v1 }
 0xbd5   : > { %v3293_v48 = vpop.permute.xlu1 %3292  ;;  %6668 = vmatmul.mubr.msk.f32.vlgmr.msra.gmra.mxu1 %vm661_vm3, %v3126_v44  ;;  %v3458_v50 = vpop.permute.xlu0 %3457 }
 0xbd6   : > { %6676 = vmatpush3.xpose.msk.msra.mxu1 %vm661_vm3, %v3295_v46  ;;  %6677 = vmatprep.mubr.msk.f32.mxu1 %vm6789_vm0, %v6788_v1  ;;  %v5624_v46 = vld [vmem:[%s9322_s5 + $0x38] sm:$0xff] }
 0xbd7   : > { %6685 = vmatprep.subr.mxu1 %v6788_v1 }
 0xbd9   : > { %v3460_v49 = vpop.permute.xlu1 %3459  ;;  %6678 = vmatmul.mubr.msk.f32.vlgmr.msra.gmra.mxu1 %vm661_vm3, %v3293_v48  ;;  %v3623_v59 = vpop.permute.xlu0 %3622 }
 0xbda   : > { %6686 = vmatpush3.xpose.msk.msra.mxu1 %vm661_vm3, %v3460_v49  ;;  %6687 = vmatprep.mubr.msk.f32.mxu1 %vm6789_vm0, %v6788_v1 }
 0xbdb   : > { %6695 = vmatprep.subr.mxu1 %v6788_v1 }
 0xbdd   : > { %v3625_v51 = vpop.permute.xlu1 %3624  ;;  %6688 = vmatmul.mubr.msk.f32.vlgmr.msra.gmra.mxu1 %vm661_vm3, %v3458_v50 }
 0xbde   : > { %6696 = vmatpush3.xpose.msk.msra.mxu1 %vm661_vm3, %v3625_v51  ;;  %6697 = vmatprep.mubr.msk.f32.mxu1 %vm6789_vm0, %v6788_v1 }
 0xbdf   : > { %6705 = vmatprep.subr.mxu1 %v6788_v1 }
 0xbe1   : > { %6698 = vmatmul.mubr.msk.f32.vlgmr.msra.gmra.mxu1 %vm661_vm3, %v3623_v59  ;;  %v5623_v59 = vld [vmem:[%s9322_s5 + $0x30] sm:$0xff] }
 0xbe2   : > { %6713 = vmatprep.mubr.msk.f32.mxu1 %vm6789_vm0, %v6788_v1  ;;  %6706 = vmatpush3.msra.mxu1 %v5624_v46 }
 0xbe3   : > { %6707 = vmatprep.subr.mxu1 %v6788_v1 }
 0xbe4   : > { %6708 = vmatpush3.msra.mxu1 %v5623_v59  ;;  %v5668_v59 = vld [vmem:[%s9326_s9 + $0x320] sm:$0xff] }
 0xbe5   : > { %6709 = vmatprep.subr.mxu1 %v6788_v1 }
 0xc95   : > { %v3201_v60 = vpop.f32.mrf.mxu1 }
 0xc96   : > { %v3205_v61 = vsel %vm661_vm3, %v3201_v60, -inf }
 0xc97   : > { %3206 = vmax.xlane.f32.xlu1 %v3205_v61  ;;  %v6669_v62 = vpop.f32.mrf.mxu1  ;;  %v5621_v61 = vld [vmem:[%s9322_s5 + $0x20] sm:$0xff] }
 0xc99   : > { %v3366_v63 = vpop.f32.mrf.mxu1 }
 0xc9a   : > { %v3370_v2 = vsel %vm661_vm3, %v3366_v63, -inf }
 0xc9b   : > { %3371 = vmax.xlane.f32.xlu0 %v3370_v2  ;;  %v6679_v3 = vpop.f32.mrf.mxu1 }
 0xc9d   : > { %v3531_v4 = vpop.f32.mrf.mxu1 }
 0xc9e   : > { %v3535_v5 = vsel %vm661_vm3, %v3531_v4, -inf }
 0xc9f   : > { %3536 = vmax.xlane.f32.xlu0 %v3535_v5  ;;  %v6689_v6 = vpop.f32.mrf.mxu1 }
 0xca1   : > { %v3696_v7 = vpop.f32.mrf.mxu1 }
 0xca2   : > { %v3700_v8 = vsel %vm661_vm3, %v3696_v7, -inf }
 0xca3   : > { %3701 = vmax.xlane.f32.xlu1 %v3700_v8  ;;  %v6699_v14 = vpop.f32.mrf.mxu1 }
 0xcb4   : > { %3381 = vrot.lane.b32.xlu1 %v8155_v25, %s9348_s27  ;;  %s9353_s27 = smov 16  }
 0xd20   : > { %v3207_v15 = vpop.xlane.xlu1 %3206 }
 0xd21   : > { %v3208_v16 = vsub.f32 %v3201_v60, %v3207_v15  ;;  %v5622_v60 = vld [vmem:[%s9322_s5 + $0x28] sm:$0xff] }
 0xd22   : > { %6710 = vmatpush3.msra.mxu1 %v5622_v60  ;;  %v5670_v60 = vld [vmem:[%s9326_s9 + $0x330] sm:$0xff] }
 0xd23   : > { %v3209_v53 = vmul.f32 1.442695, %v3208_v16  ;;  %6711 = vmatprep.subr.mxu1 %v6788_v1  ;;  %v5627_v16 = vld [vmem:[%s9323_s6 + $0x1] ss:$0 sm:$0xff] }
 0xd24   : > { %v3372_v17 = vpop.xlane.xlu0 %3371  ;;  %6712 = vmatpush3.msra.mxu1 %v5621_v61  ;;  %v5653_v61 = vld [vmem:[%s9326_s9 + $0x2a8] sm:$0xff] }
 0xd25   : > { %6760 = vpow2.f32 %v3209_v53  ;;  %v3373_v19 = vsub.f32 %v3366_v63, %v3372_v17 }
 0xd27   : > { %v3374_v26 = vmul.f32 1.442695, %v3373_v19 }
 0xd28   : > { %v3537_v31 = vpop.xlane.xlu0 %3536 }
 0xd29   : > { %6762 = vpow2.f32 %v3374_v26  ;;  %v3538_v32 = vsub.f32 %v3531_v4, %v3537_v31  ;;  %v5667_v31 = vld [vmem:[%s9326_s9 + $0x318] sm:$0xff] }
 0xd2b   : > { %v3539_v29 = vmul.f32 1.442695, %v3538_v32  ;;  %v5664_v32 = vld [vmem:[%s9326_s9 + $0x300] sm:$0xff] }
 0xd2c   : > { %v3702_v18 = vpop.xlane.xlu1 %3701 }
 0xd2d   : > { %v3703_v20 = vsub.f32 %v3696_v7, %v3702_v18 }
 0xd2f   : > { %v3704_v21 = vmul.f32 1.442695, %v3703_v20 }
 0xd30   : > { %v3382_v34 = vpop.permute.xlu1 %3381 }
 0xd31   : > { %6764 = vpow2.f32 %v3704_v21 }
 0xd32   : > { %v6761_v22 = vpop.eup %6760  ;;  %6766 = vpow2.f32 %v3539_v29  ;;  %v5666_v29 = vld [vmem:[%s9326_s9 + $0x310] sm:$0xff] }
 0xd33   : > { %v3211_v23 = vsel %vm661_vm3, %v6761_v22, 0.0 }
 0xd34   : > { %3212 = vadd.xlane.f32.xlu0 %v3211_v23 }
 0xd36   : > { %v6763_v27 = vpop.eup %6762 }
 0xd37   : > { %v3376_v28 = vsel %vm661_vm3, %v6763_v27, 0.0 }
 0xd38   : > { %3377 = vadd.xlane.f32.xlu1 %v3376_v28  ;;  %v5680_v28 = vld [vmem:[%s9326_s9 + $0x380] sm:$0xff] }
 0xd3e   : > { %v6765_v56 = vpop.eup %6764 }
 0xd3f   : > { %v3706_v30 = vsel %vm661_vm3, %v6765_v56, 0.0  ;;  %v6767_v33 = vpop.eup %6766 }
 0xd40   : > { %3707 = vadd.xlane.f32.xlu1 %v3706_v30  ;;  %v3541_v0 = vsel %vm661_vm3, %v6767_v33, 0.0  ;;  %v5665_v30 = vld [vmem:[%s9326_s9 + $0x308] sm:$0xff] }
 0xd4a   : > { %3216 = vrot.lane.b32.xlu0 %v8155_v25, %s9349_s29  ;;  %s9354_s29 = smov 24  }
 0xd51   : > { %3546 = vrot.lane.b32.xlu1 %v8155_v25, %s9350_s16 }
 0xd69   : > { %3542 = vadd.xlane.f32.xlu0 %v3541_v0  ;;  %v5651_v0 = vld [vmem:[%s9326_s9 + $0x298] sm:$0xff] }
 0xd7f   : > { %3711 = vrot.lane.b32.xlu0 %v8155_v25, %s9351_s28 }
 0xdbd   : > { %v3213_v35 = vpop.xlane.xlu0 %3212 }
 0xdbe   : > { %6768 = vrcp.f32 %v3213_v35  ;;  %v5650_v35 = vld [vmem:[%s9326_s9 + $0x290] sm:$0xff] }
 0xdc1   : > { %v3217_v36 = vpop.permute.xlu0 %3216  ;;  %v3378_v37 = vpop.xlane.xlu1 %3377 }
 0xdc2   : > { %6770 = vrcp.f32 %v3378_v37  ;;  %6671 = vmatpush3.msra.mxu0 %v3217_v36  ;;  %v5633_v36 = vld [vmem:[%s9326_s9 + $0x208] sm:$0xff]  ;;  %v5635_v37 = vld [vmem:[%s9326_s9 + $0x218] sm:$0xff] }
 0xdc3   : > { %6680 = vmatprep.subr.mxu0 %v6788_v1 }
 0xdc9   : > { %v3708_v39 = vpop.xlane.xlu1 %3707 }
 0xdcb   : > { %v6769_v38 = vpop.eup %6768 }
 0xdcc   : > { %v3215_v10 = vmul.f32 %v6769_v38, %v6761_v22  ;;  %v5632_v38 = vld [vmem:[%s9326_s9 + $0x200] sm:$0xff] }
 0xdcd   : > { %v3547_v52 = vpop.permute.xlu1 %3546 }
 0xdce   : > { %6673 = vmatmul.mubr.msk.f32.vlgmr.msra.gmra.mxu0 %vm661_vm3, %v3215_v10  ;;  %v5685_v10 = vld [vmem:[%s9326_s9 + $0x3a8] sm:$0xff] }
 0xdcf   : > { %v6771_v40 = vpop.eup %6770  ;;  %6681 = vmatpush3.msra.mxu0 %v3382_v34  ;;  %6682 = vmatprep.mubr.msk.f32.mxu0 %vm6789_vm0, %v6788_v1  ;;  %v5648_v34 = vld [vmem:[%s9326_s9 + $0x280] sm:$0xff] }
 0xdd0   : > { %6690 = vmatprep.subr.mxu0 %v6788_v1  ;;  %v3380_v47 = vmul.f32 %v6771_v40, %v6763_v27  ;;  %v5681_v27 = vld [vmem:[%s9326_s9 + $0x388] sm:$0xff]  ;;  %v5687_v40 = vld [vmem:[%s9326_s9 + $0x3b8] sm:$0xff] }
 0xdd2   : > { %6683 = vmatmul.mubr.msk.f32.vlgmr.msra.gmra.mxu0 %vm661_vm3, %v3380_v47 }
 0xdd3   : > { %6691 = vmatpush3.msra.mxu0 %v3547_v52  ;;  %6692 = vmatprep.mubr.msk.f32.mxu0 %vm6789_vm0, %v6788_v1 }
 0xdd4   : > { %6700 = vmatprep.subr.mxu0 %v6788_v1 }
 0xdf2   : > { %v3543_v42 = vpop.xlane.xlu0 %3542 }
 0xdf3   : > { %6772 = vrcp.f32 %v3543_v42 }
 0xdf4   : > { %6774 = vrcp.f32 %v3708_v39  ;;  %v5634_v39 = vld [vmem:[%s9326_s9 + $0x210] sm:$0xff] }
 0xdf6   : > { %v3712_v44 = vpop.permute.xlu0 %3711 }
 0xe00   : > { %v6773_v24 = vpop.eup %6772 }
 0xe01   : > { %v3545_v25 = vmul.f32 %v6773_v24, %v6767_v33  ;;  %v6775_v43 = vpop.eup %6774  ;;  %v5649_v33 = vld [vmem:[%s9326_s9 + $0x288] sm:$0xff] }
 0xe02   : > { %v3710_v45 = vmul.f32 %v6775_v43, %v6765_v56  ;;  %v5682_v56 = vld [vmem:[%s9326_s9 + $0x390] sm:$0xff] }
 0xe03   : > { %6693 = vmatmul.mubr.msk.f32.vlgmr.msra.gmra.mxu0 %vm661_vm3, %v3545_v25  ;;  %v5629_v25 = vld [vmem:[%s9324_s7 + $0x1] ss:$0 sm:$0xff] }
 0xe04   : > { %6701 = vmatpush3.msra.mxu0 %v3712_v44  ;;  %6702 = vmatprep.mubr.msk.f32.mxu0 %vm6789_vm0, %v6788_v1  ;;  %v5631_v44 = vld [vmem:[%s9325_s8 + $0x1] ss:$0 sm:$0xff] }
 0xe05   : > { %4098 = vmatprep.subr.mxu0 %v5681_v27  ;;  %v5640_v27 = vld [vmem:[%s9326_s9 + $0x240] sm:$0xff] }
 0xe07   : > { %6703 = vmatmul.mubr.msk.f32.vlgmr.msra.gmra.mxu0 %vm661_vm3, %v3710_v45 }
 0xe08   : > { %4138 = vmatprep.mubr.f32.mxu0 %v6788_v1  ;;  %4099 = vmatpush1.msra.mxu0 %v5680_v28  ;;  %v5693_v28 = vld [vmem:[%s9326_s9 + $0x3e8] sm:$0xff] }
 0xe09   : > { %4100 = vmatprep.subr.mxu0 %v5665_v30  ;;  %v5692_v30 = vld [vmem:[%s9326_s9 + $0x3e0] sm:$0xff] }
 0xe0a   : > { %4101 = vmatpush1.msra.mxu0 %v5664_v32  ;;  %v5677_v32 = vld [vmem:[%s9326_s9 + $0x368] sm:$0xff] }
 0xe0b   : > { %4102 = vmatprep.subr.mxu0 %v5649_v33  ;;  %v5676_v33 = vld [vmem:[%s9326_s9 + $0x360] sm:$0xff] }
 0xe0c   : > { %4103 = vmatpush1.msra.mxu0 %v5648_v34  ;;  %v5661_v34 = vld [vmem:[%s9326_s9 + $0x2e8] sm:$0xff] }
 0xe0d   : > { %4104 = vmatprep.subr.mxu0 %v5633_v36  ;;  %v5660_v36 = vld [vmem:[%s9326_s9 + $0x2e0] sm:$0xff] }
 0xe0e   : > { %4105 = vmatpush1.msra.mxu0 %v5632_v38  ;;  %v5645_v38 = vld [vmem:[%s9326_s9 + $0x268] sm:$0xff] }
 0xe0f   : > { %4240 = vmatprep.subr.mxu0 %v5685_v10  ;;  %v5644_v10 = vld [vmem:[%s9326_s9 + $0x260] sm:$0xff] }
 0xe8e   : > { %v3288_v48 = vpop.f32.mrf.mxu0 }
 0xe90   : > { %v6674_v49 = vpop.f32.mrf.mxu0 }
 0xe91   : > { %v5686_v49 = vld [vmem:[%s9326_s9 + $0x3b0] sm:$0xff] }
 0xe92   : > { %v3453_v50 = vpop.f32.mrf.mxu0 }
 0xe93   : > { %3788 = vrot.lane.b32.xlu1 %v3453_v50, %s9352_s25  ;;  %v5669_v50 = vld [vmem:[%s9326_s9 + $0x328] sm:$0xff] }
 0xe94   : > { %v6684_v51 = vpop.f32.mrf.mxu0 }
 0xe95   : > { %v5671_v51 = vld [vmem:[%s9326_s9 + $0x338] sm:$0xff] }
 0xec3   : > { %v3618_v62 = vpop.f32.mrf.mxu0 }
 0xec4   : > { %3792 = vrot.lane.b32.xlu0 %v3618_v62, %s9353_s27  ;;  %v5655_v62 = vld [vmem:[%s9326_s9 + $0x2b8] sm:$0xff] }
 0xec5   : > { %v6694_v63 = vpop.f32.mrf.mxu0 }
 0xec6   : > { %v5652_v63 = vld [vmem:[%s9326_s9 + $0x2a0] sm:$0xff] }
 0xec7   : > { %v3783_v2 = vpop.f32.mrf.mxu0 }
 0xec8   : > { %3796 = vrot.lane.b32.xlu1 %v3783_v2, %s9354_s29  ;;  %v5654_v2 = vld [vmem:[%s9326_s9 + $0x2b0] sm:$0xff] }
 0xec9   : > { %v6704_v3 = vpop.f32.mrf.mxu0 }
 0xeca   : > { %v5637_v3 = vld [vmem:[%s9326_s9 + $0x228] sm:$0xff] }
 0xf05   : > { %v3789_v4 = vpop.permute.xlu1 %3788 }
 0xf06   : > { %v3799_v6 = vsel %vm661_vm3, %v3288_v48, %v3789_v4  ;;  %v5684_v48 = vld [vmem:[%s9326_s9 + $0x3a0] sm:$0xff]  ;;  %v5639_v4 = vld [vmem:[%s9326_s9 + $0x238] sm:$0xff] }
 0xf36   : > { %v3793_v5 = vpop.permute.xlu0 %3792 }
 0xf37   : > { %v3800_v7 = vsel %vm498_vm1, %v3799_v6, %v3793_v5  ;;  %v5636_v5 = vld [vmem:[%s9326_s9 + $0x220] sm:$0xff]  ;;  %v5638_v6 = vld [vmem:[%s9326_s9 + $0x230] sm:$0xff] }
 0xf3a   : > { %v3797_v8 = vpop.permute.xlu1 %3796 }
 0xf3b   : > { %v3801_v14 = vsel %vm1333_vm4, %v3800_v7, %v3797_v8  ;;  %v5689_v7 = vld [vmem:[%s9326_s9 + $0x3c8] sm:$0xff]  ;;  %v5691_v8 = vld [vmem:[%s9326_s9 + $0x3d8] sm:$0xff] }
 0xf3c   : > { %6714 = vmatmul.mubr.msk.f32.vlgmr.msra.gmra.mxu1 %vm583_vm2, %v3801_v14  ;;  %v5688_v14 = vld [vmem:[%s9326_s9 + $0x3c0] sm:$0xff] }
 0xf3d   : > { %4209 = vmatprep.mubr.f32.mxu1 %v6788_v1 }
 0xffc   : > { %v3876_v15 = vpop.f32.mrf.mxu1 }
 0xffd   : > { %v3880_v53 = vadd.f32 %v3876_v15, %v8146_v41  ;;  %v5683_v41 = vld [vmem:[%s9326_s9 + $0x398] sm:$0xff]  ;;  %v5690_v15 = vld [vmem:[%s9326_s9 + $0x3d0] sm:$0xff] }
 0xffe   : > { %v6715_v17 = vpop.f32.mrf.mxu1  ;;  %4169 = vmatprep.subr.mxu1 %v5683_v41  ;;  %v5642_v41 = vld [vmem:[%s9326_s9 + $0x250] sm:$0xff] }
 0xfff   : > { %v3889_v19 = vadd.f32 %v5627_v16, %v3880_v53  ;;  %4170 = vmatpush1.msra.mxu1 %v5682_v56  ;;  %v5673_v16 = vld [vmem:[%s9326_s9 + $0x348] sm:$0xff]  ;;  %v5675_v53 = vld [vmem:[%s9326_s9 + $0x358] sm:$0xff]  ;;  %v5672_v17 = vld [vmem:[%s9326_s9 + $0x340] sm:$0xff] }
0x1000   : > { %4171 = vmatprep.subr.mxu1 %v5667_v31  ;;  %v5695_v56 = vld [vmem:[%s9326_s9 + $0x3f8] sm:$0xff]  ;;  %v5694_v31 = vld [vmem:[%s9326_s9 + $0x3f0] sm:$0xff] }
0x1001   : > { %v3890_v26 = vsel %vm583_vm2, %v3889_v19, 0.0  ;;  %4172 = vmatpush1.msra.mxu1 %v5666_v29  ;;  %v5679_v29 = vld [vmem:[%s9326_s9 + $0x378] sm:$0xff] }
0x1002   : > { %3891 = vadd.xlane.f32.xlu0 %v3890_v26  ;;  %4173 = vmatprep.subr.mxu1 %v5651_v0  ;;  %v5657_v26 = vld [vmem:[%s9326_s9 + $0x2c8] sm:$0xff]  ;;  %v5678_v0 = vld [vmem:[%s9326_s9 + $0x370] sm:$0xff] }
0x1003   : > { %4174 = vmatpush1.msra.mxu1 %v5650_v35  ;;  %v5663_v35 = vld [vmem:[%s9326_s9 + $0x2f8] sm:$0xff] }
0x1004   : > { %4175 = vmatprep.subr.mxu1 %v5635_v37  ;;  %v5662_v37 = vld [vmem:[%s9326_s9 + $0x2f0] sm:$0xff] }
0x1005   : > { %4176 = vmatpush1.msra.mxu1 %v5634_v39  ;;  %v5647_v39 = vld [vmem:[%s9326_s9 + $0x278] sm:$0xff] }
0x1006   : > { %4311 = vmatprep.subr.mxu1 %v5687_v40  ;;  %v5646_v40 = vld [vmem:[%s9326_s9 + $0x270] sm:$0xff] }
0x108b   : > { %v3892_v18 = vpop.xlane.xlu0 %3891 }
0x108c   : > { %v3893_v20 = vmul.f32 0.03125, %v3892_v18  ;;  %v5659_v18 = vld [vmem:[%s9326_s9 + $0x2d8] sm:$0xff] }
0x108e   : > { %v3894_v21 = vsub.f32 %v3889_v19, %v3893_v20  ;;  %v5674_v19 = vld [vmem:[%s9326_s9 + $0x350] sm:$0xff]  ;;  %v5656_v20 = vld [vmem:[%s9326_s9 + $0x2c0] sm:$0xff] }
0x1090   : > { %v3895_v22 = vmul.f32 %v3894_v21, %v3894_v21 }
0x1092   : > { %v3896_v23 = vsel %vm583_vm2, %v3895_v22, 0.0  ;;  %v5641_v22 = vld [vmem:[%s9326_s9 + $0x248] sm:$0xff] }
0x1093   : > { %3897 = vadd.xlane.f32.xlu1 %v3896_v23  ;;  %v5643_v23 = vld [vmem:[%s9326_s9 + $0x258] sm:$0xff] }
0x111c   : > { %v3898_v47 = vpop.xlane.xlu1 %3897 }
0x111d   : > { %v3899_v52 = vmul.f32 0.03125, %v3898_v47  ;;  %v5737_v47 = vld [vmem:[%s9328_s11 + $0x8f8] sm:$0xff] }
0x111f   : > { %v3900_v42 = vadd.f32 1e-05, %v3899_v52  ;;  %v5769_v52 = vld [vmem:[%s9328_s11 + $0x9f8] sm:$0xff] }
0x1121   : > { %6776 = vrsqrt.f32 %v3900_v42  ;;  %v5721_v42 = vld [vmem:[%s9328_s11 + $0x878] sm:$0xff] }
0x112e   : > { %v6777_v24 = vpop.eup %6776 }
0x112f   : > { %v3902_v43 = vmul.f32 %v6777_v24, %v3894_v21  ;;  %v5658_v21 = vld [vmem:[%s9326_s9 + $0x2d0] sm:$0xff]  ;;  %v5753_v24 = vld [vmem:[%s9328_s11 + $0x978] sm:$0xff] }
0x1131   : > { %v3911_v45 = vmul.f32 %v5629_v25, %v3902_v43  ;;  %v5736_v25 = vld [vmem:[%s9328_s11 + $0x8f0] sm:$0xff] }
0x1132   : > { %v5720_v43 = vld [vmem:[%s9328_s11 + $0x870] sm:$0xff] }
0x1133   : > { %v8308_v46 = vadd.f32 %v5631_v44, %v3911_v45  ;;  %v5752_v44 = vld [vmem:[%s9328_s11 + $0x970] sm:$0xff]  ;;  %v5735_v45 = vld [vmem:[%s9328_s11 + $0x8e8] sm:$0xff] }
0x1135   : > { %5698 = vmatmul.mubr.msk.f32.vlgmr.msra.gmra.mxu0 %vm583_vm2, %v8308_v46  ;;  %5699 = vmatmul.mubr.msk.f32.vlgmr.msra.gmra.mxu1 %vm583_vm2, %v8308_v46 }
0x1136   : > { %4241 = vmatpush1.msra.mxu0 %v5684_v48  ;;  %4312 = vmatpush1.msra.mxu1 %v5686_v49  ;;  %v5767_v48 = vld [vmem:[%s9328_s11 + $0x9e8] sm:$0xff] }
0x1137   : > { %4242 = vmatprep.subr.mxu0 %v5669_v50  ;;  %4313 = vmatprep.subr.mxu1 %v5671_v51  ;;  %v5719_v49 = vld [vmem:[%s9328_s11 + $0x868] sm:$0xff]  ;;  %v5734_v51 = vld [vmem:[%s9328_s11 + $0x8e0] sm:$0xff] }
0x1138   : > { %4243 = vmatpush1.msra.mxu0 %v5668_v59  ;;  %4314 = vmatpush1.msra.mxu1 %v5670_v60  ;;  %v5751_v50 = vld [vmem:[%s9328_s11 + $0x968] sm:$0xff]  ;;  %v5766_v59 = vld [vmem:[%s9328_s11 + $0x9e0] sm:$0xff] }
0x1139   : > { %4244 = vmatprep.subr.mxu0 %v5653_v61  ;;  %4315 = vmatprep.subr.mxu1 %v5655_v62  ;;  %v5718_v60 = vld [vmem:[%s9328_s11 + $0x860] sm:$0xff]  ;;  %v5733_v62 = vld [vmem:[%s9328_s11 + $0x8d8] sm:$0xff] }
0x113a   : > { %4245 = vmatpush1.msra.mxu0 %v5652_v63  ;;  %4316 = vmatpush1.msra.mxu1 %v5654_v2  ;;  %v5750_v61 = vld [vmem:[%s9328_s11 + $0x960] sm:$0xff]  ;;  %v5765_v63 = vld [vmem:[%s9328_s11 + $0x9d8] sm:$0xff] }
0x113b   : > { %4246 = vmatprep.subr.mxu0 %v5637_v3  ;;  %4317 = vmatprep.subr.mxu1 %v5639_v4  ;;  %v5717_v2 = vld [vmem:[%s9328_s11 + $0x858] sm:$0xff]  ;;  %v5732_v4 = vld [vmem:[%s9328_s11 + $0x8d0] sm:$0xff] }
0x113c   : > { %4247 = vmatpush1.msra.mxu0 %v5636_v5  ;;  %4280 = vmatprep.mubr.f32.mxu0 %v6788_v1  ;;  %v5749_v3 = vld [vmem:[%s9328_s11 + $0x958] sm:$0xff]  ;;  %v5764_v5 = vld [vmem:[%s9328_s11 + $0x9d0] sm:$0xff] }
0x113d   : > { %4318 = vmatpush1.msra.mxu1 %v5638_v6  ;;  %4351 = vmatprep.mubr.f32.mxu1 %v6788_v1  ;;  %v5716_v6 = vld [vmem:[%s9328_s11 + $0x850] sm:$0xff] }
0x113e   : > { %5700 = vmatmul.mubr.msk.f32.vlgmr.msra.gmra.mxu0 %vm583_vm2, %v8308_v46  ;;  %5701 = vmatmul.mubr.msk.f32.vlgmr.msra.gmra.mxu1 %vm583_vm2, %v8308_v46 }
0x113f   : > { %4382 = vmatprep.subr.mxu0 %v5689_v7  ;;  %4453 = vmatprep.subr.mxu1 %v5691_v8  ;;  %v5748_v7 = vld [vmem:[%s9328_s11 + $0x950] sm:$0xff]  ;;  %v5731_v8 = vld [vmem:[%s9328_s11 + $0x8c8] sm:$0xff] }
0x1140   : > { %4383 = vmatpush1.msra.mxu0 %v5688_v14  ;;  %4454 = vmatpush1.msra.mxu1 %v5690_v15  ;;  %v5763_v14 = vld [vmem:[%s9328_s11 + $0x9c8] sm:$0xff] }
0x1141   : > { %4384 = vmatprep.subr.mxu0 %v5673_v16  ;;  %4455 = vmatprep.subr.mxu1 %v5675_v53  ;;  %v5715_v15 = vld [vmem:[%s9328_s11 + $0x848] sm:$0xff]  ;;  %v5730_v53 = vld [vmem:[%s9328_s11 + $0x8c0] sm:$0xff] }
0x1142   : > { %4385 = vmatpush1.msra.mxu0 %v5672_v17  ;;  %4456 = vmatpush1.msra.mxu1 %v5674_v19  ;;  %v5747_v16 = vld [vmem:[%s9328_s11 + $0x948] sm:$0xff]  ;;  %v5762_v17 = vld [vmem:[%s9328_s11 + $0x9c0] sm:$0xff] }
0x1143   : > { %4386 = vmatprep.subr.mxu0 %v5657_v26  ;;  %4457 = vmatprep.subr.mxu1 %v5659_v18  ;;  %v5714_v19 = vld [vmem:[%s9328_s11 + $0x840] sm:$0xff]  ;;  %v5729_v18 = vld [vmem:[%s9328_s11 + $0x8b8] sm:$0xff] }
0x1144   : > { %4387 = vmatpush1.msra.mxu0 %v5656_v20  ;;  %4458 = vmatpush1.msra.mxu1 %v5658_v21  ;;  %v5746_v26 = vld [vmem:[%s9328_s11 + $0x940] sm:$0xff]  ;;  %v5761_v20 = vld [vmem:[%s9328_s11 + $0x9b8] sm:$0xff] }
0x1145   : > { %4388 = vmatprep.subr.mxu0 %v5641_v22  ;;  %4459 = vmatprep.subr.mxu1 %v5643_v23  ;;  %v5713_v21 = vld [vmem:[%s9328_s11 + $0x838] sm:$0xff]  ;;  %v5728_v23 = vld [vmem:[%s9328_s11 + $0x8b0] sm:$0xff] }
0x1146   : > { %4389 = vmatpush1.msra.mxu0 %v5640_v27  ;;  %4422 = vmatprep.mubr.f32.mxu0 %v6788_v1  ;;  %v5745_v22 = vld [vmem:[%s9328_s11 + $0x938] sm:$0xff]  ;;  %v5760_v27 = vld [vmem:[%s9328_s11 + $0x9b0] sm:$0xff] }
0x1147   : > { %4460 = vmatpush1.msra.mxu1 %v5642_v41  ;;  %4493 = vmatprep.mubr.f32.mxu1 %v6788_v1  ;;  %v5712_v41 = vld [vmem:[%s9328_s11 + $0x830] sm:$0xff] }
0x1148   : > { %5702 = vmatmul.mubr.msk.f32.vlgmr.msra.gmra.mxu0 %vm583_vm2, %v8308_v46  ;;  %5703 = vmatmul.mubr.msk.f32.vlgmr.msra.gmra.mxu1 %vm583_vm2, %v8308_v46 }
0x1149   : > { %4524 = vmatprep.subr.mxu0 %v5693_v28  ;;  %4595 = vmatprep.subr.mxu1 %v5695_v56  ;;  %v5744_v28 = vld [vmem:[%s9328_s11 + $0x930] sm:$0xff]  ;;  %v5727_v56 = vld [vmem:[%s9328_s11 + $0x8a8] sm:$0xff] }
0x114a   : > { %4525 = vmatpush1.msra.mxu0 %v5692_v30  ;;  %4596 = vmatpush1.msra.mxu1 %v5694_v31  ;;  %v5759_v30 = vld [vmem:[%s9328_s11 + $0x9a8] sm:$0xff] }
0x114b   : > { %4526 = vmatprep.subr.mxu0 %v5677_v32  ;;  %4597 = vmatprep.subr.mxu1 %v5679_v29  ;;  %v5711_v31 = vld [vmem:[%s9328_s11 + $0x828] sm:$0xff]  ;;  %v5726_v29 = vld [vmem:[%s9328_s11 + $0x8a0] sm:$0xff] }
0x114c   : > { %4527 = vmatpush1.msra.mxu0 %v5676_v33  ;;  %4598 = vmatpush1.msra.mxu1 %v5678_v0  ;;  %v5743_v32 = vld [vmem:[%s9328_s11 + $0x928] sm:$0xff]  ;;  %v5758_v33 = vld [vmem:[%s9328_s11 + $0x9a0] sm:$0xff] }
0x114d   : > { %4528 = vmatprep.subr.mxu0 %v5661_v34  ;;  %4599 = vmatprep.subr.mxu1 %v5663_v35  ;;  %v5710_v0 = vld [vmem:[%s9328_s11 + $0x820] sm:$0xff]  ;;  %v5725_v35 = vld [vmem:[%s9328_s11 + $0x898] sm:$0xff] }
0x114e   : > { %4529 = vmatpush1.msra.mxu0 %v5660_v36  ;;  %4600 = vmatpush1.msra.mxu1 %v5662_v37  ;;  %v5742_v34 = vld [vmem:[%s9328_s11 + $0x920] sm:$0xff]  ;;  %v5757_v36 = vld [vmem:[%s9328_s11 + $0x998] sm:$0xff] }
0x114f   : > { %4530 = vmatprep.subr.mxu0 %v5645_v38  ;;  %4601 = vmatprep.subr.mxu1 %v5647_v39  ;;  %v5709_v37 = vld [vmem:[%s9328_s11 + $0x818] sm:$0xff]  ;;  %v5724_v39 = vld [vmem:[%s9328_s11 + $0x890] sm:$0xff] }
0x1150   : > { %4531 = vmatpush1.msra.mxu0 %v5644_v10  ;;  %4564 = vmatprep.mubr.f32.mxu0 %v6788_v1  ;;  %v5741_v38 = vld [vmem:[%s9328_s11 + $0x918] sm:$0xff]  ;;  %v5756_v10 = vld [vmem:[%s9328_s11 + $0x990] sm:$0xff] }
0x1151   : > { %4602 = vmatpush1.msra.mxu1 %v5646_v40  ;;  %4635 = vmatprep.mubr.f32.mxu1 %v6788_v1  ;;  %v5768_v1 = vld [vmem:[%s9328_s11 + $0x9f0] sm:$0xff] }
0x1152   : > { %5704 = vmatmul.mubr.msk.f32.vlgmr.msra.gmra.mxu0 %vm583_vm2, %v8308_v46  ;;  %5705 = vmatmul.mubr.msk.f32.vlgmr.msra.gmra.mxu1 %vm583_vm2, %v8308_v46  ;;  %v5708_v40 = vld [vmem:[%s9328_s11 + $0x810] sm:$0xff] }
0x1153   : > { %6305 = vmatprep.subr.mxu0 %v5737_v47  ;;  %6340 = vmatprep.subr.mxu1 %v5769_v52  ;;  %v5740_v47 = vld [vmem:[%s9328_s11 + $0x910] sm:$0xff]  ;;  %v5723_v52 = vld [vmem:[%s9328_s11 + $0x888] sm:$0xff] }
0x1154   : > { %6306 = vmatpush3.msra.mxu0 %v5721_v42  ;;  %6341 = vmatpush3.msra.mxu1 %v5753_v24  ;;  %v5755_v42 = vld [vmem:[%s9328_s11 + $0x988] sm:$0xff] }
0x1155   : > { %6307 = vmatprep.subr.mxu0 %v5736_v25  ;;  %6342 = vmatprep.subr.mxu1 %v5768_v1  ;;  %v5707_v24 = vld [vmem:[%s9328_s11 + $0x808] sm:$0xff]  ;;  %v5722_v1 = vld [vmem:[%s9328_s11 + $0x880] sm:$0xff] }
0x1156   : > { %6308 = vmatpush3.msra.mxu0 %v5720_v43  ;;  %6343 = vmatpush3.msra.mxu1 %v5752_v44  ;;  %v5739_v25 = vld [vmem:[%s9328_s11 + $0x908] sm:$0xff]  ;;  %v5754_v43 = vld [vmem:[%s9328_s11 + $0x980] sm:$0xff] }
0x1157   : > { %6309 = vmatprep.subr.mxu0 %v5735_v45  ;;  %6344 = vmatprep.subr.mxu1 %v5767_v48  ;;  %v5706_v44 = vld [vmem:[%s9328_s11 + $0x800] sm:$0xff]  ;;  %v5801_v48 = vld [vmem:[%s9328_s11 + $0xaf8] sm:$0xff] }
0x1158   : > { %6310 = vmatpush3.msra.mxu0 %v5719_v49  ;;  %6345 = vmatpush3.msra.mxu1 %v5751_v50  ;;  %v5738_v45 = vld [vmem:[%s9328_s11 + $0x900] sm:$0xff]  ;;  %v5833_v49 = vld [vmem:[%s9328_s11 + $0xbf8] sm:$0xff]  ;;  %v8671_v50 = vld [vmem:[%s9327_s10 + $0x10] sm:$0xff] }
0x1159   : > { %6311 = vmatprep.subr.mxu0 %v5734_v51  ;;  %6346 = vmatprep.subr.mxu1 %v5766_v59  ;;  %v3994_v51 = vrot.slane %v8671_v50, %v7459_v54  ;;  %v4002_v59 = vrot.slane %v8671_v50, %v7462_v55 }
0x115a   : > { %6312 = vmatpush3.msra.mxu0 %v5718_v60  ;;  %6347 = vmatpush3.msra.mxu1 %v5750_v61  ;;  %v3998_v60 = vrot.slane %v8671_v50, %v7470_v57  ;;  %v4006_v61 = vrot.slane %v8671_v50, %v7473_v58 }
0x115b   : > { %6313 = vmatprep.subr.mxu0 %v5733_v62  ;;  %6348 = vmatprep.subr.mxu1 %v5765_v63 }
0x115c   : > { %6314 = vmatpush3.msra.mxu0 %v5717_v2  ;;  %6349 = vmatpush3.msra.mxu1 %v5749_v3 }
0x115d   : > { %6315 = vmatprep.subr.mxu0 %v5732_v4  ;;  %6350 = vmatprep.subr.mxu1 %v5764_v5 }
0x115e   : > { %6316 = vmatpush3.msra.mxu0 %v5716_v6  ;;  %6351 = vmatpush3.msra.mxu1 %v5748_v7 }
0x115f   : > { %6317 = vmatprep.subr.mxu0 %v5731_v8  ;;  %6352 = vmatprep.subr.mxu1 %v5763_v14 }
0x1160   : > { %6318 = vmatpush3.msra.mxu0 %v5715_v15  ;;  %6353 = vmatpush3.msra.mxu1 %v5747_v16 }
0x1161   : > { %6319 = vmatprep.subr.mxu0 %v5730_v53  ;;  %6354 = vmatprep.subr.mxu1 %v5762_v17  ;;  %v5785_v53 = vld [vmem:[%s9328_s11 + $0xa78] sm:$0xff] }
0x1162   : > { %6320 = vmatpush3.msra.mxu0 %v5714_v19  ;;  %6355 = vmatpush3.msra.mxu1 %v5746_v26  ;;  %v5817_v17 = vld [vmem:[%s9328_s11 + $0xb78] sm:$0xff]  ;;  %v5800_v19 = vld [vmem:[%s9328_s11 + $0xaf0] sm:$0xff] }
0x1163   : > { %6321 = vmatprep.subr.mxu0 %v5729_v18  ;;  %6356 = vmatprep.subr.mxu1 %v5761_v20  ;;  %v5832_v26 = vld [vmem:[%s9328_s11 + $0xbf0] sm:$0xff]  ;;  %v4014_v18 = vrot.slane %v8671_v50, %v7484_v9  ;;  %v4022_v20 = vrot.slane %v8671_v50, %v7487_v11 }
0x1164   : > { %6322 = vmatpush3.msra.mxu0 %v5713_v21  ;;  %6357 = vmatpush3.msra.mxu1 %v5745_v22  ;;  %v5784_v21 = vld [vmem:[%s9328_s11 + $0xa70] sm:$0xff] }
0x1165   : > { %6323 = vmatprep.subr.mxu0 %v5728_v23  ;;  %6358 = vmatprep.subr.mxu1 %v5760_v27  ;;  %v5816_v22 = vld [vmem:[%s9328_s11 + $0xb70] sm:$0xff] }
0x1166   : > { %6324 = vmatpush3.msra.mxu0 %v5712_v41  ;;  %6359 = vmatpush3.msra.mxu1 %v5744_v28  ;;  %v5799_v41 = vld [vmem:[%s9328_s11 + $0xae8] sm:$0xff] }
0x1167   : > { %6325 = vmatprep.subr.mxu0 %v5727_v56  ;;  %6360 = vmatprep.subr.mxu1 %v5759_v30  ;;  %v5831_v28 = vld [vmem:[%s9328_s11 + $0xbe8] sm:$0xff] }
0x1168   : > { %6326 = vmatpush3.msra.mxu0 %v5711_v31  ;;  %6361 = vmatpush3.msra.mxu1 %v5743_v32  ;;  %v5783_v56 = vld [vmem:[%s9328_s11 + $0xa68] sm:$0xff] }
0x1169   : > { %6327 = vmatprep.subr.mxu0 %v5726_v29  ;;  %6362 = vmatprep.subr.mxu1 %v5758_v33  ;;  %v5815_v30 = vld [vmem:[%s9328_s11 + $0xb68] sm:$0xff]  ;;  %v5798_v29 = vld [vmem:[%s9328_s11 + $0xae0] sm:$0xff] }
0x116a   : > { %6328 = vmatpush3.msra.mxu0 %v5710_v0  ;;  %6363 = vmatpush3.msra.mxu1 %v5742_v34  ;;  %v5830_v33 = vld [vmem:[%s9328_s11 + $0xbe0] sm:$0xff] }
0x116b   : > { %6329 = vmatprep.subr.mxu0 %v5725_v35  ;;  %6364 = vmatprep.subr.mxu1 %v5757_v36  ;;  %v5782_v35 = vld [vmem:[%s9328_s11 + $0xa60] sm:$0xff] }
0x116c   : > { %6330 = vmatpush3.msra.mxu0 %v5709_v37  ;;  %6365 = vmatpush3.msra.mxu1 %v5741_v38  ;;  %v5814_v36 = vld [vmem:[%s9328_s11 + $0xb60] sm:$0xff] }
0x116d   : > { %6331 = vmatprep.subr.mxu0 %v5724_v39  ;;  %6366 = vmatprep.subr.mxu1 %v5756_v10  ;;  %v5797_v39 = vld [vmem:[%s9328_s11 + $0xad8] sm:$0xff] }
0x116e   : > { %6332 = vmatpush3.msra.mxu0 %v5708_v40  ;;  %6367 = vmatpush3.msra.mxu1 %v5740_v47  ;;  %v5829_v10 = vld [vmem:[%s9328_s11 + $0xbd8] sm:$0xff] }
0x116f   : > { %6333 = vmatprep.subr.mxu0 %v5723_v52  ;;  %6368 = vmatprep.subr.mxu1 %v5755_v42  ;;  %v5781_v40 = vld [vmem:[%s9328_s11 + $0xa58] sm:$0xff]  ;;  %v5796_v52 = vld [vmem:[%s9328_s11 + $0xad0] sm:$0xff] }
0x1170   : > { %6334 = vmatpush3.msra.mxu0 %v5707_v24  ;;  %6369 = vmatpush3.msra.mxu1 %v5739_v25  ;;  %v5813_v47 = vld [vmem:[%s9328_s11 + $0xb58] sm:$0xff]  ;;  %v5828_v42 = vld [vmem:[%s9328_s11 + $0xbd0] sm:$0xff] }
0x1171   : > { %6335 = vmatprep.subr.mxu0 %v5722_v1  ;;  %6370 = vmatprep.subr.mxu1 %v5754_v43  ;;  %v5780_v24 = vld [vmem:[%s9328_s11 + $0xa50] sm:$0xff]  ;;  %v5795_v1 = vld [vmem:[%s9328_s11 + $0xac8] sm:$0xff] }
0x1172   : > { %6336 = vmatpush3.msra.mxu0 %v5706_v44  ;;  %6371 = vmatpush3.msra.mxu1 %v5738_v45  ;;  %v5812_v25 = vld [vmem:[%s9328_s11 + $0xb50] sm:$0xff]  ;;  %v5827_v43 = vld [vmem:[%s9328_s11 + $0xbc8] sm:$0xff] }
0x1173   : > { %6375 = vmatprep.subr.mxu0 %v5801_v48  ;;  %6410 = vmatprep.subr.mxu1 %v5833_v49  ;;  %v5779_v44 = vld [vmem:[%s9328_s11 + $0xa48] sm:$0xff]  ;;  %v5794_v48 = vld [vmem:[%s9328_s11 + $0xac0] sm:$0xff] }
0x1174   : > { %v5811_v45 = vld [vmem:[%s9328_s11 + $0xb48] sm:$0xff]  ;;  %v5826_v49 = vld [vmem:[%s9328_s11 + $0xbc0] sm:$0xff] }
0x11f5   : > { %v4140_v62 = vpop.f32.mrf.mxu0  ;;  %v4211_v63 = vpop.f32.mrf.mxu1 }
0x11f6   : > { %v4141_v2 = vadd.f32 %v4140_v62, %v3994_v51  ;;  %v4212_v3 = vadd.f32 %v4211_v63, %v4002_v59  ;;  %v5778_v51 = vld [vmem:[%s9328_s11 + $0xa40] sm:$0xff]  ;;  %v5777_v62 = vld [vmem:[%s9328_s11 + $0xa38] sm:$0xff] }
0x11f7   : > { %v4142_v4 = vpop.f32.mrf.mxu0  ;;  %v4213_v5 = vpop.f32.mrf.mxu1  ;;  %v5810_v59 = vld [vmem:[%s9328_s11 + $0xb40] sm:$0xff]  ;;  %v5809_v63 = vld [vmem:[%s9328_s11 + $0xb38] sm:$0xff] }
0x11f8   : > { %v4143_v6 = vadd.f32 %v4142_v4, %v3998_v60  ;;  %v4214_v7 = vadd.f32 %v4213_v5, %v4006_v61  ;;  %v4642_v15 = vmax.f32 %v4141_v2, 0.0  ;;  %v4644_v16 = vmax.f32 %v4212_v3, 0.0  ;;  %v5793_v60 = vld [vmem:[%s9328_s11 + $0xab8] sm:$0xff]  ;;  %v5792_v2 = vld [vmem:[%s9328_s11 + $0xab0] sm:$0xff] }
0x11f9   : > { %v5825_v61 = vld [vmem:[%s9328_s11 + $0xbb8] sm:$0xff]  ;;  %v5824_v3 = vld [vmem:[%s9328_s11 + $0xbb0] sm:$0xff] }
0x11fa   : > { %v4643_v8 = vmax.f32 %v4143_v6, 0.0  ;;  %v4645_v14 = vmax.f32 %v4214_v7, 0.0  ;;  %v5776_v4 = vld [vmem:[%s9328_s11 + $0xa30] sm:$0xff]  ;;  %v5791_v6 = vld [vmem:[%s9328_s11 + $0xaa8] sm:$0xff] }
0x11fb   : > { %v5808_v5 = vld [vmem:[%s9328_s11 + $0xb30] sm:$0xff]  ;;  %v5823_v7 = vld [vmem:[%s9328_s11 + $0xba8] sm:$0xff] }
0x11fc   : > { %4979 = vmatprep.mubr.f32.mxu0 %v4643_v8  ;;  %5049 = vmatprep.mubr.f32.mxu1 %v4645_v14  ;;  %v5775_v8 = vld [vmem:[%s9328_s11 + $0xa28] sm:$0xff] }
0x11fd   : > { %4980 = vmatmul.mubr.f32.vlgmr.msra.gmra.mxu0 %v4642_v15  ;;  %5050 = vmatmul.mubr.f32.vlgmr.msra.gmra.mxu1 %v4644_v16  ;;  %v5807_v14 = vld [vmem:[%s9328_s11 + $0xb28] sm:$0xff]  ;;  %v5790_v15 = vld [vmem:[%s9328_s11 + $0xaa0] sm:$0xff] }
0x11fe   : > { %v8703_v23 = vpop.f32.mrf.mxu0  ;;  %v8705_v27 = vpop.f32.mrf.mxu1  ;;  %6376 = vmatpush3.msra.mxu0 %v5785_v53  ;;  %6411 = vmatpush3.msra.mxu1 %v5817_v17  ;;  %v5822_v16 = vld [vmem:[%s9328_s11 + $0xba0] sm:$0xff] }
0x11ff   : > { %6377 = vmatprep.subr.mxu0 %v5800_v19  ;;  %6412 = vmatprep.subr.mxu1 %v5832_v26  ;;  %v5774_v53 = vld [vmem:[%s9328_s11 + $0xa20] sm:$0xff]  ;;  %v5789_v26 = vld [vmem:[%s9328_s11 + $0xa98] sm:$0xff] }
0x1200   : > { %v4284_v31 = vpop.f32.mrf.mxu0  ;;  %v4355_v32 = vpop.f32.mrf.mxu1  ;;  %6378 = vmatpush3.msra.mxu0 %v5784_v21  ;;  %6413 = vmatpush3.msra.mxu1 %v5816_v22  ;;  %v5806_v17 = vld [vmem:[%s9328_s11 + $0xb20] sm:$0xff]  ;;  %v4018_v21 = vrot.slane %v8671_v50, %v7621_v13 }
0x1201   : > { %v4285_v0 = vadd.f32 %v4284_v31, %v4014_v18  ;;  %v4356_v34 = vadd.f32 %v4355_v32, %v4022_v20  ;;  %6379 = vmatprep.subr.mxu0 %v5799_v41  ;;  %6414 = vmatprep.subr.mxu1 %v5831_v28  ;;  %v5821_v18 = vld [vmem:[%s9328_s11 + $0xb98] sm:$0xff]  ;;  %v4010_v20 = vrot.slane %v8671_v50, %v7618_v12  ;;  %v5788_v50 = vld [vmem:[%s9328_s11 + $0xa90] sm:$0xff] }
0x1202   : > { %6380 = vmatpush3.msra.mxu0 %v5783_v56  ;;  %6415 = vmatpush3.msra.mxu1 %v5815_v30  ;;  %v5773_v41 = vld [vmem:[%s9328_s11 + $0xa18] sm:$0xff]  ;;  %v5820_v30 = vld [vmem:[%s9328_s11 + $0xb90] sm:$0xff] }
0x1203   : > { %v4647_v37 = vmax.f32 %v4285_v0, 0.0  ;;  %v4649_v38 = vmax.f32 %v4356_v34, 0.0  ;;  %6381 = vmatprep.subr.mxu0 %v5798_v29  ;;  %6416 = vmatprep.subr.mxu1 %v5830_v33  ;;  %v5805_v28 = vld [vmem:[%s9328_s11 + $0xb18] sm:$0xff]  ;;  %v5772_v32 = vld [vmem:[%s9328_s11 + $0xa10] sm:$0xff]  ;;  %v5819_v34 = vld [vmem:[%s9328_s11 + $0xb88] sm:$0xff] }
0x1204   : > { %6382 = vmatpush3.msra.mxu0 %v5782_v35  ;;  %6417 = vmatpush3.msra.mxu1 %v5814_v36  ;;  %v8850_v56 = vld [vmem:[%s9327_s10 + $0x18] sm:$0xff]  ;;  %v5804_v29 = vld [vmem:[%s9328_s11 + $0xb10] sm:$0xff]  ;;  %v4283_v35 = vadd.f32 %v8703_v23, %v4010_v20  ;;  %v4354_v36 = vadd.f32 %v8705_v27, %v4018_v21  ;;  %v5818_v23 = vld [vmem:[%s9328_s11 + $0xb80] sm:$0xff] }
0x1205   : > { %5119 = vmatprep.mubr.f32.mxu0 %v4647_v37  ;;  %5189 = vmatprep.mubr.f32.mxu1 %v4649_v38  ;;  %v4030_v31 = vrot.slane %v8850_v56, %v7470_v57  ;;  %v4038_v0 = vrot.slane %v8850_v56, %v7473_v58  ;;  %v5787_v57 = vld [vmem:[%s9328_s11 + $0xa88] sm:$0xff] }
0x1206   : > { %6383 = vmatprep.subr.mxu0 %v5797_v39  ;;  %6418 = vmatprep.subr.mxu1 %v5829_v10  ;;  %v5771_v58 = vld [vmem:[%s9328_s11 + $0xa08] sm:$0xff]  ;;  %v5786_v39 = vld [vmem:[%s9328_s11 + $0xa80] sm:$0xff] }
0x1207   : > { %6384 = vmatpush3.msra.mxu0 %v5781_v40  ;;  %6419 = vmatpush3.msra.mxu1 %v5813_v47  ;;  %v5803_v38 = vld [vmem:[%s9328_s11 + $0xb08] sm:$0xff]  ;;  %v5770_v10 = vld [vmem:[%s9328_s11 + $0xa00] sm:$0xff] }
0x1208   : > { %6385 = vmatprep.subr.mxu0 %v5796_v52  ;;  %6420 = vmatprep.subr.mxu1 %v5828_v42  ;;  %v8827_v19 = vpop.f32.mrf.mxu0  ;;  %v8839_v22 = vpop.f32.mrf.mxu1  ;;  %v5802_v40 = vld [vmem:[%s9328_s11 + $0xb00] sm:$0xff]  ;;  %v4646_v52 = vmax.f32 %v4283_v35, 0.0  ;;  %v4648_v42 = vmax.f32 %v4354_v36, 0.0  ;;  %v5843_v20 = vld [vmem:[%s9328_s11 + $0xc48] sm:$0xff]  ;;  %v5872_v35 = vld [vmem:[%s9328_s11 + $0xd30] sm:$0xff] }
0x1209   : > { %6386 = vmatpush3.msra.mxu0 %v5780_v24  ;;  %6421 = vmatpush3.msra.mxu1 %v5812_v25  ;;  %v5865_v24 = vld [vmem:[%s9328_s11 + $0xcf8] sm:$0xff]  ;;  %v5875_v21 = vld [vmem:[%s9328_s11 + $0xd48] sm:$0xff] }
0x120a   : > { %6387 = vmatprep.subr.mxu0 %v5795_v1  ;;  %6422 = vmatprep.subr.mxu1 %v5827_v43  ;;  %v4426_v33 = vpop.f32.mrf.mxu0  ;;  %v4497_v37 = vpop.f32.mrf.mxu1  ;;  %v5897_v25 = vld [vmem:[%s9328_s11 + $0xdf8] sm:$0xff]  ;;  %v5855_v36 = vld [vmem:[%s9328_s11 + $0xca8] sm:$0xff] }
0x120b   : > { %6388 = vmatpush3.msra.mxu0 %v5779_v44  ;;  %6423 = vmatpush3.msra.mxu1 %v5811_v45  ;;  %v4427_v27 = vadd.f32 %v4426_v33, %v4030_v31  ;;  %v4498_v47 = vadd.f32 %v4497_v37, %v4038_v0  ;;  %v5849_v1 = vld [vmem:[%s9328_s11 + $0xc78] sm:$0xff]  ;;  %v5856_v0 = vld [vmem:[%s9328_s11 + $0xcb0] sm:$0xff]  ;;  %v5887_v37 = vld [vmem:[%s9328_s11 + $0xda8] sm:$0xff] }
0x120c   : > { %6389 = vmatprep.subr.mxu0 %v5794_v48  ;;  %6424 = vmatprep.subr.mxu1 %v5826_v49  ;;  %v5881_v44 = vld [vmem:[%s9328_s11 + $0xd78] sm:$0xff]  ;;  %v5864_v48 = vld [vmem:[%s9328_s11 + $0xcf0] sm:$0xff] }
0x120d   : > { %6390 = vmatpush3.msra.mxu0 %v5778_v51  ;;  %6425 = vmatpush3.msra.mxu1 %v5810_v59  ;;  %v4651_v43 = vmax.f32 %v4427_v27, 0.0  ;;  %v4653_v45 = vmax.f32 %v4498_v47, 0.0  ;;  %v5896_v49 = vld [vmem:[%s9328_s11 + $0xdf0] sm:$0xff]  ;;  %v5857_v31 = vld [vmem:[%s9328_s11 + $0xcb8] sm:$0xff]  ;;  %v5838_v27 = vld [vmem:[%s9328_s11 + $0xc20] sm:$0xff] }
0x120e   : > { %6391 = vmatprep.subr.mxu0 %v5793_v60  ;;  %6426 = vmatprep.subr.mxu1 %v5825_v61  ;;  %v5848_v51 = vld [vmem:[%s9328_s11 + $0xc70] sm:$0xff]  ;;  %v5863_v60 = vld [vmem:[%s9328_s11 + $0xce8] sm:$0xff]  ;;  %v5873_v33 = vld [vmem:[%s9328_s11 + $0xd38] sm:$0xff] }
0x120f   : > { %6392 = vmatpush3.msra.mxu0 %v5777_v62  ;;  %6427 = vmatpush3.msra.mxu1 %v5809_v63  ;;  %v5880_v59 = vld [vmem:[%s9328_s11 + $0xd70] sm:$0xff]  ;;  %v5895_v61 = vld [vmem:[%s9328_s11 + $0xde8] sm:$0xff]  ;;  %v5853_v47 = vld [vmem:[%s9328_s11 + $0xc98] sm:$0xff] }
0x1210   : > { %6393 = vmatprep.subr.mxu0 %v5792_v2  ;;  %6428 = vmatprep.subr.mxu1 %v5824_v3  ;;  %v5847_v62 = vld [vmem:[%s9328_s11 + $0xc68] sm:$0xff]  ;;  %v5862_v2 = vld [vmem:[%s9328_s11 + $0xce0] sm:$0xff] }
0x1211   : > { %6394 = vmatpush3.msra.mxu0 %v5776_v4  ;;  %6429 = vmatpush3.msra.mxu1 %v5808_v5  ;;  %v5879_v63 = vld [vmem:[%s9328_s11 + $0xd68] sm:$0xff]  ;;  %v5894_v3 = vld [vmem:[%s9328_s11 + $0xde0] sm:$0xff] }
0x1212   : > { %6395 = vmatprep.subr.mxu0 %v5791_v6  ;;  %6430 = vmatprep.subr.mxu1 %v5823_v7  ;;  %v5846_v4 = vld [vmem:[%s9328_s11 + $0xc60] sm:$0xff]  ;;  %v5861_v6 = vld [vmem:[%s9328_s11 + $0xcd8] sm:$0xff] }
0x1213   : > { %6396 = vmatpush3.msra.mxu0 %v5775_v8  ;;  %6431 = vmatpush3.msra.mxu1 %v5807_v14  ;;  %v5878_v5 = vld [vmem:[%s9328_s11 + $0xd60] sm:$0xff]  ;;  %v5893_v7 = vld [vmem:[%s9328_s11 + $0xdd8] sm:$0xff] }
0x1214   : > { %6397 = vmatprep.subr.mxu0 %v5790_v15  ;;  %6432 = vmatprep.subr.mxu1 %v5822_v16  ;;  %v5845_v8 = vld [vmem:[%s9328_s11 + $0xc58] sm:$0xff]  ;;  %v5860_v15 = vld [vmem:[%s9328_s11 + $0xcd0] sm:$0xff] }
0x1215   : > { %6398 = vmatpush3.msra.mxu0 %v5774_v53  ;;  %6433 = vmatpush3.msra.mxu1 %v5806_v17  ;;  %v5877_v14 = vld [vmem:[%s9328_s11 + $0xd58] sm:$0xff]  ;;  %v5892_v16 = vld [vmem:[%s9328_s11 + $0xdd0] sm:$0xff] }
0x1216   : > { %6399 = vmatprep.subr.mxu0 %v5789_v26  ;;  %6434 = vmatprep.subr.mxu1 %v5821_v18  ;;  %v5844_v53 = vld [vmem:[%s9328_s11 + $0xc50] sm:$0xff]  ;;  %v5859_v26 = vld [vmem:[%s9328_s11 + $0xcc8] sm:$0xff] }
0x1217   : > { %6400 = vmatpush3.msra.mxu0 %v5773_v41  ;;  %6435 = vmatpush3.msra.mxu1 %v5805_v28  ;;  %v5876_v17 = vld [vmem:[%s9328_s11 + $0xd50] sm:$0xff]  ;;  %v5891_v18 = vld [vmem:[%s9328_s11 + $0xdc8] sm:$0xff]  ;;  %v5858_v41 = vld [vmem:[%s9328_s11 + $0xcc0] sm:$0xff] }
0x1218   : > { %6401 = vmatprep.subr.mxu0 %v5788_v50  ;;  %6436 = vmatprep.subr.mxu1 %v5820_v30  ;;  %v5890_v28 = vld [vmem:[%s9328_s11 + $0xdc0] sm:$0xff] }
0x1219   : > { %6402 = vmatpush3.msra.mxu0 %v5772_v32  ;;  %6437 = vmatpush3.msra.mxu1 %v5804_v29  ;;  %v5842_v50 = vld [vmem:[%s9328_s11 + $0xc40] sm:$0xff]  ;;  %v5889_v32 = vld [vmem:[%s9328_s11 + $0xdb8] sm:$0xff] }
0x121a   : > { %6403 = vmatprep.subr.mxu0 %v5787_v57  ;;  %6438 = vmatprep.subr.mxu1 %v5819_v34  ;;  %v5874_v30 = vld [vmem:[%s9328_s11 + $0xd40] sm:$0xff]  ;;  %v5841_v29 = vld [vmem:[%s9328_s11 + $0xc38] sm:$0xff]  ;;  %v5888_v57 = vld [vmem:[%s9328_s11 + $0xdb0] sm:$0xff] }
0x121b   : > { %6404 = vmatpush3.msra.mxu0 %v5771_v58  ;;  %6439 = vmatpush3.msra.mxu1 %v5803_v38  ;;  %v5840_v34 = vld [vmem:[%s9328_s11 + $0xc30] sm:$0xff]  ;;  %v5839_v58 = vld [vmem:[%s9328_s11 + $0xc28] sm:$0xff] }
0x121c   : > { %6405 = vmatprep.subr.mxu0 %v5786_v39  ;;  %6440 = vmatprep.subr.mxu1 %v5818_v23  ;;  %v5871_v38 = vld [vmem:[%s9328_s11 + $0xd28] sm:$0xff]  ;;  %v5854_v39 = vld [vmem:[%s9328_s11 + $0xca0] sm:$0xff] }
0x121d   : > { %6406 = vmatpush3.msra.mxu0 %v5770_v10  ;;  %6441 = vmatpush3.msra.mxu1 %v5802_v40  ;;  %v5886_v23 = vld [vmem:[%s9328_s11 + $0xda0] sm:$0xff]  ;;  %v9038_v40 = vpop.f32.mrf.mxu0 }
0x121e   : > { %5120 = vmatmul.mubr.f32.vlgmr.msra.gmra.mxu0 %v4646_v52  ;;  %5190 = vmatmul.mubr.f32.vlgmr.msra.gmra.mxu1 %v4648_v42  ;;  %v5870_v10 = vld [vmem:[%s9328_s11 + $0xd20] sm:$0xff]  ;;  %v5885_v52 = vld [vmem:[%s9328_s11 + $0xd98] sm:$0xff]  ;;  %v4026_v42 = vrot.slane %v8850_v56, %v7459_v54  ;;  %v5852_v54 = vld [vmem:[%s9328_s11 + $0xc90] sm:$0xff] }
0x121f   : > { %6445 = vmatprep.subr.mxu0 %v5865_v24  ;;  %6480 = vmatprep.subr.mxu1 %v5897_v25  ;;  %v4034_v24 = vrot.slane %v8850_v56, %v7462_v55  ;;  %v9050_v25 = vpop.f32.mrf.mxu1  ;;  %v5884_v55 = vld [vmem:[%s9328_s11 + $0xd90] sm:$0xff] }
0x1220   : > { %6446 = vmatpush3.msra.mxu0 %v5849_v1  ;;  %5259 = vmatprep.mubr.f32.mxu0 %v4651_v43  ;;  %v5837_v1 = vld [vmem:[%s9328_s11 + $0xc18] sm:$0xff] }
0x1221   : > { %6481 = vmatpush3.msra.mxu1 %v5881_v44  ;;  %5329 = vmatprep.mubr.f32.mxu1 %v4653_v45  ;;  %v5869_v43 = vld [vmem:[%s9328_s11 + $0xd18] sm:$0xff]  ;;  %v4046_v44 = vrot.slane %v8850_v56, %v7484_v9  ;;  %v5836_v45 = vld [vmem:[%s9328_s11 + $0xc10] sm:$0xff]  ;;  %v5851_v9 = vld [vmem:[%s9328_s11 + $0xc88] sm:$0xff] }
0x1222   : > { %6447 = vmatprep.subr.mxu0 %v5864_v48  ;;  %6482 = vmatprep.subr.mxu1 %v5896_v49  ;;  %v5868_v48 = vld [vmem:[%s9328_s11 + $0xd10] sm:$0xff]  ;;  %v4568_v49 = vpop.f32.mrf.mxu0 }
0x1223   : > { %6448 = vmatpush3.msra.mxu0 %v5848_v51  ;;  %6483 = vmatpush3.msra.mxu1 %v5880_v59  ;;  %v4054_v51 = vrot.slane %v8850_v56, %v7487_v11  ;;  %v5883_v59 = vld [vmem:[%s9328_s11 + $0xd88] sm:$0xff] }
0x1224   : > { %6449 = vmatprep.subr.mxu0 %v5863_v60  ;;  %6484 = vmatprep.subr.mxu1 %v5895_v61  ;;  %v4425_v60 = vadd.f32 %v8827_v19, %v4026_v42  ;;  %v4496_v61 = vadd.f32 %v8839_v22, %v4034_v24  ;;  %v5835_v11 = vld [vmem:[%s9328_s11 + $0xc08] sm:$0xff]  ;;  %v5882_v19 = vld [vmem:[%s9328_s11 + $0xd80] sm:$0xff]  ;;  %v4569_v22 = vadd.f32 %v4568_v49, %v4046_v44  ;;  %v5920_v44 = vld [vmem:[%s9328_s11 + $0xeb0] sm:$0xff] }
0x1225   : > { %6450 = vmatpush3.msra.mxu0 %v5847_v62  ;;  %6485 = vmatpush3.msra.mxu1 %v5879_v63  ;;  %v4639_v62 = vpop.f32.mrf.mxu1  ;;  %v5867_v63 = vld [vmem:[%s9328_s11 + $0xd08] sm:$0xff]  ;;  %v5906_v42 = vld [vmem:[%s9328_s11 + $0xe40] sm:$0xff]  ;;  %v5936_v49 = vld [vmem:[%s9328_s11 + $0xf30] sm:$0xff] }
0x1226   : > { %6451 = vmatprep.subr.mxu0 %v5862_v2  ;;  %6486 = vmatprep.subr.mxu1 %v5894_v3  ;;  %v5850_v2 = vld [vmem:[%s9328_s11 + $0xc80] sm:$0xff] }
0x1227   : > { %6452 = vmatpush3.msra.mxu0 %v5846_v4  ;;  %6487 = vmatpush3.msra.mxu1 %v5878_v5  ;;  %v5834_v3 = vld [vmem:[%s9328_s11 + $0xc00] sm:$0xff]  ;;  %v4640_v5 = vadd.f32 %v4639_v62, %v4054_v51  ;;  %v5919_v51 = vld [vmem:[%s9328_s11 + $0xea8] sm:$0xff] }
0x1228   : > { %6453 = vmatprep.subr.mxu0 %v5861_v6  ;;  %6488 = vmatprep.subr.mxu1 %v5893_v7  ;;  %v5866_v4 = vld [vmem:[%s9328_s11 + $0xd00] sm:$0xff]  ;;  %v4650_v6 = vmax.f32 %v4425_v60, 0.0  ;;  %v4652_v7 = vmax.f32 %v4496_v61, 0.0  ;;  %v5935_v60 = vld [vmem:[%s9328_s11 + $0xf28] sm:$0xff] }
0x1229   : > { %6454 = vmatpush3.msra.mxu0 %v5845_v8  ;;  %6489 = vmatpush3.msra.mxu1 %v5877_v14  ;;  %v5929_v8 = vld [vmem:[%s9328_s11 + $0xef8] sm:$0xff]  ;;  %v5938_v24 = vld [vmem:[%s9328_s11 + $0xf40] sm:$0xff] }
0x122a   : > { %6455 = vmatprep.subr.mxu0 %v5860_v15  ;;  %6490 = vmatprep.subr.mxu1 %v5892_v16  ;;  %v5961_v14 = vld [vmem:[%s9328_s11 + $0xff8] sm:$0xff]  ;;  %v4655_v16 = vmax.f32 %v4569_v22, 0.0  ;;  %v5918_v61 = vld [vmem:[%s9328_s11 + $0xea0] sm:$0xff]  ;;  %v4042_v22 = vrot.slane %v8850_v56, %v7618_v12  ;;  %v5948_v12 = vld [vmem:[%s9328_s11 + $0xf90] sm:$0xff] }
0x122b   : > { %6456 = vmatpush3.msra.mxu0 %v5844_v53  ;;  %6491 = vmatpush3.msra.mxu1 %v5876_v17  ;;  %v5913_v15 = vld [vmem:[%s9328_s11 + $0xe78] sm:$0xff]  ;;  %v4657_v17 = vmax.f32 %v4640_v5, 0.0  ;;  %v5950_v62 = vld [vmem:[%s9328_s11 + $0xfa0] sm:$0xff] }
0x122c   : > { %6457 = vmatprep.subr.mxu0 %v5859_v26  ;;  %6492 = vmatprep.subr.mxu1 %v5891_v18  ;;  %v5945_v53 = vld [vmem:[%s9328_s11 + $0xf78] sm:$0xff]  ;;  %v5928_v26 = vld [vmem:[%s9328_s11 + $0xef0] sm:$0xff] }
0x122d   : > { %6458 = vmatpush3.msra.mxu0 %v5843_v20  ;;  %6493 = vmatpush3.msra.mxu1 %v5875_v21  ;;  %v5960_v18 = vld [vmem:[%s9328_s11 + $0xff0] sm:$0xff]  ;;  %v5933_v5 = vld [vmem:[%s9328_s11 + $0xf18] sm:$0xff] }
0x122e   : > { %6459 = vmatprep.subr.mxu0 %v5858_v41  ;;  %6494 = vmatprep.subr.mxu1 %v5890_v28  ;;  %v5912_v20 = vld [vmem:[%s9328_s11 + $0xe70] sm:$0xff]  ;;  %v5927_v41 = vld [vmem:[%s9328_s11 + $0xee8] sm:$0xff] }
0x122f   : > { %6460 = vmatpush3.msra.mxu0 %v5842_v50  ;;  %6495 = vmatpush3.msra.mxu1 %v5874_v30  ;;  %v5944_v21 = vld [vmem:[%s9328_s11 + $0xf70] sm:$0xff]  ;;  %v5959_v28 = vld [vmem:[%s9328_s11 + $0xfe8] sm:$0xff] }
0x1230   : > { %6461 = vmatprep.subr.mxu0 %v5857_v31  ;;  %6496 = vmatprep.subr.mxu1 %v5889_v32  ;;  %v5911_v50 = vld [vmem:[%s9328_s11 + $0xe68] sm:$0xff]  ;;  %v5926_v31 = vld [vmem:[%s9328_s11 + $0xee0] sm:$0xff] }
0x1231   : > { %6462 = vmatpush3.msra.mxu0 %v5841_v29  ;;  %6497 = vmatpush3.msra.mxu1 %v5873_v33  ;;  %v5943_v30 = vld [vmem:[%s9328_s11 + $0xf68] sm:$0xff]  ;;  %v5958_v32 = vld [vmem:[%s9328_s11 + $0xfe0] sm:$0xff] }
0x1232   : > { %6463 = vmatprep.subr.mxu0 %v5856_v0  ;;  %6498 = vmatprep.subr.mxu1 %v5888_v57  ;;  %v5910_v29 = vld [vmem:[%s9328_s11 + $0xe60] sm:$0xff]  ;;  %v5925_v0 = vld [vmem:[%s9328_s11 + $0xed8] sm:$0xff] }
0x1233   : > { %6464 = vmatpush3.msra.mxu0 %v5840_v34  ;;  %6499 = vmatpush3.msra.mxu1 %v5872_v35  ;;  %v5942_v33 = vld [vmem:[%s9328_s11 + $0xf60] sm:$0xff]  ;;  %v5957_v57 = vld [vmem:[%s9328_s11 + $0xfd8] sm:$0xff] }
0x1234   : > { %6465 = vmatprep.subr.mxu0 %v5855_v36  ;;  %6500 = vmatprep.subr.mxu1 %v5887_v37  ;;  %v5909_v34 = vld [vmem:[%s9328_s11 + $0xe58] sm:$0xff]  ;;  %v5924_v36 = vld [vmem:[%s9328_s11 + $0xed0] sm:$0xff] }
0x1235   : > { %6466 = vmatpush3.msra.mxu0 %v5839_v58  ;;  %6501 = vmatpush3.msra.mxu1 %v5871_v38  ;;  %v5941_v35 = vld [vmem:[%s9328_s11 + $0xf58] sm:$0xff]  ;;  %v5956_v37 = vld [vmem:[%s9328_s11 + $0xfd0] sm:$0xff] }
0x1236   : > { %6467 = vmatprep.subr.mxu0 %v5854_v39  ;;  %6502 = vmatprep.subr.mxu1 %v5886_v23  ;;  %v5908_v58 = vld [vmem:[%s9328_s11 + $0xe50] sm:$0xff]  ;;  %v5923_v39 = vld [vmem:[%s9328_s11 + $0xec8] sm:$0xff] }
0x1237   : > { %6468 = vmatpush3.msra.mxu0 %v5838_v27  ;;  %6503 = vmatpush3.msra.mxu1 %v5870_v10  ;;  %v5940_v38 = vld [vmem:[%s9328_s11 + $0xf50] sm:$0xff]  ;;  %v5955_v23 = vld [vmem:[%s9328_s11 + $0xfc8] sm:$0xff] }
0x1238   : > { %6469 = vmatprep.subr.mxu0 %v5853_v47  ;;  %6504 = vmatprep.subr.mxu1 %v5885_v52  ;;  %v5907_v27 = vld [vmem:[%s9328_s11 + $0xe48] sm:$0xff]  ;;  %v5922_v47 = vld [vmem:[%s9328_s11 + $0xec0] sm:$0xff] }
0x1239   : > { %6470 = vmatpush3.msra.mxu0 %v5837_v1  ;;  %6505 = vmatpush3.msra.mxu1 %v5869_v43  ;;  %v5939_v10 = vld [vmem:[%s9328_s11 + $0xf48] sm:$0xff]  ;;  %v5954_v52 = vld [vmem:[%s9328_s11 + $0xfc0] sm:$0xff]  ;;  %v5921_v1 = vld [vmem:[%s9328_s11 + $0xeb8] sm:$0xff] }
0x123a   : > { %6471 = vmatprep.subr.mxu0 %v5852_v54  ;;  %6506 = vmatprep.subr.mxu1 %v5884_v55  ;;  %v5953_v43 = vld [vmem:[%s9328_s11 + $0xfb8] sm:$0xff] }
0x123b   : > { %6472 = vmatpush3.msra.mxu0 %v5836_v45  ;;  %6507 = vmatpush3.msra.mxu1 %v5868_v48  ;;  %v5905_v54 = vld [vmem:[%s9328_s11 + $0xe38] sm:$0xff]  ;;  %v5952_v45 = vld [vmem:[%s9328_s11 + $0xfb0] sm:$0xff] }
0x123c   : > { %6473 = vmatprep.subr.mxu0 %v5851_v9  ;;  %6508 = vmatprep.subr.mxu1 %v5883_v59  ;;  %v5937_v55 = vld [vmem:[%s9328_s11 + $0xf38] sm:$0xff]  ;;  %v5904_v48 = vld [vmem:[%s9328_s11 + $0xe30] sm:$0xff]  ;;  %v5951_v9 = vld [vmem:[%s9328_s11 + $0xfa8] sm:$0xff] }
0x123d   : > { %6474 = vmatpush3.msra.mxu0 %v5835_v11  ;;  %6509 = vmatpush3.msra.mxu1 %v5867_v63  ;;  %v5903_v59 = vld [vmem:[%s9328_s11 + $0xe28] sm:$0xff]  ;;  %v5902_v11 = vld [vmem:[%s9328_s11 + $0xe20] sm:$0xff] }
0x123e   : > { %6475 = vmatprep.subr.mxu0 %v5850_v2  ;;  %6510 = vmatprep.subr.mxu1 %v5882_v19  ;;  %v5934_v63 = vld [vmem:[%s9328_s11 + $0xf20] sm:$0xff]  ;;  %v5917_v2 = vld [vmem:[%s9328_s11 + $0xe98] sm:$0xff] }
0x123f   : > { %6476 = vmatpush3.msra.mxu0 %v5834_v3  ;;  %6511 = vmatpush3.msra.mxu1 %v5866_v4  ;;  %v5949_v19 = vld [vmem:[%s9328_s11 + $0xf98] sm:$0xff]  ;;  %v4050_v3 = vrot.slane %v8850_v56, %v7621_v13  ;;  %v5900_v13 = vld [vmem:[%s9328_s11 + $0xe10] sm:$0xff] }
0x1240   : > { %5260 = vmatmul.mubr.f32.vlgmr.msra.gmra.mxu0 %v4650_v6  ;;  %5330 = vmatmul.mubr.f32.vlgmr.msra.gmra.mxu1 %v4652_v7  ;;  %v5901_v4 = vld [vmem:[%s9328_s11 + $0xe18] sm:$0xff]  ;;  %v5916_v6 = vld [vmem:[%s9328_s11 + $0xe90] sm:$0xff]  ;;  %v5915_v7 = vld [vmem:[%s9328_s11 + $0xe88] sm:$0xff] }
0x1241   : > { %6515 = vmatprep.subr.mxu0 %v5929_v8  ;;  %6550 = vmatprep.subr.mxu1 %v5961_v14  ;;  %v5932_v56 = vld [vmem:[%s9328_s11 + $0xf10] sm:$0xff]  ;;  %v5947_v8 = vld [vmem:[%s9328_s11 + $0xf88] sm:$0xff]  ;;  %v4567_v14 = vadd.f32 %v9038_v40, %v4042_v22  ;;  %v5946_v40 = vld [vmem:[%s9328_s11 + $0xf80] sm:$0xff] }
0x1242   : > { %6516 = vmatpush3.msra.mxu0 %v5913_v15  ;;  %5399 = vmatprep.mubr.f32.mxu0 %v4655_v16  ;;  %v4638_v15 = vadd.f32 %v9050_v25, %v4050_v3  ;;  %v5899_v16 = vld [vmem:[%s9328_s11 + $0xe08] sm:$0xff]  ;;  %v5898_v25 = vld [vmem:[%s9328_s11 + $0xe00] sm:$0xff] }
0x1243   : > { %6551 = vmatpush3.msra.mxu1 %v5945_v53  ;;  %5469 = vmatprep.mubr.f32.mxu1 %v4657_v17  ;;  %v5931_v53 = vld [vmem:[%s9328_s11 + $0xf08] sm:$0xff]  ;;  %v5914_v17 = vld [vmem:[%s9328_s11 + $0xe80] sm:$0xff] }
0x1244   : > { %6517 = vmatprep.subr.mxu0 %v5928_v26  ;;  %6552 = vmatprep.subr.mxu1 %v5960_v18  ;;  %v5930_v26 = vld [vmem:[%s9328_s11 + $0xf00] sm:$0xff]  ;;  %v4654_v18 = vmax.f32 %v4567_v14, 0.0 }
0x1245   : > { %6518 = vmatpush3.msra.mxu0 %v5912_v20  ;;  %6553 = vmatpush3.msra.mxu1 %v5944_v21  ;;  %v4656_v20 = vmax.f32 %v4638_v15, 0.0 }
0x1246   : > { %6519 = vmatprep.subr.mxu0 %v5927_v41  ;;  %6554 = vmatprep.subr.mxu1 %v5959_v28 }
0x1247   : > { %6520 = vmatpush3.msra.mxu0 %v5911_v50  ;;  %6555 = vmatpush3.msra.mxu1 %v5943_v30 }
0x1248   : > { %6521 = vmatprep.subr.mxu0 %v5926_v31  ;;  %6556 = vmatprep.subr.mxu1 %v5958_v32 }
0x1249   : > { %6522 = vmatpush3.msra.mxu0 %v5910_v29  ;;  %6557 = vmatpush3.msra.mxu1 %v5942_v33 }
0x124a   : > { %6523 = vmatprep.subr.mxu0 %v5925_v0  ;;  %6558 = vmatprep.subr.mxu1 %v5957_v57 }
0x124b   : > { %6524 = vmatpush3.msra.mxu0 %v5909_v34  ;;  %6559 = vmatpush3.msra.mxu1 %v5941_v35 }
0x124c   : > { %6525 = vmatprep.subr.mxu0 %v5924_v36  ;;  %6560 = vmatprep.subr.mxu1 %v5956_v37 }
0x124d   : > { %6526 = vmatpush3.msra.mxu0 %v5908_v58  ;;  %6561 = vmatpush3.msra.mxu1 %v5940_v38 }
0x124e   : > { %6527 = vmatprep.subr.mxu0 %v5923_v39  ;;  %6562 = vmatprep.subr.mxu1 %v5955_v23 }
0x124f   : > { %6528 = vmatpush3.msra.mxu0 %v5907_v27  ;;  %6563 = vmatpush3.msra.mxu1 %v5939_v10 }
0x1250   : > { %6529 = vmatprep.subr.mxu0 %v5922_v47  ;;  %6564 = vmatprep.subr.mxu1 %v5954_v52 }
0x1251   : > { %6530 = vmatpush3.msra.mxu0 %v5906_v42  ;;  %6565 = vmatpush3.msra.mxu1 %v5938_v24 }
0x1252   : > { %6531 = vmatprep.subr.mxu0 %v5921_v1  ;;  %6566 = vmatprep.subr.mxu1 %v5953_v43 }
0x1253   : > { %6532 = vmatpush3.msra.mxu0 %v5905_v54  ;;  %6567 = vmatpush3.msra.mxu1 %v5937_v55 }
0x1254   : > { %6533 = vmatprep.subr.mxu0 %v5920_v44  ;;  %6568 = vmatprep.subr.mxu1 %v5952_v45 }
0x1255   : > { %6534 = vmatpush3.msra.mxu0 %v5904_v48  ;;  %6569 = vmatpush3.msra.mxu1 %v5936_v49  ;;  %v5963_v48 = vld [vmem:[%s9329_s12 + $0x1] ss:$0 sm:$0xff] }
0x1256   : > { %6535 = vmatprep.subr.mxu0 %v5919_v51  ;;  %6570 = vmatprep.subr.mxu1 %v5951_v9 }
0x1257   : > { %6536 = vmatpush3.msra.mxu0 %v5903_v59  ;;  %6571 = vmatpush3.msra.mxu1 %v5935_v60 }
0x1258   : > { %6537 = vmatprep.subr.mxu0 %v5918_v61  ;;  %6572 = vmatprep.subr.mxu1 %v5950_v62 }
0x1259   : > { %6538 = vmatpush3.msra.mxu0 %v5902_v11  ;;  %6573 = vmatpush3.msra.mxu1 %v5934_v63 }
0x125a   : > { %6539 = vmatprep.subr.mxu0 %v5917_v2  ;;  %6574 = vmatprep.subr.mxu1 %v5949_v19 }
0x125b   : > { %6540 = vmatpush3.msra.mxu0 %v5901_v4  ;;  %6575 = vmatpush3.msra.mxu1 %v5933_v5  ;;  %v5967_v4 = vld [vmem:[%s9331_s14 + $0x1] ss:$0 sm:$0xff] }
0x125c   : > { %6541 = vmatprep.subr.mxu0 %v5916_v6  ;;  %6576 = vmatprep.subr.mxu1 %v5948_v12 }
0x125d   : > { %6542 = vmatpush3.msra.mxu0 %v5900_v13  ;;  %6577 = vmatpush3.msra.mxu1 %v5932_v56 }
0x125e   : > { %6543 = vmatprep.subr.mxu0 %v5915_v7  ;;  %6578 = vmatprep.subr.mxu1 %v5947_v8 }
0x125f   : > { %6544 = vmatpush3.msra.mxu0 %v5899_v16  ;;  %6579 = vmatpush3.msra.mxu1 %v5931_v53 }
0x1260   : > { %6545 = vmatprep.subr.mxu0 %v5914_v17  ;;  %6580 = vmatprep.subr.mxu1 %v5946_v40 }
0x1261   : > { %6546 = vmatpush3.msra.mxu0 %v5898_v25  ;;  %6581 = vmatpush3.msra.mxu1 %v5930_v26 }
0x1262   : > { %5400 = vmatmul.mubr.f32.vlgmr.msra.gmra.mxu0 %v4654_v18  ;;  %5470 = vmatmul.mubr.f32.vlgmr.msra.gmra.mxu1 %v4656_v20 }
0x12bd   : > { %v6337_v21 = vpop.f32.mrf.mxu0  ;;  %v6372_v41 = vpop.f32.mrf.mxu1 }
0x12bf   : > { %v6338_v28 = vpop.f32.mrf.mxu0  ;;  %v6373_v30 = vpop.f32.mrf.mxu1 }
0x12c0   : > { %v6339_v32 = vadd.f32 %v6338_v28, %v6337_v21  ;;  %v6374_v29 = vadd.f32 %v6373_v30, %v6372_v41 }
0x12c2   : > { %v5052_v34 = vadd.f32 %v6374_v29, %v6339_v32 }
0x12de   : > { %v6407_v50 = vpop.f32.mrf.mxu0  ;;  %v6442_v33 = vpop.f32.mrf.mxu1 }
0x12e0   : > { %v6408_v31 = vpop.f32.mrf.mxu0  ;;  %v6443_v35 = vpop.f32.mrf.mxu1 }
0x12e1   : > { %v6409_v57 = vadd.f32 %v6408_v31, %v6407_v50  ;;  %v6444_v38 = vadd.f32 %v6443_v35, %v6442_v33 }
0x12e3   : > { %v5122_v37 = vadd.f32 %v6409_v57, %v5052_v34 }
0x12e5   : > { %v5192_v23 = vadd.f32 %v6444_v38, %v5122_v37 }
0x1300   : > { %v6477_v0 = vpop.f32.mrf.mxu0  ;;  %v6512_v58 = vpop.f32.mrf.mxu1 }
0x1302   : > { %v6478_v36 = vpop.f32.mrf.mxu0  ;;  %v6513_v27 = vpop.f32.mrf.mxu1 }
0x1303   : > { %v6479_v39 = vadd.f32 %v6478_v36, %v6477_v0  ;;  %v6514_v42 = vadd.f32 %v6513_v27, %v6512_v58 }
0x1305   : > { %v5262_v10 = vadd.f32 %v6479_v39, %v5192_v23 }
0x1307   : > { %v5332_v43 = vadd.f32 %v6514_v42, %v5262_v10 }
0x1322   : > { %v6547_v47 = vpop.f32.mrf.mxu0  ;;  %v6582_v52 = vpop.f32.mrf.mxu1 }
0x1324   : > { %v6548_v24 = vpop.f32.mrf.mxu0  ;;  %v6583_v1 = vpop.f32.mrf.mxu1 }
0x1325   : > { %v6549_v54 = vadd.f32 %v6548_v24, %v6547_v47  ;;  %v6584_v44 = vadd.f32 %v6583_v1, %v6582_v52 }
0x1327   : > { %v5402_v55 = vadd.f32 %v6549_v54, %v5332_v43 }
0x1329   : > { %v5472_v45 = vadd.f32 %v6584_v44, %v5402_v55 }
0x132b   : > { %v5475_v49 = vadd.f32 %v5472_v45, %v8308_v46  ;;  %v5965_v46 = vld [vmem:[%s9330_s13 + $0x1] ss:$0 sm:$0xff] }
0x132d   : > { %v5484_v51 = vadd.f32 %v5963_v48, %v5475_v49 }
0x132f   : > { %v5485_v9 = vsel %vm583_vm2, %v5484_v51, 0.0 }
0x1330   : > { %5486 = vadd.xlane.f32.xlu0 %v5485_v9 }
0x13b9   : > { %v5487_v59 = vpop.xlane.xlu0 %5486 }
0x13ba   : > { %v5488_v60 = vmul.f32 0.03125, %v5487_v59 }
0x13bc   : > { %v5489_v61 = vsub.f32 %v5484_v51, %v5488_v60 }
0x13be   : > { %v5490_v62 = vmul.f32 %v5489_v61, %v5489_v61 }
0x13c0   : > { %v5491_v11 = vsel %vm583_vm2, %v5490_v62, 0.0 }
0x13c1   : > { %5492 = vadd.xlane.f32.xlu0 %v5491_v11 }
0x144a   : > { %v5493_v63 = vpop.xlane.xlu0 %5492 }
0x144b   : > { %v5494_v2 = vmul.f32 0.03125, %v5493_v63 }
0x144d   : > { %v5495_v19 = vadd.f32 1e-05, %v5494_v2 }
0x144f   : > { %6778 = vrsqrt.f32 %v5495_v19 }
0x145c   : > { %v6779_v22 = vpop.eup %6778 }
0x145d   : > { %v5497_v3 = vmul.f32 %v6779_v22, %v5489_v61 }
0x145f   : > { %v5506_v5 = vmul.f32 %v5965_v46, %v5497_v3 }
0x1461   : > { %v5515_v6 = vadd.f32 %v5967_v4, %v5506_v5 }
0x1463   : > { %5517 = vst.msk [vmem:[%s487_s21 - $0x7] sm:$0x80] %vm5516_vm5, %v5515_v6 }
0x1464 PF: > { %s25_s18 = sadd.s32 1, %s6786_s18  }
0x1465   : > { %p22_p4 = scmp.ge.s32.totalorder %s25_s18, 4  }
0x1467   :  { %24 = sbr.rel (!%p22_p4) target bundleno = 1 (0x1), region = 122 }

</bundles_post_ra>
